<compile_context>
chip_gen: v7x
topology: tpu7x:2x2x1
jax: 0.10.0
libtpu: 0.0.40
codegen_flags: <defaults>
</compile_context>

<pallas_src>
import functools
import math

import jax
import jax.numpy as jnp
from jax.experimental import pallas as pl
from jax.experimental.pallas import tpu as pltpu

LANE = 128


def _round_up(v, m):
    return ((v + m - 1) // m) * m


# ----------------------------- in-kernel helpers -----------------------------

def _layernorm(x, g, b, real_d, eps=1e-5):
    """LayerNorm over the last axis, ignoring zero lane-padding.

    Columns >= real_d of `x` are identically zero, so sums over the padded lane
    dim equal sums over the real embed dim; divide by the real width.  gamma /
    beta are zero on padded columns, so the padding stays exactly zero.
    """
    inv_d = 1.0 / float(real_d)
    mu = jnp.sum(x, axis=-1, keepdims=True) * inv_d
    ex2 = jnp.sum(x * x, axis=-1, keepdims=True) * inv_d
    var = ex2 - mu * mu
    return (x - mu) * jax.lax.rsqrt(var + eps) * g + b


def _erf(x):
    # TODO(synk): PyTorch nn.GELU() uses exact erf; lax.erf may not lower in
    # Mosaic, so use Abramowitz&Stegun 7.1.26 (|err| <= 1.5e-7).  exp() and the
    # reciprocal go to the EUP slot; the polynomial is a few VALU FMAs.
    a1, a2, a3, a4, a5 = 0.254829592, -0.284496736, 1.421413741, -1.453152027, 1.061405429
    p = 0.3275911
    sgn = jnp.where(x >= 0.0, 1.0, -1.0)
    ax = jnp.abs(x)
    t = pl.reciprocal(1.0 + p * ax, approx=True)
    poly = ((((a5 * t + a4) * t + a3) * t + a2) * t + a1) * t
    return sgn * (1.0 - poly * jnp.exp(-ax * ax))


def _gelu(x):
    return 0.5 * x * (1.0 + _erf(x * (1.0 / math.sqrt(2.0))))


# --------------------------------- kernel ------------------------------------

def vit_fused_kernel(patches_ref, pw_ref, pb_ref, pos_ref,
                     wqkv_ref, bqkv_ref, wo_ref, bo_ref,
                     ln1g_ref, ln1b_ref, w1_ref, bf1_ref,
                     w2_ref, bf2_ref, ln2g_ref, ln2b_ref,
                     lnf_g_ref, lnf_b_ref, wout_ref, bout_ref,
                     out_ref,
                     tok_ref, q3_ref, k3_ref, v3_ref, ocat_ref,
                     *, num_heads, real_d, real_dh):
    d = pl.program_id(1)                      # layer index ("arbitrary" axis)
    n_layers = pl.num_programs(1)
    N, Dp = tok_ref.shape
    H = num_heads
    dh_p = Dp // H
    scale = 1.0 / math.sqrt(real_dh)

    # ---- depth step 0 only: patch embedding + positional embedding ----------
    @pl.when(d == 0)
    def _():
        emb = jnp.dot(patches_ref[0], pw_ref[...],
                      preferred_element_type=jnp.float32)
        tok_ref[...] = emb + pb_ref[...] + pos_ref[...]

    x = tok_ref[...]                          # (N, Dp) f32 residual stream
    xb = x.astype(jnp.bfloat16)

    # ---- multi-head self-attention (batched over heads, eval mode) ----------
    qkv = jnp.dot(xb, wqkv_ref[0],
                  preferred_element_type=jnp.float32) + bqkv_ref[0]
    # Head split into (H, N, dh_p) staging buffers: pure layout copies,
    # no per-head matmuls.
    for h in range(H):
        c0 = h * dh_p
        q3_ref[h] = (qkv[:, c0:c0 + dh_p] * scale).astype(jnp.bfloat16)
        k3_ref[h] = qkv[:, Dp + c0:Dp + c0 + dh_p].astype(jnp.bfloat16)
        v3_ref[h] = qkv[:, 2 * Dp + c0:2 * Dp + c0 + dh_p].astype(jnp.bfloat16)

    # One batched matmul for all heads' scores, one for P @ V.
    s = jnp.einsum('hqd,hkd->hqk', q3_ref[...], k3_ref[...],
                   preferred_element_type=jnp.float32)          # (H, N, N)
    s = s - jnp.max(s, axis=-1, keepdims=True)
    e = jnp.exp(s)
    p = e * pl.reciprocal(jnp.sum(e, axis=-1, keepdims=True), approx=True)
    o = jnp.einsum('hqk,hkd->hqd', p.astype(jnp.bfloat16), v3_ref[...],
                   preferred_element_type=jnp.float32)          # (H, N, dh_p)

    # Re-pack heads into an (N, H*dh_p) buffer and do ONE output projection.
    for h in range(H):
        ocat_ref[:, h * dh_p:(h + 1) * dh_p] = o[h].astype(jnp.bfloat16)
    attn = jnp.dot(ocat_ref[...], wo_ref[0],
                   preferred_element_type=jnp.float32) + bo_ref[0]

    x = _layernorm(x + attn, ln1g_ref[0], ln1b_ref[0], real_d)   # post-norm

    # ---- feed-forward --------------------------------------------------------
    h1 = jnp.dot(x.astype(jnp.bfloat16), w1_ref[0],
                 preferred_element_type=jnp.float32) + bf1_ref[0]
    h1 = _gelu(h1)
    h2 = jnp.dot(h1.astype(jnp.bfloat16), w2_ref[0],
                 preferred_element_type=jnp.float32) + bf2_ref[0]
    x = _layernorm(x + h2, ln2g_ref[0], ln2b_ref[0], real_d)     # post-norm

    tok_ref[...] = x

    # ---- last depth step only: final LayerNorm + output projection ----------
    @pl.when(d == n_layers - 1)
    def _():
        y = _layernorm(x, lnf_g_ref[...], lnf_b_ref[...], real_d)
        out_ref[0] = jnp.dot(y.astype(jnp.bfloat16), wout_ref[...],
                             preferred_element_type=jnp.float32) + bout_ref[...]


# -------------------------------- wrapper -------------------------------------

def _const_spec(shape):
    zeros = (0,) * len(shape)
    return pl.BlockSpec(shape, lambda b, d: zeros)


def _layer_spec(shape):
    zeros = (0,) * len(shape)
    return pl.BlockSpec((1,) + tuple(shape), lambda b, d: (d,) + zeros)


def extract_patches(x, p):
    # NCHW -> (B, N, C*p*p), patch flattened in (C, ph, pw) order (Conv2d layout)
    B, C, H, W = x.shape
    g = H // p
    x = x.reshape(B, C, g, p, g, p)
    x = x.transpose(0, 2, 4, 1, 3, 5)            # (B, gh, gw, C, p, p)
    return x.reshape(B, g * g, C * p * p)


def vit_forward(x, params, patch_size, num_heads):
    meta = params["meta"]
    B, C, Himg, Wimg = x.shape
    p = patch_size
    g = Himg // p
    N = g * g
    D, Dp = meta["D"], meta["Dp"]
    Hp = meta["Hp"]
    Cin, Cin_p = meta["Cin"], meta["Cin_p"]
    Cout_p = meta["Cout_p"]
    L = meta["depth"]
    H = num_heads
    dh_p = Dp // H

    patches = extract_patches(x, p)                               # (B, N, Cin)
    patches = jnp.pad(patches, ((0, 0), (0, 0), (0, Cin_p - Cin)))
    patches = patches.astype(jnp.bfloat16)

    kernel = functools.partial(vit_fused_kernel, num_heads=H,
                               real_d=D, real_dh=D // H)

    out = pl.pallas_call(
        kernel,
        out_shape=jax.ShapeDtypeStruct((B, N, Cout_p), jnp.float32),
        grid=(B, L),
        in_specs=[
            pl.BlockSpec((1, N, Cin_p), lambda b, d: (b, 0, 0)),  # patches
            _const_spec((Cin_p, Dp)),                              # patch_w
            _const_spec((1, Dp)),                                  # patch_b
            _const_spec((N, Dp)),                                  # pos
            _layer_spec((Dp, 3 * Dp)),                             # wqkv
            _layer_spec((1, 3 * Dp)),                              # bqkv
            _layer_spec((Dp, Dp)),                                 # wo
            _layer_spec((1, Dp)),                                  # bo
            _layer_spec((1, Dp)),                                  # ln1_g
            _layer_spec((1, Dp)),                                  # ln1_b
            _layer_spec((Dp, Hp)),                                 # w1
            _layer_spec((1, Hp)),                                  # bf1
            _layer_spec((Hp, Dp)),                                 # w2
            _layer_spec((1, Dp)),                                  # bf2
            _layer_spec((1, Dp)),                                  # ln2_g
            _layer_spec((1, Dp)),                                  # ln2_b
            _const_spec((1, Dp)),                                  # lnf_g
            _const_spec((1, Dp)),                                  # lnf_b
            _const_spec((Dp, Cout_p)),                             # wout
            _const_spec((1, Cout_p)),                              # bout
        ],
        out_specs=pl.BlockSpec((1, N, Cout_p), lambda b, d: (b, 0, 0)),
        scratch_shapes=[
            pltpu.VMEM((N, Dp), jnp.float32),        # resident token state
            pltpu.VMEM((H, N, dh_p), jnp.bfloat16),  # q (head-major)
            pltpu.VMEM((H, N, dh_p), jnp.bfloat16),  # k
            pltpu.VMEM((H, N, dh_p), jnp.bfloat16),  # v
            pltpu.VMEM((N, Dp), jnp.bfloat16),       # concat of head outputs
        ],
        compiler_params=pltpu.CompilerParams(
            dimension_semantics=("parallel", "arbitrary"),
            vmem_limit_bytes=32 * 1024 * 1024),
    )(patches, params["patch_w"], params["patch_b"], params["pos"],
      params["wqkv"], params["bqkv"], params["wo"], params["bo"],
      params["ln1_g"], params["ln1_b"], params["w1"], params["bf1"],
      params["w2"], params["bf2"], params["ln2_g"], params["ln2_b"],
      params["lnf_g"], params["lnf_b"], params["wout"], params["bout"])

    out = out[:, :, :Cin]        # drop lane padding of the output projection
    # exact reproduction of PyTorch view / permute / contiguous / view
    y = out.reshape(B, g, g, Cin).transpose(0, 3, 1, 2).reshape(B, C, g * p, g * p)
    return y


# ------------------------------ parameters ------------------------------------

def init_params(key, in_channels, patch_size, embed_dim, img_size, depth,
                num_heads, hidden_dim):
    C, p, D, Hf, H = in_channels, patch_size, embed_dim, hidden_dim, num_heads
    assert D % H == 0
    dh = D // H
    Dp = _round_up(D, math.lcm(LANE, H))       # lane-pad embed; keeps Dp % H == 0
    dh_p = Dp // H
    Hp = _round_up(Hf, LANE)
    Cin = C * p * p
    Cin_p = _round_up(Cin, LANE)
    Cout_p = Cin_p
    g = img_size // p
    N = g * g

    keys = iter(jax.random.split(key, 16 + 16 * depth))

    def nrm(shape, std=0.02):
        return (std * jax.random.normal(next(keys), shape)).astype(jnp.float32)

    def pad2(w, r, c, rp, cp, dtype=jnp.float32):
        return jnp.zeros((rp, cp), jnp.float32).at[:r, :c].set(w).astype(dtype)

    def pad_row(v, c, cp):
        return jnp.zeros((1, cp), jnp.float32).at[:, :c].set(v)

    # per-head lane padding: head h occupies columns [h*dh_p, h*dh_p + dh);
    # padded columns/rows are zero, so scores / outputs match the unpadded math.
    def pad_head_cols(w):                       # (D, D) -> (Dp, Dp)
        out = jnp.zeros((Dp, Dp), jnp.float32)
        for h in range(H):
            out = out.at[:D, h * dh_p:h * dh_p + dh].set(w[:, h * dh:(h + 1) * dh])
        return out

    def pad_head_bias(bv):                      # (1, D) -> (1, Dp)
        out = jnp.zeros((1, Dp), jnp.float32)
        for h in range(H):
            out = out.at[:, h * dh_p:h * dh_p + dh].set(bv[:, h * dh:(h + 1) * dh])
        return out

    def pad_head_rows(w):                       # out_proj: (D, D) -> (Dp, Dp)
        out = jnp.zeros((Dp, Dp), jnp.float32)
        for h in range(H):
            out = out.at[h * dh_p:h * dh_p + dh, :D].set(w[h * dh:(h + 1) * dh, :])
        return out

    def pad_gamma():
        return jnp.zeros((1, Dp), jnp.float32).at[:, :D].set(1.0)

    params = {
        "patch_w": pad2(nrm((Cin, D)), Cin, D, Cin_p, Dp, jnp.bfloat16),
        "patch_b": pad_row(nrm((1, D)), D, Dp),
        "pos": jnp.zeros((N, Dp), jnp.float32).at[:, :D].set(nrm((N, D))),
        "lnf_g": pad_gamma(),
        "lnf_b": jnp.zeros((1, Dp), jnp.float32),
        "wout": pad2(nrm((D, Cin)), D, Cin, Dp, Cout_p, jnp.bfloat16),
        "bout": pad_row(nrm((1, Cin)), Cin, Cout_p),
        "meta": dict(D=D, Dp=Dp, dh=dh, dh_p=dh_p, Hf=Hf, Hp=Hp,
                     Cin=Cin, Cin_p=Cin_p, Cout_p=Cout_p, depth=depth, N=N),
    }

    lists = {k: [] for k in ("wqkv", "bqkv", "wo", "bo", "ln1_g", "ln1_b",
                             "w1", "bf1", "w2", "bf2", "ln2_g", "ln2_b")}
    for _ in range(depth):
        wq, wk, wv = nrm((D, D)), nrm((D, D)), nrm((D, D))
        bq, bk, bv = nrm((1, D)), nrm((1, D)), nrm((1, D))
        lists["wqkv"].append(jnp.concatenate(
            [pad_head_cols(wq), pad_head_cols(wk), pad_head_cols(wv)],
            axis=1).astype(jnp.bfloat16))
        lists["bqkv"].append(jnp.concatenate(
            [pad_head_bias(bq), pad_head_bias(bk), pad_head_bias(bv)], axis=1))
        lists["wo"].append(pad_head_rows(nrm((D, D))).astype(jnp.bfloat16))
        lists["bo"].append(pad_row(nrm((1, D)), D, Dp))
        lists["ln1_g"].append(pad_gamma())
        lists["ln1_b"].append(jnp.zeros((1, Dp), jnp.float32))
        lists["w1"].append(pad2(nrm((D, Hf)), D, Hf, Dp, Hp, jnp.bfloat16))
        lists["bf1"].append(pad_row(nrm((1, Hf)), Hf, Hp))
        lists["w2"].append(pad2(nrm((Hf, D)), Hf, D, Hp, Dp, jnp.bfloat16))
        lists["bf2"].append(pad_row(nrm((1, D)), D, Dp))
        lists["ln2_g"].append(pad_gamma())
        lists["ln2_b"].append(jnp.zeros((1, Dp), jnp.float32))

    for kname, lst in lists.items():
        params[kname] = jnp.stack(lst, axis=0)
    return params


if __name__ == "__main__":
    # small config consistent with the module's forward
    B, C, patch_size, img_size = 2, 3, 4, 16
    embed_dim, depth, num_heads, hidden_dim = 64, 3, 4, 96

    key = jax.random.PRNGKey(0)
    kx, kp = jax.random.split(key)
    x = jax.random.normal(kx, (B, C, img_size, img_size), jnp.float32)
    params = init_params(kp, C, patch_size, embed_dim, img_size, depth,
                         num_heads, hidden_dim)

    y = vit_forward(x, params, patch_size, num_heads)
    y = jax.block_until_ready(y)
    assert y.shape == (B, C, img_size, img_size), y.shape
    assert y.dtype == jnp.float32
    assert bool(jnp.all(jnp.isfinite(y)))
    print("KERNEL_OK")
</pallas_src>

<mosaic_0001>
module attributes {stable_mosaic.version = 11 : i64} {
  func.func @vit_fused_kernel(%arg0: i32, %arg1: i32, %arg2: memref<1x16x128xbf16, #tpu.memory_space<vmem>>, %arg3: memref<128x128xbf16, #tpu.memory_space<vmem>>, %arg4: memref<1x128xf32, #tpu.memory_space<vmem>>, %arg5: memref<16x128xf32, #tpu.memory_space<vmem>>, %arg6: memref<1x128x384xbf16, #tpu.memory_space<vmem>>, %arg7: memref<1x1x384xf32, #tpu.memory_space<vmem>>, %arg8: memref<1x128x128xbf16, #tpu.memory_space<vmem>>, %arg9: memref<1x1x128xf32, #tpu.memory_space<vmem>>, %arg10: memref<1x1x128xf32, #tpu.memory_space<vmem>>, %arg11: memref<1x1x128xf32, #tpu.memory_space<vmem>>, %arg12: memref<1x128x128xbf16, #tpu.memory_space<vmem>>, %arg13: memref<1x1x128xf32, #tpu.memory_space<vmem>>, %arg14: memref<1x128x128xbf16, #tpu.memory_space<vmem>>, %arg15: memref<1x1x128xf32, #tpu.memory_space<vmem>>, %arg16: memref<1x1x128xf32, #tpu.memory_space<vmem>>, %arg17: memref<1x1x128xf32, #tpu.memory_space<vmem>>, %arg18: memref<1x128xf32, #tpu.memory_space<vmem>>, %arg19: memref<1x128xf32, #tpu.memory_space<vmem>>, %arg20: memref<128x128xbf16, #tpu.memory_space<vmem>>, %arg21: memref<1x128xf32, #tpu.memory_space<vmem>>, %arg22: memref<1x16x128xf32, #tpu.memory_space<vmem>>, %arg23: memref<16x128xf32, #tpu.memory_space<vmem>>, %arg24: memref<4x16x32xbf16, #tpu.memory_space<vmem>>, %arg25: memref<4x16x32xbf16, #tpu.memory_space<vmem>>, %arg26: memref<4x16x32xbf16, #tpu.memory_space<vmem>>, %arg27: memref<16x128xbf16, #tpu.memory_space<vmem>>) attributes {dimension_semantics = [#tpu.dimension_semantics<parallel>, #tpu.dimension_semantics<arbitrary>], iteration_bounds = array<i64: 2, 3>, scalar_prefetch = 0 : i64, scratch_operands = 5 : i64, tpu.core_type = #tpu.core_type<tc>, window_params = [{transform_indices = @transform_0, window_bounds = array<i64: 1, 16, 128>}, {pipeline_mode = #tpu.pipeline_mode<synchronous>, transform_indices = @transform_1, window_bounds = array<i64: 128, 128>}, {pipeline_mode = #tpu.pipeline_mode<synchronous>, transform_indices = @transform_2, window_bounds = array<i64: 1, 128>}, {pipeline_mode = #tpu.pipeline_mode<synchronous>, transform_indices = @transform_3, window_bounds = array<i64: 16, 128>}, {transform_indices = @transform_4, window_bounds = array<i64: 1, 128, 384>}, {transform_indices = @transform_5, window_bounds = array<i64: 1, 1, 384>}, {transform_indices = @transform_6, window_bounds = array<i64: 1, 128, 128>}, {transform_indices = @transform_7, window_bounds = array<i64: 1, 1, 128>}, {transform_indices = @transform_8, window_bounds = array<i64: 1, 1, 128>}, {transform_indices = @transform_9, window_bounds = array<i64: 1, 1, 128>}, {transform_indices = @transform_10, window_bounds = array<i64: 1, 128, 128>}, {transform_indices = @transform_11, window_bounds = array<i64: 1, 1, 128>}, {transform_indices = @transform_12, window_bounds = array<i64: 1, 128, 128>}, {transform_indices = @transform_13, window_bounds = array<i64: 1, 1, 128>}, {transform_indices = @transform_14, window_bounds = array<i64: 1, 1, 128>}, {transform_indices = @transform_15, window_bounds = array<i64: 1, 1, 128>}, {pipeline_mode = #tpu.pipeline_mode<synchronous>, transform_indices = @transform_16, window_bounds = array<i64: 1, 128>}, {pipeline_mode = #tpu.pipeline_mode<synchronous>, transform_indices = @transform_17, window_bounds = array<i64: 1, 128>}, {pipeline_mode = #tpu.pipeline_mode<synchronous>, transform_indices = @transform_18, window_bounds = array<i64: 128, 128>}, {pipeline_mode = #tpu.pipeline_mode<synchronous>, transform_indices = @transform_19, window_bounds = array<i64: 1, 128>}, {transform_indices = @transform_20, window_bounds = array<i64: 1, 16, 128>}]} {
    %c0_i32 = arith.constant 0 : i32
    %0 = arith.cmpi eq, %arg1, %c0_i32 : i32
    %1 = arith.extui %0 : i1 to i32
    %c0_i32_0 = arith.constant 0 : i32
    %2 = arith.cmpi ne, %1, %c0_i32_0 : i32
    scf.if %2 {
      %c0_126 = arith.constant 0 : index
      %c0_127 = arith.constant 0 : index
      %c0_128 = arith.constant 0 : index
      %234 = vector.load %arg2[%c0_126, %c0_127, %c0_128] : memref<1x16x128xbf16, #tpu.memory_space<vmem>>, vector<1x16x128xbf16>
      %235 = vector.shape_cast %234 : vector<1x16x128xbf16> to vector<16x128xbf16>
      %c0_129 = arith.constant 0 : index
      %c0_130 = arith.constant 0 : index
      %236 = vector.load %arg3[%c0_129, %c0_130] : memref<128x128xbf16, #tpu.memory_space<vmem>>, vector<128x128xbf16>
      %cst_131 = arith.constant dense<0.000000e+00> : vector<16x128xf32>
      %237 = tpu.matmul %235, %236, %cst_131 {dimension_numbers = #tpu.dot_dimension_numbers<[1], [0], [0], [1], [0, 0, 1, 1], [], []>} : vector<16x128xbf16>, vector<128x128xbf16>, vector<16x128xf32> -> vector<16x128xf32>
      %c0_132 = arith.constant 0 : index
      %c0_133 = arith.constant 0 : index
      %238 = vector.load %arg4[%c0_132, %c0_133] : memref<1x128xf32, #tpu.memory_space<vmem>>, vector<1x128xf32>
      %239 = vector.broadcast %238 : vector<1x128xf32> to vector<16x128xf32>
      %240 = arith.addf %237, %239 : vector<16x128xf32>
      %c0_134 = arith.constant 0 : index
      %c0_135 = arith.constant 0 : index
      %241 = vector.load %arg5[%c0_134, %c0_135] : memref<16x128xf32, #tpu.memory_space<vmem>>, vector<16x128xf32>
      %242 = arith.addf %240, %241 : vector<16x128xf32>
      %c0_136 = arith.constant 0 : index
      %c0_137 = arith.constant 0 : index
      %243 = vector.load %arg23[%c0_136, %c0_137] : memref<16x128xf32, #tpu.memory_space<vmem>>, vector<16x128xf32>
      tpu.vector_store %arg23[%c0_136, %c0_137], %242 {strides = array<i32>} : memref<16x128xf32, #tpu.memory_space<vmem>>, vector<16x128xf32>,
    } else {
    }
    %c0 = arith.constant 0 : index
    %c0_1 = arith.constant 0 : index
    %3 = vector.load %arg23[%c0, %c0_1] : memref<16x128xf32, #tpu.memory_space<vmem>>, vector<16x128xf32>
    %4 = arith.truncf %3 : vector<16x128xf32> to vector<16x128xbf16>
    %c0_2 = arith.constant 0 : index
    %c0_3 = arith.constant 0 : index
    %c0_4 = arith.constant 0 : index
    %5 = vector.load %arg6[%c0_2, %c0_3, %c0_4] : memref<1x128x384xbf16, #tpu.memory_space<vmem>>, vector<1x128x384xbf16>
    %6 = vector.shape_cast %5 : vector<1x128x384xbf16> to vector<128x384xbf16>
    %cst = arith.constant dense<0.000000e+00> : vector<16x384xf32>
    %7 = tpu.matmul %4, %6, %cst {dimension_numbers = #tpu.dot_dimension_numbers<[1], [0], [0], [1], [0, 0, 1, 1], [], []>} : vector<16x128xbf16>, vector<128x384xbf16>, vector<16x384xf32> -> vector<16x384xf32>
    %c0_5 = arith.constant 0 : index
    %c0_6 = arith.constant 0 : index
    %c0_7 = arith.constant 0 : index
    %8 = vector.load %arg7[%c0_5, %c0_6, %c0_7] : memref<1x1x384xf32, #tpu.memory_space<vmem>>, vector<1x1x384xf32>
    %9 = vector.shape_cast %8 : vector<1x1x384xf32> to vector<1x384xf32>
    %10 = vector.broadcast %9 : vector<1x384xf32> to vector<16x384xf32>
    %11 = arith.addf %7, %10 : vector<16x384xf32>
    %12 = vector.extract_strided_slice %11 {offsets = [0, 0], sizes = [16, 32], strides = [1, 1]} : vector<16x384xf32> to vector<16x32xf32>
    %cst_8 = arith.constant 2.500000e-01 : f32
    %13 = vector.broadcast %cst_8 : f32 to vector<16x32xf32>
    %14 = arith.mulf %12, %13 : vector<16x32xf32>
    %15 = arith.truncf %14 : vector<16x32xf32> to vector<16x32xbf16>
    %c0_9 = arith.constant 0 : index
    %c0_10 = arith.constant 0 : index
    %c0_11 = arith.constant 0 : index
    %16 = vector.load %arg24[%c0_9, %c0_10, %c0_11] : memref<4x16x32xbf16, #tpu.memory_space<vmem>>, vector<1x16x32xbf16>
    %17 = vector.shape_cast %16 : vector<1x16x32xbf16> to vector<16x32xbf16>
    %18 = vector.shape_cast %15 : vector<16x32xbf16> to vector<1x16x32xbf16>
    tpu.vector_store %arg24[%c0_9, %c0_10, %c0_11], %18 {strides = array<i32>} : memref<4x16x32xbf16, #tpu.memory_space<vmem>>, vector<1x16x32xbf16>,
    %19 = vector.extract_strided_slice %11 {offsets = [0, 128], sizes = [16, 32], strides = [1, 1]} : vector<16x384xf32> to vector<16x32xf32>
    %20 = arith.truncf %19 : vector<16x32xf32> to vector<16x32xbf16>
    %c0_12 = arith.constant 0 : index
    %c0_13 = arith.constant 0 : index
    %c0_14 = arith.constant 0 : index
    %21 = vector.load %arg25[%c0_12, %c0_13, %c0_14] : memref<4x16x32xbf16, #tpu.memory_space<vmem>>, vector<1x16x32xbf16>
    %22 = vector.shape_cast %21 : vector<1x16x32xbf16> to vector<16x32xbf16>
    %23 = vector.shape_cast %20 : vector<16x32xbf16> to vector<1x16x32xbf16>
    tpu.vector_store %arg25[%c0_12, %c0_13, %c0_14], %23 {strides = array<i32>} : memref<4x16x32xbf16, #tpu.memory_space<vmem>>, vector<1x16x32xbf16>,
    %24 = vector.extract_strided_slice %11 {offsets = [0, 256], sizes = [16, 32], strides = [1, 1]} : vector<16x384xf32> to vector<16x32xf32>
    %25 = arith.truncf %24 : vector<16x32xf32> to vector<16x32xbf16>
    %c0_15 = arith.constant 0 : index
    %c0_16 = arith.constant 0 : index
    %c0_17 = arith.constant 0 : index
    %26 = vector.load %arg26[%c0_15, %c0_16, %c0_17] : memref<4x16x32xbf16, #tpu.memory_space<vmem>>, vector<1x16x32xbf16>
    %27 = vector.shape_cast %26 : vector<1x16x32xbf16> to vector<16x32xbf16>
    %28 = vector.shape_cast %25 : vector<16x32xbf16> to vector<1x16x32xbf16>
    tpu.vector_store %arg26[%c0_15, %c0_16, %c0_17], %28 {strides = array<i32>} : memref<4x16x32xbf16, #tpu.memory_space<vmem>>, vector<1x16x32xbf16>,
    %29 = vector.extract_strided_slice %11 {offsets = [0, 32], sizes = [16, 32], strides = [1, 1]} : vector<16x384xf32> to vector<16x32xf32>
    %cst_18 = arith.constant 2.500000e-01 : f32
    %30 = vector.broadcast %cst_18 : f32 to vector<16x32xf32>
    %31 = arith.mulf %29, %30 : vector<16x32xf32>
    %32 = arith.truncf %31 : vector<16x32xf32> to vector<16x32xbf16>
    %c1 = arith.constant 1 : index
    %c0_19 = arith.constant 0 : index
    %c0_20 = arith.constant 0 : index
    %33 = vector.load %arg24[%c1, %c0_19, %c0_20] : memref<4x16x32xbf16, #tpu.memory_space<vmem>>, vector<1x16x32xbf16>
    %34 = vector.shape_cast %33 : vector<1x16x32xbf16> to vector<16x32xbf16>
    %35 = vector.shape_cast %32 : vector<16x32xbf16> to vector<1x16x32xbf16>
    tpu.vector_store %arg24[%c1, %c0_19, %c0_20], %35 {strides = array<i32>} : memref<4x16x32xbf16, #tpu.memory_space<vmem>>, vector<1x16x32xbf16>,
    %36 = vector.extract_strided_slice %11 {offsets = [0, 160], sizes = [16, 32], strides = [1, 1]} : vector<16x384xf32> to vector<16x32xf32>
    %37 = arith.truncf %36 : vector<16x32xf32> to vector<16x32xbf16>
    %c1_21 = arith.constant 1 : index
    %c0_22 = arith.constant 0 : index
    %c0_23 = arith.constant 0 : index
    %38 = vector.load %arg25[%c1_21, %c0_22, %c0_23] : memref<4x16x32xbf16, #tpu.memory_space<vmem>>, vector<1x16x32xbf16>
    %39 = vector.shape_cast %38 : vector<1x16x32xbf16> to vector<16x32xbf16>
    %40 = vector.shape_cast %37 : vector<16x32xbf16> to vector<1x16x32xbf16>
    tpu.vector_store %arg25[%c1_21, %c0_22, %c0_23], %40 {strides = array<i32>} : memref<4x16x32xbf16, #tpu.memory_space<vmem>>, vector<1x16x32xbf16>,
    %41 = vector.extract_strided_slice %11 {offsets = [0, 288], sizes = [16, 32], strides = [1, 1]} : vector<16x384xf32> to vector<16x32xf32>
    %42 = arith.truncf %41 : vector<16x32xf32> to vector<16x32xbf16>
    %c1_24 = arith.constant 1 : index
    %c0_25 = arith.constant 0 : index
    %c0_26 = arith.constant 0 : index
    %43 = vector.load %arg26[%c1_24, %c0_25, %c0_26] : memref<4x16x32xbf16, #tpu.memory_space<vmem>>, vector<1x16x32xbf16>
    %44 = vector.shape_cast %43 : vector<1x16x32xbf16> to vector<16x32xbf16>
    %45 = vector.shape_cast %42 : vector<16x32xbf16> to vector<1x16x32xbf16>
    tpu.vector_store %arg26[%c1_24, %c0_25, %c0_26], %45 {strides = array<i32>} : memref<4x16x32xbf16, #tpu.memory_space<vmem>>, vector<1x16x32xbf16>,
    %46 = vector.extract_strided_slice %11 {offsets = [0, 64], sizes = [16, 32], strides = [1, 1]} : vector<16x384xf32> to vector<16x32xf32>
    %cst_27 = arith.constant 2.500000e-01 : f32
    %47 = vector.broadcast %cst_27 : f32 to vector<16x32xf32>
    %48 = arith.mulf %46, %47 : vector<16x32xf32>
    %49 = arith.truncf %48 : vector<16x32xf32> to vector<16x32xbf16>
    %c2 = arith.constant 2 : index
    %c0_28 = arith.constant 0 : index
    %c0_29 = arith.constant 0 : index
    %50 = vector.load %arg24[%c2, %c0_28, %c0_29] : memref<4x16x32xbf16, #tpu.memory_space<vmem>>, vector<1x16x32xbf16>
    %51 = vector.shape_cast %50 : vector<1x16x32xbf16> to vector<16x32xbf16>
    %52 = vector.shape_cast %49 : vector<16x32xbf16> to vector<1x16x32xbf16>
    tpu.vector_store %arg24[%c2, %c0_28, %c0_29], %52 {strides = array<i32>} : memref<4x16x32xbf16, #tpu.memory_space<vmem>>, vector<1x16x32xbf16>,
    %53 = vector.extract_strided_slice %11 {offsets = [0, 192], sizes = [16, 32], strides = [1, 1]} : vector<16x384xf32> to vector<16x32xf32>
    %54 = arith.truncf %53 : vector<16x32xf32> to vector<16x32xbf16>
    %c2_30 = arith.constant 2 : index
    %c0_31 = arith.constant 0 : index
    %c0_32 = arith.constant 0 : index
    %55 = vector.load %arg25[%c2_30, %c0_31, %c0_32] : memref<4x16x32xbf16, #tpu.memory_space<vmem>>, vector<1x16x32xbf16>
    %56 = vector.shape_cast %55 : vector<1x16x32xbf16> to vector<16x32xbf16>
    %57 = vector.shape_cast %54 : vector<16x32xbf16> to vector<1x16x32xbf16>
    tpu.vector_store %arg25[%c2_30, %c0_31, %c0_32], %57 {strides = array<i32>} : memref<4x16x32xbf16, #tpu.memory_space<vmem>>, vector<1x16x32xbf16>,
    %58 = vector.extract_strided_slice %11 {offsets = [0, 320], sizes = [16, 32], strides = [1, 1]} : vector<16x384xf32> to vector<16x32xf32>
    %59 = arith.truncf %58 : vector<16x32xf32> to vector<16x32xbf16>
    %c2_33 = arith.constant 2 : index
    %c0_34 = arith.constant 0 : index
    %c0_35 = arith.constant 0 : index
    %60 = vector.load %arg26[%c2_33, %c0_34, %c0_35] : memref<4x16x32xbf16, #tpu.memory_space<vmem>>, vector<1x16x32xbf16>
    %61 = vector.shape_cast %60 : vector<1x16x32xbf16> to vector<16x32xbf16>
    %62 = vector.shape_cast %59 : vector<16x32xbf16> to vector<1x16x32xbf16>
    tpu.vector_store %arg26[%c2_33, %c0_34, %c0_35], %62 {strides = array<i32>} : memref<4x16x32xbf16, #tpu.memory_space<vmem>>, vector<1x16x32xbf16>,
    %63 = vector.extract_strided_slice %11 {offsets = [0, 96], sizes = [16, 32], strides = [1, 1]} : vector<16x384xf32> to vector<16x32xf32>
    %cst_36 = arith.constant 2.500000e-01 : f32
    %64 = vector.broadcast %cst_36 : f32 to vector<16x32xf32>
    %65 = arith.mulf %63, %64 : vector<16x32xf32>
    %66 = arith.truncf %65 : vector<16x32xf32> to vector<16x32xbf16>
    %c3 = arith.constant 3 : index
    %c0_37 = arith.constant 0 : index
    %c0_38 = arith.constant 0 : index
    %67 = vector.load %arg24[%c3, %c0_37, %c0_38] : memref<4x16x32xbf16, #tpu.memory_space<vmem>>, vector<1x16x32xbf16>
    %68 = vector.shape_cast %67 : vector<1x16x32xbf16> to vector<16x32xbf16>
    %69 = vector.shape_cast %66 : vector<16x32xbf16> to vector<1x16x32xbf16>
    tpu.vector_store %arg24[%c3, %c0_37, %c0_38], %69 {strides = array<i32>} : memref<4x16x32xbf16, #tpu.memory_space<vmem>>, vector<1x16x32xbf16>,
    %70 = vector.extract_strided_slice %11 {offsets = [0, 224], sizes = [16, 32], strides = [1, 1]} : vector<16x384xf32> to vector<16x32xf32>
    %71 = arith.truncf %70 : vector<16x32xf32> to vector<16x32xbf16>
    %c3_39 = arith.constant 3 : index
    %c0_40 = arith.constant 0 : index
    %c0_41 = arith.constant 0 : index
    %72 = vector.load %arg25[%c3_39, %c0_40, %c0_41] : memref<4x16x32xbf16, #tpu.memory_space<vmem>>, vector<1x16x32xbf16>
    %73 = vector.shape_cast %72 : vector<1x16x32xbf16> to vector<16x32xbf16>
    %74 = vector.shape_cast %71 : vector<16x32xbf16> to vector<1x16x32xbf16>
    tpu.vector_store %arg25[%c3_39, %c0_40, %c0_41], %74 {strides = array<i32>} : memref<4x16x32xbf16, #tpu.memory_space<vmem>>, vector<1x16x32xbf16>,
    %75 = vector.extract_strided_slice %11 {offsets = [0, 352], sizes = [16, 32], strides = [1, 1]} : vector<16x384xf32> to vector<16x32xf32>
    %76 = arith.truncf %75 : vector<16x32xf32> to vector<16x32xbf16>
    %c3_42 = arith.constant 3 : index
    %c0_43 = arith.constant 0 : index
    %c0_44 = arith.constant 0 : index
    %77 = vector.load %arg26[%c3_42, %c0_43, %c0_44] : memref<4x16x32xbf16, #tpu.memory_space<vmem>>, vector<1x16x32xbf16>
    %78 = vector.shape_cast %77 : vector<1x16x32xbf16> to vector<16x32xbf16>
    %79 = vector.shape_cast %76 : vector<16x32xbf16> to vector<1x16x32xbf16>
    tpu.vector_store %arg26[%c3_42, %c0_43, %c0_44], %79 {strides = array<i32>} : memref<4x16x32xbf16, #tpu.memory_space<vmem>>, vector<1x16x32xbf16>,
    %c0_45 = arith.constant 0 : index
    %c0_46 = arith.constant 0 : index
    %c0_47 = arith.constant 0 : index
    %80 = vector.load %arg24[%c0_45, %c0_46, %c0_47] : memref<4x16x32xbf16, #tpu.memory_space<vmem>>, vector<4x16x32xbf16>
    %c0_48 = arith.constant 0 : index
    %c0_49 = arith.constant 0 : index
    %c0_50 = arith.constant 0 : index
    %81 = vector.load %arg25[%c0_48, %c0_49, %c0_50] : memref<4x16x32xbf16, #tpu.memory_space<vmem>>, vector<4x16x32xbf16>
    "tpu.trace_start"() <{level = 10 : i32, message = "hqd,hkd->hqk"}> : () -> ()
    %cst_51 = arith.constant dense<0.000000e+00> : vector<4x16x16xf32>
    %82 = tpu.matmul %80, %81, %cst_51 {dimension_numbers = #tpu.dot_dimension_numbers<[2], [2], [1], [1], [0, 0, 0, 1, 1, 1], [0], [0]>} : vector<4x16x32xbf16>, vector<4x16x32xbf16>, vector<4x16x16xf32> -> vector<4x16x16xf32>
    "tpu.trace_stop"() : () -> ()
    %cst_52 = arith.constant dense<0xFF800000> : vector<4x16xf32>
    %83 = vector.multi_reduction <maximumf>, %82, %cst_52 [2] : vector<4x16x16xf32> to vector<4x16xf32>
    %84 = vector.shape_cast %83 : vector<4x16xf32> to vector<4x16x1xf32>
    %85 = vector.broadcast %84 : vector<4x16x1xf32> to vector<4x16x16xf32>
    %86 = arith.subf %82, %85 : vector<4x16x16xf32>
    %87 = math.exp %86 : vector<4x16x16xf32>
    %cst_53 = arith.constant dense<0.000000e+00> : vector<4x16xf32>
    %88 = vector.multi_reduction <add>, %87, %cst_53 [2] : vector<4x16x16xf32> to vector<4x16xf32>
    %89 = vector.shape_cast %88 : vector<4x16xf32> to vector<4x16x1xf32>
    %90 = tpu.reciprocal %89 {approx = true} : vector<4x16x1xf32> -> vector<4x16x1xf32>
    %91 = vector.broadcast %90 : vector<4x16x1xf32> to vector<4x16x16xf32>
    %92 = arith.mulf %87, %91 : vector<4x16x16xf32>
    %93 = arith.truncf %92 : vector<4x16x16xf32> to vector<4x16x16xbf16>
    %c0_54 = arith.constant 0 : index
    %c0_55 = arith.constant 0 : index
    %c0_56 = arith.constant 0 : index
    %94 = vector.load %arg26[%c0_54, %c0_55, %c0_56] : memref<4x16x32xbf16, #tpu.memory_space<vmem>>, vector<4x16x32xbf16>
    "tpu.trace_start"() <{level = 10 : i32, message = "hqk,hkd->hqd"}> : () -> ()
    %cst_57 = arith.constant dense<0.000000e+00> : vector<4x16x32xf32>
    %95 = tpu.matmul %93, %94, %cst_57 {dimension_numbers = #tpu.dot_dimension_numbers<[2], [1], [1], [2], [0, 0, 0, 1, 1, 2], [0], [0]>} : vector<4x16x16xbf16>, vector<4x16x32xbf16>, vector<4x16x32xf32> -> vector<4x16x32xf32>
    "tpu.trace_stop"() : () -> ()
    %96 = vector.extract_strided_slice %95 {offsets = [0, 0, 0], sizes = [1, 16, 32], strides = [1, 1, 1]} : vector<4x16x32xf32> to vector<1x16x32xf32>
    %97 = vector.shape_cast %96 : vector<1x16x32xf32> to vector<16x32xf32>
    %98 = arith.truncf %97 : vector<16x32xf32> to vector<16x32xbf16>
    %c0_58 = arith.constant 0 : index
    %c0_59 = arith.constant 0 : index
    %99 = vector.load %arg27[%c0_58, %c0_59] : memref<16x128xbf16, #tpu.memory_space<vmem>>, vector<16x32xbf16>
    tpu.vector_store %arg27[%c0_58, %c0_59], %98 {strides = array<i32>} : memref<16x128xbf16, #tpu.memory_space<vmem>>, vector<16x32xbf16>,
    %100 = vector.extract_strided_slice %95 {offsets = [1, 0, 0], sizes = [1, 16, 32], strides = [1, 1, 1]} : vector<4x16x32xf32> to vector<1x16x32xf32>
    %101 = vector.shape_cast %100 : vector<1x16x32xf32> to vector<16x32xf32>
    %102 = arith.truncf %101 : vector<16x32xf32> to vector<16x32xbf16>
    %c0_60 = arith.constant 0 : index
    %c32 = arith.constant 32 : index
    %103 = vector.load %arg27[%c0_60, %c32] : memref<16x128xbf16, #tpu.memory_space<vmem>>, vector<16x32xbf16>
    tpu.vector_store %arg27[%c0_60, %c32], %102 {strides = array<i32>} : memref<16x128xbf16, #tpu.memory_space<vmem>>, vector<16x32xbf16>,
    %104 = vector.extract_strided_slice %95 {offsets = [2, 0, 0], sizes = [1, 16, 32], strides = [1, 1, 1]} : vector<4x16x32xf32> to vector<1x16x32xf32>
    %105 = vector.shape_cast %104 : vector<1x16x32xf32> to vector<16x32xf32>
    %106 = arith.truncf %105 : vector<16x32xf32> to vector<16x32xbf16>
    %c0_61 = arith.constant 0 : index
    %c64 = arith.constant 64 : index
    %107 = vector.load %arg27[%c0_61, %c64] : memref<16x128xbf16, #tpu.memory_space<vmem>>, vector<16x32xbf16>
    tpu.vector_store %arg27[%c0_61, %c64], %106 {strides = array<i32>} : memref<16x128xbf16, #tpu.memory_space<vmem>>, vector<16x32xbf16>,
    %108 = vector.extract_strided_slice %95 {offsets = [3, 0, 0], sizes = [1, 16, 32], strides = [1, 1, 1]} : vector<4x16x32xf32> to vector<1x16x32xf32>
    %109 = vector.shape_cast %108 : vector<1x16x32xf32> to vector<16x32xf32>
    %110 = arith.truncf %109 : vector<16x32xf32> to vector<16x32xbf16>
    %c0_62 = arith.constant 0 : index
    %c96 = arith.constant 96 : index
    %111 = vector.load %arg27[%c0_62, %c96] : memref<16x128xbf16, #tpu.memory_space<vmem>>, vector<16x32xbf16>
    tpu.vector_store %arg27[%c0_62, %c96], %110 {strides = array<i32>} : memref<16x128xbf16, #tpu.memory_space<vmem>>, vector<16x32xbf16>,
    %c0_63 = arith.constant 0 : index
    %c0_64 = arith.constant 0 : index
    %112 = vector.load %arg27[%c0_63, %c0_64] : memref<16x128xbf16, #tpu.memory_space<vmem>>, vector<16x128xbf16>
    %c0_65 = arith.constant 0 : index
    %c0_66 = arith.constant 0 : index
    %c0_67 = arith.constant 0 : index
    %113 = vector.load %arg8[%c0_65, %c0_66, %c0_67] : memref<1x128x128xbf16, #tpu.memory_space<vmem>>, vector<1x128x128xbf16>
    %114 = vector.shape_cast %113 : vector<1x128x128xbf16> to vector<128x128xbf16>
    %cst_68 = arith.constant dense<0.000000e+00> : vector<16x128xf32>
    %115 = tpu.matmul %112, %114, %cst_68 {dimension_numbers = #tpu.dot_dimension_numbers<[1], [0], [0], [1], [0, 0, 1, 1], [], []>} : vector<16x128xbf16>, vector<128x128xbf16>, vector<16x128xf32> -> vector<16x128xf32>
    %c0_69 = arith.constant 0 : index
    %c0_70 = arith.constant 0 : index
    %c0_71 = arith.constant 0 : index
    %116 = vector.load %arg9[%c0_69, %c0_70, %c0_71] : memref<1x1x128xf32, #tpu.memory_space<vmem>>, vector<1x1x128xf32>
    %117 = vector.shape_cast %116 : vector<1x1x128xf32> to vector<1x128xf32>
    %118 = vector.broadcast %117 : vector<1x128xf32> to vector<16x128xf32>
    %119 = arith.addf %115, %118 : vector<16x128xf32>
    %120 = arith.addf %3, %119 : vector<16x128xf32>
    %c0_72 = arith.constant 0 : index
    %c0_73 = arith.constant 0 : index
    %c0_74 = arith.constant 0 : index
    %121 = vector.load %arg10[%c0_72, %c0_73, %c0_74] : memref<1x1x128xf32, #tpu.memory_space<vmem>>, vector<1x1x128xf32>
    %122 = vector.shape_cast %121 : vector<1x1x128xf32> to vector<1x128xf32>
    %c0_75 = arith.constant 0 : index
    %c0_76 = arith.constant 0 : index
    %c0_77 = arith.constant 0 : index
    %123 = vector.load %arg11[%c0_75, %c0_76, %c0_77] : memref<1x1x128xf32, #tpu.memory_space<vmem>>, vector<1x1x128xf32>
    %124 = vector.shape_cast %123 : vector<1x1x128xf32> to vector<1x128xf32>
    %cst_78 = arith.constant dense<0.000000e+00> : vector<16xf32>
    %125 = vector.multi_reduction <add>, %120, %cst_78 [1] : vector<16x128xf32> to vector<16xf32>
    %126 = vector.shape_cast %125 : vector<16xf32> to vector<16x1xf32>
    %cst_79 = arith.constant 1.562500e-02 : f32
    %127 = vector.broadcast %cst_79 : f32 to vector<16x1xf32>
    %128 = arith.mulf %126, %127 : vector<16x1xf32>
    %129 = arith.mulf %120, %120 : vector<16x128xf32>
    %cst_80 = arith.constant dense<0.000000e+00> : vector<16xf32>
    %130 = vector.multi_reduction <add>, %129, %cst_80 [1] : vector<16x128xf32> to vector<16xf32>
    %131 = vector.shape_cast %130 : vector<16xf32> to vector<16x1xf32>
    %cst_81 = arith.constant 1.562500e-02 : f32
    %132 = vector.broadcast %cst_81 : f32 to vector<16x1xf32>
    %133 = arith.mulf %131, %132 : vector<16x1xf32>
    %134 = arith.mulf %128, %128 : vector<16x1xf32>
    %135 = arith.subf %133, %134 : vector<16x1xf32>
    %136 = vector.broadcast %128 : vector<16x1xf32> to vector<16x128xf32>
    %137 = arith.subf %120, %136 : vector<16x128xf32>
    %cst_82 = arith.constant 9.99999974E-6 : f32
    %138 = vector.broadcast %cst_82 : f32 to vector<16x1xf32>
    %139 = arith.addf %135, %138 : vector<16x1xf32>
    %140 = math.rsqrt %139 : vector<16x1xf32>
    %141 = vector.broadcast %140 : vector<16x1xf32> to vector<16x128xf32>
    %142 = arith.mulf %137, %141 : vector<16x128xf32>
    %143 = vector.broadcast %122 : vector<1x128xf32> to vector<16x128xf32>
    %144 = arith.mulf %142, %143 : vector<16x128xf32>
    %145 = vector.broadcast %124 : vector<1x128xf32> to vector<16x128xf32>
    %146 = arith.addf %144, %145 : vector<16x128xf32>
    %147 = arith.truncf %146 : vector<16x128xf32> to vector<16x128xbf16>
    %c0_83 = arith.constant 0 : index
    %c0_84 = arith.constant 0 : index
    %c0_85 = arith.constant 0 : index
    %148 = vector.load %arg12[%c0_83, %c0_84, %c0_85] : memref<1x128x128xbf16, #tpu.memory_space<vmem>>, vector<1x128x128xbf16>
    %149 = vector.shape_cast %148 : vector<1x128x128xbf16> to vector<128x128xbf16>
    %cst_86 = arith.constant dense<0.000000e+00> : vector<16x128xf32>
    %150 = tpu.matmul %147, %149, %cst_86 {dimension_numbers = #tpu.dot_dimension_numbers<[1], [0], [0], [1], [0, 0, 1, 1], [], []>} : vector<16x128xbf16>, vector<128x128xbf16>, vector<16x128xf32> -> vector<16x128xf32>
    %c0_87 = arith.constant 0 : index
    %c0_88 = arith.constant 0 : index
    %c0_89 = arith.constant 0 : index
    %151 = vector.load %arg13[%c0_87, %c0_88, %c0_89] : memref<1x1x128xf32, #tpu.memory_space<vmem>>, vector<1x1x128xf32>
    %152 = vector.shape_cast %151 : vector<1x1x128xf32> to vector<1x128xf32>
    %153 = vector.broadcast %152 : vector<1x128xf32> to vector<16x128xf32>
    %154 = arith.addf %150, %153 : vector<16x128xf32>
    %cst_90 = arith.constant 5.000000e-01 : f32
    %155 = vector.broadcast %cst_90 : f32 to vector<16x128xf32>
    %156 = arith.mulf %155, %154 : vector<16x128xf32>
    %cst_91 = arith.constant 0.707106769 : f32
    %157 = vector.broadcast %cst_91 : f32 to vector<16x128xf32>
    %158 = arith.mulf %154, %157 : vector<16x128xf32>
    %cst_92 = arith.constant 0.000000e+00 : f32
    %159 = vector.broadcast %cst_92 : f32 to vector<16x128xf32>
    %160 = arith.cmpf oge, %158, %159 : vector<16x128xf32>
    %cst_93 = arith.constant 1.000000e+00 : f32
    %cst_94 = arith.constant -1.000000e+00 : f32
    %161 = vector.broadcast %cst_93 : f32 to vector<16x128xf32>
    %162 = vector.broadcast %cst_94 : f32 to vector<16x128xf32>
    %163 = arith.select %160, %161, %162 : vector<16x128xi1>, vector<16x128xf32>
    %164 = math.absf %158 : vector<16x128xf32>
    %cst_95 = arith.constant 0.327591091 : f32
    %165 = vector.broadcast %cst_95 : f32 to vector<16x128xf32>
    %166 = arith.mulf %165, %164 : vector<16x128xf32>
    %cst_96 = arith.constant 1.000000e+00 : f32
    %167 = vector.broadcast %cst_96 : f32 to vector<16x128xf32>
    %168 = arith.addf %167, %166 : vector<16x128xf32>
    %169 = tpu.reciprocal %168 {approx = true} : vector<16x128xf32> -> vector<16x128xf32>
    %cst_97 = arith.constant 1.06140542 : f32
    %170 = vector.broadcast %cst_97 : f32 to vector<16x128xf32>
    %171 = arith.mulf %170, %169 : vector<16x128xf32>
    %cst_98 = arith.constant -1.45315206 : f32
    %172 = vector.broadcast %cst_98 : f32 to vector<16x128xf32>
    %173 = arith.addf %171, %172 : vector<16x128xf32>
    %174 = arith.mulf %173, %169 : vector<16x128xf32>
    %cst_99 = arith.constant 1.42141378 : f32
    %175 = vector.broadcast %cst_99 : f32 to vector<16x128xf32>
    %176 = arith.addf %174, %175 : vector<16x128xf32>
    %177 = arith.mulf %176, %169 : vector<16x128xf32>
    %cst_100 = arith.constant -0.284496725 : f32
    %178 = vector.broadcast %cst_100 : f32 to vector<16x128xf32>
    %179 = arith.addf %177, %178 : vector<16x128xf32>
    %180 = arith.mulf %179, %169 : vector<16x128xf32>
    %cst_101 = arith.constant 0.254829586 : f32
    %181 = vector.broadcast %cst_101 : f32 to vector<16x128xf32>
    %182 = arith.addf %180, %181 : vector<16x128xf32>
    %183 = arith.mulf %182, %169 : vector<16x128xf32>
    %cst_102 = arith.constant 0.000000e+00 : f32
    %184 = vector.broadcast %cst_102 : f32 to vector<16x128xf32>
    %185 = arith.subf %184, %164 : vector<16x128xf32>
    %186 = arith.mulf %185, %164 : vector<16x128xf32>
    %187 = math.exp %186 : vector<16x128xf32>
    %188 = arith.mulf %183, %187 : vector<16x128xf32>
    %cst_103 = arith.constant 1.000000e+00 : f32
    %189 = vector.broadcast %cst_103 : f32 to vector<16x128xf32>
    %190 = arith.subf %189, %188 : vector<16x128xf32>
    %191 = arith.mulf %163, %190 : vector<16x128xf32>
    %cst_104 = arith.constant 1.000000e+00 : f32
    %192 = vector.broadcast %cst_104 : f32 to vector<16x128xf32>
    %193 = arith.addf %192, %191 : vector<16x128xf32>
    %194 = arith.mulf %156, %193 : vector<16x128xf32>
    %195 = arith.truncf %194 : vector<16x128xf32> to vector<16x128xbf16>
    %c0_105 = arith.constant 0 : index
    %c0_106 = arith.constant 0 : index
    %c0_107 = arith.constant 0 : index
    %196 = vector.load %arg14[%c0_105, %c0_106, %c0_107] : memref<1x128x128xbf16, #tpu.memory_space<vmem>>, vector<1x128x128xbf16>
    %197 = vector.shape_cast %196 : vector<1x128x128xbf16> to vector<128x128xbf16>
    %cst_108 = arith.constant dense<0.000000e+00> : vector<16x128xf32>
    %198 = tpu.matmul %195, %197, %cst_108 {dimension_numbers = #tpu.dot_dimension_numbers<[1], [0], [0], [1], [0, 0, 1, 1], [], []>} : vector<16x128xbf16>, vector<128x128xbf16>, vector<16x128xf32> -> vector<16x128xf32>
    %c0_109 = arith.constant 0 : index
    %c0_110 = arith.constant 0 : index
    %c0_111 = arith.constant 0 : index
    %199 = vector.load %arg15[%c0_109, %c0_110, %c0_111] : memref<1x1x128xf32, #tpu.memory_space<vmem>>, vector<1x1x128xf32>
    %200 = vector.shape_cast %199 : vector<1x1x128xf32> to vector<1x128xf32>
    %201 = vector.broadcast %200 : vector<1x128xf32> to vector<16x128xf32>
    %202 = arith.addf %198, %201 : vector<16x128xf32>
    %203 = arith.addf %146, %202 : vector<16x128xf32>
    %c0_112 = arith.constant 0 : index
    %c0_113 = arith.constant 0 : index
    %c0_114 = arith.constant 0 : index
    %204 = vector.load %arg16[%c0_112, %c0_113, %c0_114] : memref<1x1x128xf32, #tpu.memory_space<vmem>>, vector<1x1x128xf32>
    %205 = vector.shape_cast %204 : vector<1x1x128xf32> to vector<1x128xf32>
    %c0_115 = arith.constant 0 : index
    %c0_116 = arith.constant 0 : index
    %c0_117 = arith.constant 0 : index
    %206 = vector.load %arg17[%c0_115, %c0_116, %c0_117] : memref<1x1x128xf32, #tpu.memory_space<vmem>>, vector<1x1x128xf32>
    %207 = vector.shape_cast %206 : vector<1x1x128xf32> to vector<1x128xf32>
    %cst_118 = arith.constant dense<0.000000e+00> : vector<16xf32>
    %208 = vector.multi_reduction <add>, %203, %cst_118 [1] : vector<16x128xf32> to vector<16xf32>
    %209 = vector.shape_cast %208 : vector<16xf32> to vector<16x1xf32>
    %cst_119 = arith.constant 1.562500e-02 : f32
    %210 = vector.broadcast %cst_119 : f32 to vector<16x1xf32>
    %211 = arith.mulf %209, %210 : vector<16x1xf32>
    %212 = arith.mulf %203, %203 : vector<16x128xf32>
    %cst_120 = arith.constant dense<0.000000e+00> : vector<16xf32>
    %213 = vector.multi_reduction <add>, %212, %cst_120 [1] : vector<16x128xf32> to vector<16xf32>
    %214 = vector.shape_cast %213 : vector<16xf32> to vector<16x1xf32>
    %cst_121 = arith.constant 1.562500e-02 : f32
    %215 = vector.broadcast %cst_121 : f32 to vector<16x1xf32>
    %216 = arith.mulf %214, %215 : vector<16x1xf32>
    %217 = arith.mulf %211, %211 : vector<16x1xf32>
    %218 = arith.subf %216, %217 : vector<16x1xf32>
    %219 = vector.broadcast %211 : vector<16x1xf32> to vector<16x128xf32>
    %220 = arith.subf %203, %219 : vector<16x128xf32>
    %cst_122 = arith.constant 9.99999974E-6 : f32
    %221 = vector.broadcast %cst_122 : f32 to vector<16x1xf32>
    %222 = arith.addf %218, %221 : vector<16x1xf32>
    %223 = math.rsqrt %222 : vector<16x1xf32>
    %224 = vector.broadcast %223 : vector<16x1xf32> to vector<16x128xf32>
    %225 = arith.mulf %220, %224 : vector<16x128xf32>
    %226 = vector.broadcast %205 : vector<1x128xf32> to vector<16x128xf32>
    %227 = arith.mulf %225, %226 : vector<16x128xf32>
    %228 = vector.broadcast %207 : vector<1x128xf32> to vector<16x128xf32>
    %229 = arith.addf %227, %228 : vector<16x128xf32>
    %c0_123 = arith.constant 0 : index
    %c0_124 = arith.constant 0 : index
    %230 = vector.load %arg23[%c0_123, %c0_124] : memref<16x128xf32, #tpu.memory_space<vmem>>, vector<16x128xf32>
    tpu.vector_store %arg23[%c0_123, %c0_124], %229 {strides = array<i32>} : memref<16x128xf32, #tpu.memory_space<vmem>>, vector<16x128xf32>,
    %c2_i32 = arith.constant 2 : i32
    %231 = arith.cmpi eq, %arg1, %c2_i32 : i32
    %232 = arith.extui %231 : i1 to i32
    %c0_i32_125 = arith.constant 0 : i32
    %233 = arith.cmpi ne, %232, %c0_i32_125 : i32
    scf.if %233 {
      %c0_126 = arith.constant 0 : index
      %c0_127 = arith.constant 0 : index
      %234 = vector.load %arg18[%c0_126, %c0_127] : memref<1x128xf32, #tpu.memory_space<vmem>>, vector<1x128xf32>
      %c0_128 = arith.constant 0 : index
      %c0_129 = arith.constant 0 : index
      %235 = vector.load %arg19[%c0_128, %c0_129] : memref<1x128xf32, #tpu.memory_space<vmem>>, vector<1x128xf32>
      %cst_130 = arith.constant dense<0.000000e+00> : vector<16xf32>
      %236 = vector.multi_reduction <add>, %229, %cst_130 [1] : vector<16x128xf32> to vector<16xf32>
      %237 = vector.shape_cast %236 : vector<16xf32> to vector<16x1xf32>
      %cst_131 = arith.constant 1.562500e-02 : f32
      %238 = vector.broadcast %cst_131 : f32 to vector<16x1xf32>
      %239 = arith.mulf %237, %238 : vector<16x1xf32>
      %240 = arith.mulf %229, %229 : vector<16x128xf32>
      %cst_132 = arith.constant dense<0.000000e+00> : vector<16xf32>
      %241 = vector.multi_reduction <add>, %240, %cst_132 [1] : vector<16x128xf32> to vector<16xf32>
      %242 = vector.shape_cast %241 : vector<16xf32> to vector<16x1xf32>
      %cst_133 = arith.constant 1.562500e-02 : f32
      %243 = vector.broadcast %cst_133 : f32 to vector<16x1xf32>
      %244 = arith.mulf %242, %243 : vector<16x1xf32>
      %245 = arith.mulf %239, %239 : vector<16x1xf32>
      %246 = arith.subf %244, %245 : vector<16x1xf32>
      %247 = vector.broadcast %239 : vector<16x1xf32> to vector<16x128xf32>
      %248 = arith.subf %229, %247 : vector<16x128xf32>
      %cst_134 = arith.constant 9.99999974E-6 : f32
      %249 = vector.broadcast %cst_134 : f32 to vector<16x1xf32>
      %250 = arith.addf %246, %249 : vector<16x1xf32>
      %251 = math.rsqrt %250 : vector<16x1xf32>
      %252 = vector.broadcast %251 : vector<16x1xf32> to vector<16x128xf32>
      %253 = arith.mulf %248, %252 : vector<16x128xf32>
      %254 = vector.broadcast %234 : vector<1x128xf32> to vector<16x128xf32>
      %255 = arith.mulf %253, %254 : vector<16x128xf32>
      %256 = vector.broadcast %235 : vector<1x128xf32> to vector<16x128xf32>
      %257 = arith.addf %255, %256 : vector<16x128xf32>
      %258 = arith.truncf %257 : vector<16x128xf32> to vector<16x128xbf16>
      %c0_135 = arith.constant 0 : index
      %c0_136 = arith.constant 0 : index
      %259 = vector.load %arg20[%c0_135, %c0_136] : memref<128x128xbf16, #tpu.memory_space<vmem>>, vector<128x128xbf16>
      %cst_137 = arith.constant dense<0.000000e+00> : vector<16x128xf32>
      %260 = tpu.matmul %258, %259, %cst_137 {dimension_numbers = #tpu.dot_dimension_numbers<[1], [0], [0], [1], [0, 0, 1, 1], [], []>} : vector<16x128xbf16>, vector<128x128xbf16>, vector<16x128xf32> -> vector<16x128xf32>
      %c0_138 = arith.constant 0 : index
      %c0_139 = arith.constant 0 : index
      %261 = vector.load %arg21[%c0_138, %c0_139] : memref<1x128xf32, #tpu.memory_space<vmem>>, vector<1x128xf32>
      %262 = vector.broadcast %261 : vector<1x128xf32> to vector<16x128xf32>
      %263 = arith.addf %260, %262 : vector<16x128xf32>
      %c0_140 = arith.constant 0 : index
      %c0_141 = arith.constant 0 : index
      %c0_142 = arith.constant 0 : index
      %264 = vector.load %arg22[%c0_140, %c0_141, %c0_142] : memref<1x16x128xf32, #tpu.memory_space<vmem>>, vector<1x16x128xf32>
      %265 = vector.shape_cast %264 : vector<1x16x128xf32> to vector<16x128xf32>
      %266 = vector.shape_cast %263 : vector<16x128xf32> to vector<1x16x128xf32>
      tpu.vector_store %arg22[%c0_140, %c0_141, %c0_142], %266 {strides = array<i32>} : memref<1x16x128xf32, #tpu.memory_space<vmem>>, vector<1x16x128xf32>,
    } else {
    }
    return
  }
  func.func @transform_0(%arg0: i32, %arg1: i32) -> (i32, i32, i32) {
    %c0_i32 = arith.constant 0 : i32
    %c0_i32_0 = arith.constant 0 : i32
    %c0_i32_1 = arith.constant 0 : i32
    return %arg0, %c0_i32, %c0_i32_0 : i32, i32, i32
  }
  func.func @transform_1(%arg0: i32, %arg1: i32) -> (i32, i32) {
    %c0_i32 = arith.constant 0 : i32
    %c0_i32_0 = arith.constant 0 : i32
    %c0_i32_1 = arith.constant 0 : i32
    return %c0_i32, %c0_i32_0 : i32, i32
  }
  func.func @transform_2(%arg0: i32, %arg1: i32) -> (i32, i32) {
    %c0_i32 = arith.constant 0 : i32
    %c0_i32_0 = arith.constant 0 : i32
    %c0_i32_1 = arith.constant 0 : i32
    return %c0_i32, %c0_i32_0 : i32, i32
  }
  func.func @transform_3(%arg0: i32, %arg1: i32) -> (i32, i32) {
    %c0_i32 = arith.constant 0 : i32
    %c0_i32_0 = arith.constant 0 : i32
    %c0_i32_1 = arith.constant 0 : i32
    return %c0_i32, %c0_i32_0 : i32, i32
  }
  func.func @transform_4(%arg0: i32, %arg1: i32) -> (i32, i32, i32) {
    %c0_i32 = arith.constant 0 : i32
    %c0_i32_0 = arith.constant 0 : i32
    %c0_i32_1 = arith.constant 0 : i32
    return %arg1, %c0_i32, %c0_i32_0 : i32, i32, i32
  }
  func.func @transform_5(%arg0: i32, %arg1: i32) -> (i32, i32, i32) {
    %c0_i32 = arith.constant 0 : i32
    %c0_i32_0 = arith.constant 0 : i32
    %c0_i32_1 = arith.constant 0 : i32
    return %arg1, %c0_i32, %c0_i32_0 : i32, i32, i32
  }
  func.func @transform_6(%arg0: i32, %arg1: i32) -> (i32, i32, i32) {
    %c0_i32 = arith.constant 0 : i32
    %c0_i32_0 = arith.constant 0 : i32
    %c0_i32_1 = arith.constant 0 : i32
    return %arg1, %c0_i32, %c0_i32_0 : i32, i32, i32
  }
  func.func @transform_7(%arg0: i32, %arg1: i32) -> (i32, i32, i32) {
    %c0_i32 = arith.constant 0 : i32
    %c0_i32_0 = arith.constant 0 : i32
    %c0_i32_1 = arith.constant 0 : i32
    return %arg1, %c0_i32, %c0_i32_0 : i32, i32, i32
  }
  func.func @transform_8(%arg0: i32, %arg1: i32) -> (i32, i32, i32) {
    %c0_i32 = arith.constant 0 : i32
    %c0_i32_0 = arith.constant 0 : i32
    %c0_i32_1 = arith.constant 0 : i32
    return %arg1, %c0_i32, %c0_i32_0 : i32, i32, i32
  }
  func.func @transform_9(%arg0: i32, %arg1: i32) -> (i32, i32, i32) {
    %c0_i32 = arith.constant 0 : i32
    %c0_i32_0 = arith.constant 0 : i32
    %c0_i32_1 = arith.constant 0 : i32
    return %arg1, %c0_i32, %c0_i32_0 : i32, i32, i32
  }
  func.func @transform_10(%arg0: i32, %arg1: i32) -> (i32, i32, i32) {
    %c0_i32 = arith.constant 0 : i32
    %c0_i32_0 = arith.constant 0 : i32
    %c0_i32_1 = arith.constant 0 : i32
    return %arg1, %c0_i32, %c0_i32_0 : i32, i32, i32
  }
  func.func @transform_11(%arg0: i32, %arg1: i32) -> (i32, i32, i32) {
    %c0_i32 = arith.constant 0 : i32
    %c0_i32_0 = arith.constant 0 : i32
    %c0_i32_1 = arith.constant 0 : i32
    return %arg1, %c0_i32, %c0_i32_0 : i32, i32, i32
  }
  func.func @transform_12(%arg0: i32, %arg1: i32) -> (i32, i32, i32) {
    %c0_i32 = arith.constant 0 : i32
    %c0_i32_0 = arith.constant 0 : i32
    %c0_i32_1 = arith.constant 0 : i32
    return %arg1, %c0_i32, %c0_i32_0 : i32, i32, i32
  }
  func.func @transform_13(%arg0: i32, %arg1: i32) -> (i32, i32, i32) {
    %c0_i32 = arith.constant 0 : i32
    %c0_i32_0 = arith.constant 0 : i32
    %c0_i32_1 = arith.constant 0 : i32
    return %arg1, %c0_i32, %c0_i32_0 : i32, i32, i32
  }
  func.func @transform_14(%arg0: i32, %arg1: i32) -> (i32, i32, i32) {
    %c0_i32 = arith.constant 0 : i32
    %c0_i32_0 = arith.constant 0 : i32
    %c0_i32_1 = arith.constant 0 : i32
    return %arg1, %c0_i32, %c0_i32_0 : i32, i32, i32
  }
  func.func @transform_15(%arg0: i32, %arg1: i32) -> (i32, i32, i32) {
    %c0_i32 = arith.constant 0 : i32
    %c0_i32_0 = arith.constant 0 : i32
    %c0_i32_1 = arith.constant 0 : i32
    return %arg1, %c0_i32, %c0_i32_0 : i32, i32, i32
  }
  func.func @transform_16(%arg0: i32, %arg1: i32) -> (i32, i32) {
    %c0_i32 = arith.constant 0 : i32
    %c0_i32_0 = arith.constant 0 : i32
    %c0_i32_1 = arith.constant 0 : i32
    return %c0_i32, %c0_i32_0 : i32, i32
  }
  func.func @transform_17(%arg0: i32, %arg1: i32) -> (i32, i32) {
    %c0_i32 = arith.constant 0 : i32
    %c0_i32_0 = arith.constant 0 : i32
    %c0_i32_1 = arith.constant 0 : i32
    return %c0_i32, %c0_i32_0 : i32, i32
  }
  func.func @transform_18(%arg0: i32, %arg1: i32) -> (i32, i32) {
    %c0_i32 = arith.constant 0 : i32
    %c0_i32_0 = arith.constant 0 : i32
    %c0_i32_1 = arith.constant 0 : i32
    return %c0_i32, %c0_i32_0 : i32, i32
  }
  func.func @transform_19(%arg0: i32, %arg1: i32) -> (i32, i32) {
    %c0_i32 = arith.constant 0 : i32
    %c0_i32_0 = arith.constant 0 : i32
    %c0_i32_1 = arith.constant 0 : i32
    return %c0_i32, %c0_i32_0 : i32, i32
  }
  func.func @transform_20(%arg0: i32, %arg1: i32) -> (i32, i32, i32) {
    %c0_i32 = arith.constant 0 : i32
    %c0_i32_0 = arith.constant 0 : i32
    %c0_i32_1 = arith.constant 0 : i32
    return %arg0, %c0_i32, %c0_i32_0 : i32, i32, i32
  }
}

</mosaic_0001>

<bundles_post_ra>
// kernel: tpu_custom_call.1
= control target key start
LH: loop header
LB: loop body
LE: loop exit
PB: predicated region body
PF: predicated region fallthrough
CT: control target
= control target key end

     0   :  { %s5602_s0 = inlined_call_operand.hbm [shape: bf16[2,16,128], index: 0, kind: input, shape index: {}]   ;;  %s5603_s1 = inlined_call_operand.hbm [shape: bf16[128,128], index: 1, kind: input, shape index: {}]   ;;  %s5604_s2 = inlined_call_operand.vmem [shape: f32[1,128], index: 2, kind: input, shape index: {}]   ;;  %s5605_s3 = inlined_call_operand.hbm [shape: f32[16,128], index: 3, kind: input, shape index: {}]   ;;  %s5606_s4 = inlined_call_operand.hbm [shape: bf16[3,128,384], index: 4, kind: input, shape index: {}]   ;;  %s5607_s5 = inlined_call_operand.hbm [shape: f32[3,1,384], index: 5, kind: input, shape index: {}]   ;;  %s5608_s6 = inlined_call_operand.hbm [shape: bf16[3,128,128], index: 6, kind: input, shape index: {}]   ;;  %s5609_s7 = inlined_call_operand.vmem [shape: f32[3,1,128], index: 7, kind: input, shape index: {}]   ;;  %s5610_s8 = inlined_call_operand.hbm [shape: f32[3,1,128], index: 8, kind: input, shape index: {}]   ;;  %s5611_s9 = inlined_call_operand.hbm [shape: f32[3,1,128], index: 9, kind: input, shape index: {}]   ;;  %s5612_s10 = inlined_call_operand.hbm [shape: bf16[3,128,128], index: 10, kind: input, shape index: {}]   ;;  %s5613_s11 = inlined_call_operand.hbm [shape: f32[3,1,128], index: 11, kind: input, shape index: {}]   ;;  %s5614_s12 = inlined_call_operand.hbm [shape: bf16[3,128,128], index: 12, kind: input, shape index: {}]   ;;  %s5615_s13 = inlined_call_operand.hbm [shape: f32[3,1,128], index: 13, kind: input, shape index: {}]   ;;  %s5616_s14 = inlined_call_operand.hbm [shape: f32[3,1,128], index: 14, kind: input, shape index: {}]   ;;  %s5617_s15 = inlined_call_operand.hbm [shape: f32[3,1,128], index: 15, kind: input, shape index: {}]   ;;  %s5618_s16 = inlined_call_operand.hbm [shape: f32[1,128], index: 16, kind: input, shape index: {}]   ;;  %s5619_s17 = inlined_call_operand.hbm [shape: f32[1,128], index: 17, kind: input, shape index: {}]   ;;  %s5620_s18 = inlined_call_operand.vmem [shape: bf16[128,128], index: 18, kind: input, shape index: {}]   ;;  %s5621_s19 = inlined_call_operand.vmem [shape: f32[1,128], index: 19, kind: input, shape index: {}]   ;;  %s5622_s20 = inlined_call_operand.hbm [shape: f32[2,16,128], index: 20, kind: output, shape index: {}]  }
   0x1   :  { %5678 = sst [smem:[#allocation59_spill]] %s5602_s0 }
   0x2   :  { %5679 = sst [smem:[#allocation60_spill]] %s5603_s1 }
   0x3   :  { %5680 = sst [smem:[#allocation61_spill]] %s5604_s2 }
   0x4   :  { %5681 = sst [smem:[#allocation62_spill]] %s5605_s3 }
   0x5   :  { %5682 = sst [smem:[#allocation63_spill]] %s5606_s4 }
   0x6   :  { %5683 = sst [smem:[#allocation64_spill]] %s5607_s5 }
   0x7   :  { %5684 = sst [smem:[#allocation65_spill]] %s5608_s6 }
   0x8   :  { %5685 = sst [smem:[#allocation66_spill]] %s5609_s7 }
   0x9   :  { %5686 = sst [smem:[#allocation67_spill]] %s5610_s8 }
   0xa   :  { %5687 = sst [smem:[#allocation68_spill]] %s5611_s9 }
   0xb   :  { %5688 = sst [smem:[#allocation69_spill]] %s5612_s10 }
   0xc   :  { %5689 = sst [smem:[#allocation70_spill]] %s5613_s11 }
   0xd   :  { %5690 = sst [smem:[#allocation71_spill]] %s5614_s12 }
   0xe   :  { %5691 = sst [smem:[#allocation72_spill]] %s5615_s13 }
   0xf   :  { %5692 = sst [smem:[#allocation73_spill]] %s5616_s14 }
  0x10   :  { %5693 = sst [smem:[#allocation74_spill]] %s5617_s15 }
  0x11   :  { %5694 = sst [smem:[#allocation75_spill]] %s5618_s16 }
  0x12   :  { %5695 = sst [smem:[#allocation76_spill]] %s5619_s17 }
  0x13   :  { %5696 = sst [smem:[#allocation77_spill]] %s5620_s18 }
  0x14   :  { %5697 = sst [smem:[#allocation78_spill]] %s5621_s19 }
  0x15   :  { %5698 = sst [smem:[#allocation79_spill]] %s5622_s20 }
  0x16   :  { %25 = vsyncpa [#allocation8], 0 }
  0x17   :  { %27 = vsyncpa [#allocation8 + $0x1], 0 }
  0x18   :  { %28 = vsyncpa [#allocation11], 0 }
  0x19   :  { %29 = vsyncpa [#allocation14], 0 }
  0x1a   :  { %31 = vsyncpa [#allocation14 + $0x1], 0 }
  0x1b   :  { %32 = vsyncpa [#allocation17], 0 }
  0x1c   :  { %34 = vsyncpa [#allocation17 + $0x1], 0 }
  0x1d   :  { %35 = vsyncpa [#allocation20], 0 }
  0x1e   :  { %37 = vsyncpa [#allocation20 + $0x1], 0 }
  0x1f   :  { %38 = vsyncpa [#allocation23], 0 }
  0x20   :  { %40 = vsyncpa [#allocation23 + $0x1], 0 }
  0x21   :  { %41 = vsyncpa [#allocation26], 0 }
  0x22   :  { %43 = vsyncpa [#allocation26 + $0x1], 0 }
  0x23   :  { %44 = vsyncpa [#allocation29], 0 }
  0x24   :  { %46 = vsyncpa [#allocation29 + $0x1], 0 }
  0x25   :  { %47 = vsyncpa [#allocation32], 0 }
  0x26   :  { %48 = vsyncpa [#allocation9], 0 }
  0x27   :  { %50 = vsyncpa [#allocation9 + $0x1], 0  ;;  %s4565_s1 = smov 0   ;;  %s4567_s22 = smov 0  }
  0x28   :  { %s4569_s23 = smov 0   ;;  %s4571_s24 = smov 0  }
  0x29   :  { %s4573_s2 = smov 0   ;;  %s4575_s25 = smov 0  }
  0x2a   :  { %s4577_s3 = smov 0   ;;  %s4579_s26 = smov 0  }
  0x2b   :  { %s4581_s27 = smov 0   ;;  %s4583_s28 = smov 0  }
  0x2c   :  { %s4585_s4 = smov 0  }
  0x2d LB: > { %5699 = sst [smem:[#allocation45_spill]] %s4386_s22  ;;  %s4619_s29 = sadd.s32 4294967295, %s4422_s4   ;;  %s4422_s4 = sphi %s4585_s4, %s56_s4   ;;  %s4418_s28 = sphi %s4583_s28, %s5805_s28   ;;  %s4414_s27 = sphi %s4581_s27, %s5810_s27   ;;  %s4410_s26 = sphi %s4579_s26, %s5803_s26   ;;  %s4406_s3 = sphi %s4577_s3, %s5809_s3   ;;  %s4402_s25 = sphi %s4575_s25, %s5802_s25   ;;  %s4398_s2 = sphi %s4573_s2, %s5808_s2   ;;  %s4394_s24 = sphi %s4571_s24, %s5807_s24   ;;  %s4390_s23 = sphi %s4569_s23, %s5806_s23   ;;  %s4386_s22 = sphi %s4567_s22, %s5800_s22   ;;  %s4382_s1 = sphi %s4565_s1, %s5799_s1  }
  0x2e   : > { %5700 = sst [smem:[#allocation46_spill]] %s4390_s23  ;;  %p5639_p0 = scmp.eq.s32.totalorder %s4422_s4, 0 }
  0x2f   : > { %5701 = sst [smem:[#allocation47_spill]] %s4402_s25  ;;  %p5638_p1 = scmp.eq.s32.totalorder %s4619_s29, 0 }
  0x30   : > { %5702 = sst [smem:[#allocation48_spill]] %s4406_s3  ;;  %p171_p2 = scmp.ne.s32.totalorder %s4390_s23, %s4386_s22 }
  0x31   : > { %5703 = sst [smem:[#allocation49_spill]] %s4410_s26  ;;  %p177_p3 = scmp.ne.s32.totalorder %s4386_s22, %s4382_s1 }
  0x32   : > { %5704 = sst [smem:[#allocation50_spill]] %s4418_s28  ;;  %p173_p5 = por %p171_p2, %p5639_p0 }
  0x33   : > { %5705 = sst [smem:[#allocation51_spill]] %s4619_s29  ;;  %p3074_p6 = scmp.ge.s32.totalorder %s4422_s4, 1 }
  0x34   : > { %p4632_p7 = por %p177_p3, %p5638_p1  ;;  %p584_p8 = scmp.lt.s32.totalorder %s4422_s4, 7 }
  0x35   : > { %s4424_s21 = smov [#allocation10]   ;;  %p5637_p11 = scmp.lt.s32.totalorder %s4422_s4, 6 }
  0x36   : > { %s5706_s30 = scalar_select %p4632_p7, 1, 0 }
  0x37   : > { %p4637_p9 = pnand %p3074_p6, %p584_p8  ;;  %s596_s20 = sshll.u32 %s4424_s21, 4  ;;  %s4641_s20 = int_to_ptr.vmem [resolvable:$true] %s596_s20 }
  0x38   : > { %5707 = sst [smem:[#allocation52_spill]] %s5706_s30  ;;  %p4654_p13 = pnand %p5637_p11, %p173_p5 }
  0x39   : > { %s5708_s0 = scalar_select %p4637_p9, 1, 0 }
  0x3a   : > { %p3492_p10 = pneg %p4637_p9  ;;  %s4425_s19 = smov [#allocation30]  }
  0x3b   : > { %5709 = sst [smem:[#allocation53_spill]] %s5708_s0  ;;  %s626_s18 = sshll.u32 %s4425_s19, 4  ;;  %s4658_s18 = int_to_ptr.vmem [resolvable:$true] %s626_s18 }
  0x3c   : > { %p4648_p12 = pnand %p3492_p10, %p5638_p1  ;;  %s5712_s3 = sld [smem:[#allocation60_spill]] }
  0x3d   : > { %s5711_s26 = scalar_select %p4654_p13, 1, 0 }
  0x3e   : > { %s5710_s1 = scalar_select %p4648_p12, 1, 0 }
  0x3f   : > { %p4668_p3 = pneg %p4648_p12 }
  0x41   : > { %s5714_s14 = scalar_select %p4668_p3, 1, 0 }
  0x42   : > { %s5713_s30 = smov %s5712_s3  ;;  %s3792_s22 = scalar_lea.hbm %s5712_s3, 1024 }
  0x43   : > { %p3793_p2 = scmp.ne.s32.totalorder %s5713_s30, %s3792_s22  ;;  %p3799_p8 = scmp.lt.u32.totalorder %s3792_s22, %s5713_s30 }
  0x45   : > { %p3795_p5 = pnand %p4668_p3, %p3793_p2 }
  0x47   : > { %p3796_p6 = pneg %p3795_p5 }
  0x49   : > { %p3801_p10 = pnand %p3799_p8, %p3796_p6 }
  0x4b   : > { %3804 = shalt.err (!%p3801_p10)
}
  0x4c   : > { %s3805_s7 = scalar_lea.vmem %s4641_s20, 1024  ;;  %p3813_p0 = scmp.lt.s32.totalorder %s4641_s20, %s4641_s20 }
  0x4d   : > { %p3806_p11 = scmp.ne.s32.totalorder %s4641_s20, %s3805_s7  ;;  %p3814_p7 = scmp.lt.s32.totalorder %s3805_s7, %s3805_s7 }
  0x4f   : > { %p3808_p4 = pnand %p3806_p11, %p4668_p3  ;;  %p3815_p2 = por %p3814_p7, %p3813_p0 }
  0x51   : > { %p3809_p1 = pneg %p3808_p4 }
  0x53   : > { %p3816_p5 = pnand %p3815_p2, %p3809_p1 }
  0x55   : > { %3819 = shalt.err (!%p3816_p5)
}
  0x56   : > { %s5644_s15 = smov 64   ;;  %s5646_s12 = smov 4  }
  0x57   : > { %3495 = dma.hbm_to_vmem [thread:$0]  (!%p4648_p12), %s5713_s30, 1024, %s4641_s20, [#allocation11], %s5644_s15, %s5644_s15, %s5646_s12  }
  0x58   : > { %s5715_s16 = sld [smem:[#allocation75_spill]] }
  0x5e   : > { %s3820_s19 = scalar_lea.hbm %s5715_s16, 16 }
  0x5f   : > { %p3821_p0 = scmp.ne.s32.totalorder %s5715_s16, %s3820_s19  ;;  %p3827_p7 = scmp.lt.u32.totalorder %s3820_s19, %s5715_s16 }
  0x61   : > { %p3823_p1 = pnand %p3821_p0, %p4668_p3 }
  0x63   : > { %p3824_p4 = pneg %p3823_p1 }
  0x65   : > { %p3829_p11 = pnand %p3827_p7, %p3824_p4 }
  0x67   : > { %3832 = shalt.err (!%p3829_p11)
}
  0x68   : > { %s3833_s20 = scalar_lea.vmem %s4658_s18, 16  ;;  %s3840_s10 = scalar_lea.vmem %s4658_s18, 32 }
  0x69   : > { %p3834_p6 = scmp.ne.s32.totalorder %s4658_s18, %s3833_s20  ;;  %p3841_p2 = scmp.lt.s32.totalorder %s4658_s18, %s4658_s18 }
  0x6a   : > { %p3842_p5 = scmp.lt.s32.totalorder %s3840_s10, %s3833_s20 }
  0x6b   : > { %p3836_p8 = pnand %p3834_p6, %p4668_p3 }
  0x6c   : > { %p3843_p0 = por %p3842_p5, %p3841_p2 }
  0x6d   : > { %p3837_p10 = pneg %p3836_p8 }
  0x6f   : > { %p3844_p1 = pnand %p3843_p0, %p3837_p10 }
  0x71   : > { %3847 = shalt.err (!%p3844_p1)
}
  0x72   : > { %3501 = dma.hbm_to_vmem [thread:$0]  (!%p4648_p12), %s5715_s16, 16, %s4658_s18, [#allocation29]  }
  0x73   : > { %s4717_s22 = sand.u32 1, %s4422_s4   ;;  %s4720_s3 = sand.u32 1, %s4390_s23  }
  0x74   : > { %s3444_s0 = smul.u32 192, %s4720_s3  ;;  %s5716_s20 = sld [smem:[#allocation63_spill]] }
  0x75   : > { %s3445_s21 = smul.u32 3072, %s4414_s27  ;;  %s4732_s8 = sshll.u32 %s4720_s3, 6 }
  0x76   : > { %s679_s5 = scalar_lea.vmem [#allocation13], %s3444_s0  ;;  %5717 = sst [smem:[#allocation54_spill]] %s4732_s8 }
  0x77   : > { %s686_s18 = sshll.u32 %s679_s5, 4  ;;  %p4739_p7 = pneg %p4654_p13  ;;  %s4729_s18 = int_to_ptr.vmem [resolvable:$true] %s686_s18 }
  0x79   : > { %s5718_s16 = scalar_select %p4739_p7, 1, 0 }
  0x7a   : > { %s4727_s10 = scalar_lea.hbm %s5716_s20, %s3445_s21  ;;  %s3853_s0 = scalar_lea.hbm %s5716_s20, 9216 }
  0x7b   : > { %s3848_s12 = scalar_lea.hbm %s4727_s10, 3072  ;;  %p3854_p8 = scmp.lt.u32.totalorder %s4727_s10, %s5716_s20 }
  0x7c   : > { %p3849_p4 = scmp.ne.s32.totalorder %s4727_s10, %s3848_s12  ;;  %p3855_p10 = scmp.lt.u32.totalorder %s3853_s0, %s3848_s12 }
  0x7d   : > { %p3857_p5 = scmp.lt.u32.totalorder %s3848_s12, %s4727_s10 }
  0x7e   : > { %p3851_p11 = pnand %p4739_p7, %p3849_p4  ;;  %p3856_p2 = por %p3855_p10, %p3854_p8 }
  0x80   : > { %p3852_p6 = pneg %p3851_p11  ;;  %p3858_p0 = por %p3857_p5, %p3856_p2 }
  0x82   : > { %p3859_p1 = pnand %p3858_p0, %p3852_p6 }
  0x84   : > { %3862 = shalt.err (!%p3859_p1)
}
  0x85   : > { %s3863_s15 = scalar_lea.vmem %s4729_s18, 3072  ;;  %s4428_s21 = smov [#allocation13]  }
  0x86   : > { %p3864_p4 = scmp.ne.s32.totalorder %s4729_s18, %s3863_s15  ;;  %s3868_s19 = sshll.u32 %s4428_s21, 4  ;;  %s3869_s19 = int_to_ptr.vmem [resolvable:$false] %s3868_s19 }
  0x87   : > { %s3870_s7 = scalar_lea.vmem %s3869_s19, 6144  ;;  %p3871_p12 = scmp.lt.s32.totalorder %s4729_s18, %s3869_s19 }
  0x88   : > { %p3866_p11 = pnand %p3864_p4, %p4739_p7  ;;  %p3872_p3 = scmp.lt.s32.totalorder %s3870_s7, %s3863_s15 }
  0x8a   : > { %p3867_p9 = pneg %p3866_p11  ;;  %p3873_p8 = por %p3872_p3, %p3871_p12 }
  0x8c   : > { %p3874_p10 = pnand %p3873_p8, %p3867_p9 }
  0x8e   : > { %3877 = shalt.err (!%p3874_p10)
}
  0x8f   : > { %s4429_s12 = smov 192   ;;  %s4430_s0 = smov 12  }
  0x90   : > { %s5719_s5 = scalar_lea.sflag [#allocation14], %s4717_s22  ;;  %s4765_s21 = sshll.u32 %s4414_s27, 10 }
  0x91   : > { %3511 = dma.hbm_to_vmem [thread:$0]  (!%p4654_p13), %s4727_s10, 3072, %s4729_s18, %s5719_s5, %s4429_s12, %s4429_s12, %s4430_s0  }
  0x92   : > { %5720 = sst [smem:[#allocation55_spill]] %s4765_s21  ;;  %s5721_s6 = sld [smem:[#allocation65_spill]] }
  0x93   : > { %s719_s20 = scalar_lea.vmem [#allocation16], %s4732_s8  ;;  %s4777_s23 = sshll.u32 %s4414_s27, 4 }
  0x94   : > { %s726_s30 = sshll.u32 %s719_s20, 4  ;;  %s5662_s29 = scalar_lea.sflag [#allocation17], %s4717_s22  ;;  %s4774_s30 = int_to_ptr.vmem [resolvable:$true] %s726_s30 }
  0x98   : > { %s4771_s7 = scalar_lea.hbm %s5721_s6, %s4765_s21  ;;  %s3883_s0 = scalar_lea.hbm %s5721_s6, 3072 }
  0x99   : > { %s3878_s10 = scalar_lea.hbm %s4771_s7, 1024  ;;  %p3884_p6 = scmp.lt.u32.totalorder %s4771_s7, %s5721_s6 }
  0x9a   : > { %p3879_p9 = scmp.ne.s32.totalorder %s4771_s7, %s3878_s10  ;;  %p3885_p2 = scmp.lt.u32.totalorder %s3883_s0, %s3878_s10 }
  0x9b   : > { %p3887_p0 = scmp.lt.u32.totalorder %s3878_s10, %s4771_s7 }
  0x9c   : > { %p3881_p12 = pnand %p3879_p9, %p4739_p7  ;;  %p3886_p5 = por %p3885_p2, %p3884_p6 }
  0x9e   : > { %p3882_p3 = pneg %p3881_p12  ;;  %p3888_p1 = por %p3887_p0, %p3886_p5 }
  0xa0   : > { %p3889_p4 = pnand %p3888_p1, %p3882_p3 }
  0xa2   : > { %3892 = shalt.err (!%p3889_p4)
}
  0xa3   : > { %s3893_s20 = scalar_lea.vmem %s4774_s30, 1024  ;;  %s4431_s19 = smov [#allocation16]  }
  0xa4   : > { %p3894_p11 = scmp.ne.s32.totalorder %s4774_s30, %s3893_s20  ;;  %s3898_s18 = sshll.u32 %s4431_s19, 4  ;;  %s3899_s18 = int_to_ptr.vmem [resolvable:$false] %s3898_s18 }
  0xa5   : > { %s3900_s12 = scalar_lea.vmem %s3899_s18, 2048  ;;  %p3901_p9 = scmp.lt.s32.totalorder %s4774_s30, %s3899_s18 }
  0xa6   : > { %p3896_p8 = pnand %p3894_p11, %p4739_p7  ;;  %p3902_p12 = scmp.lt.s32.totalorder %s3900_s12, %s3893_s20 }
  0xa8   : > { %p3897_p10 = pneg %p3896_p8  ;;  %p3903_p6 = por %p3902_p12, %p3901_p9 }
  0xaa   : > { %p3904_p2 = pnand %p3903_p6, %p3897_p10 }
  0xac   : > { %3907 = shalt.err (!%p3904_p2)
}
  0xad   : > { %s5722_s10 = smov 4   ;;  %s5723_s0 = smov 64  }
  0xae   : > { %3517 = dma.hbm_to_vmem [thread:$0]  (!%p4654_p13), %s4771_s7, 1024, %s4774_s30, %s5662_s29, %s5723_s0, %s5723_s0, %s5722_s10  }
  0xaf   : > { %s5724_s9 = sld [smem:[#allocation68_spill]]  ;;  %s762_s19 = scalar_lea.vmem [#allocation19], %s4720_s3 }
  0xb0   : > { %s769_s18 = sshll.u32 %s762_s19, 4  ;;  %s770_s18 = int_to_ptr.vmem [resolvable:$true] %s769_s18 }
  0xb5   : > { %s4810_s20 = scalar_lea.hbm %s5724_s9, %s4777_s23  ;;  %s3913_s7 = scalar_lea.hbm %s5724_s9, 48 }
  0xb6   : > { %s3908_s6 = scalar_lea.hbm %s4810_s20, 16  ;;  %p3914_p1 = scmp.lt.u32.totalorder %s4810_s20, %s5724_s9 }
  0xb7   : > { %p3909_p3 = scmp.ne.s32.totalorder %s4810_s20, %s3908_s6  ;;  %p3915_p4 = scmp.lt.u32.totalorder %s3913_s7, %s3908_s6 }
  0xb8   : > { %p3917_p8 = scmp.lt.u32.totalorder %s3908_s6, %s4810_s20 }
  0xb9   : > { %p3911_p5 = pnand %p3909_p3, %p4739_p7  ;;  %p3916_p11 = por %p3915_p4, %p3914_p1 }
  0xbb   : > { %p3912_p0 = pneg %p3911_p5  ;;  %p3918_p10 = por %p3917_p8, %p3916_p11 }
  0xbd   : > { %p3919_p9 = pnand %p3918_p10, %p3912_p0 }
  0xbf   : > { %3922 = shalt.err (!%p3919_p9)
}
  0xc0   : > { %s3923_s19 = scalar_lea.vmem %s770_s18, 16  ;;  %s4432_s29 = smov [#allocation19]  }
  0xc1   : > { %p3924_p12 = scmp.ne.s32.totalorder %s770_s18, %s3923_s19  ;;  %s3928_s12 = sshll.u32 %s4432_s29, 4  ;;  %s3929_s12 = int_to_ptr.vmem [resolvable:$false] %s3928_s12 }
  0xc2   : > { %s3930_s8 = scalar_lea.vmem %s3929_s12, 32  ;;  %p3931_p3 = scmp.lt.s32.totalorder %s770_s18, %s3929_s12 }
  0xc3   : > { %p3926_p6 = pnand %p3924_p12, %p4739_p7  ;;  %p3932_p5 = scmp.lt.s32.totalorder %s3930_s8, %s3923_s19 }
  0xc5   : > { %p3927_p2 = pneg %p3926_p6  ;;  %p3933_p13 = por %p3932_p5, %p3931_p3 }
  0xc7   : > { %p3934_p1 = pnand %p3933_p13, %p3927_p2 }
  0xc9   : > { %3937 = shalt.err (!%p3934_p1)
}
  0xca   : > { %p5725_p4 = scmp.ne.s32.totalorder %s5711_s26, 0  ;;  %s5726_s6 = scalar_lea.sflag [#allocation20], %s4717_s22 }
  0xcb   : > { %s5727_s11 = sld [smem:[#allocation70_spill]]  ;;  %s800_s12 = scalar_lea.vmem [#allocation22], %s4720_s3 }
  0xcc   : > { %3523 = dma.hbm_to_vmem [thread:$0]  (!%p5725_p4), %s4810_s20, 16, %s770_s18, %s5726_s6  }
  0xcd   : > { %s807_s5 = sshll.u32 %s800_s12, 4  ;;  %s808_s5 = int_to_ptr.vmem [resolvable:$true] %s807_s5 }
  0xd1   : > { %s4837_s29 = scalar_lea.hbm %s5727_s11, %s4777_s23  ;;  %s3943_s18 = scalar_lea.hbm %s5727_s11, 48 }
  0xd2   : > { %s3938_s19 = scalar_lea.hbm %s4837_s29, 16  ;;  %p3944_p8 = scmp.lt.u32.totalorder %s4837_s29, %s5727_s11 }
  0xd3   : > { %p3939_p13 = scmp.ne.s32.totalorder %s4837_s29, %s3938_s19  ;;  %p3945_p10 = scmp.lt.u32.totalorder %s3943_s18, %s3938_s19 }
  0xd4   : > { %p3947_p12 = scmp.lt.u32.totalorder %s3938_s19, %s4837_s29 }
  0xd5   : > { %p3941_p0 = pnand %p3939_p13, %p4739_p7  ;;  %p3946_p9 = por %p3945_p10, %p3944_p8 }
  0xd7   : > { %p3942_p11 = pneg %p3941_p0  ;;  %p3948_p6 = por %p3947_p12, %p3946_p9 }
  0xd9   : > { %p3949_p2 = pnand %p3948_p6, %p3942_p11 }
  0xdb   : > { %3952 = shalt.err (!%p3949_p2)
}
  0xdc   : > { %s3953_s7 = scalar_lea.vmem %s808_s5, 16  ;;  %s4433_s12 = smov [#allocation22]  }
  0xdd   : > { %p3954_p3 = scmp.ne.s32.totalorder %s808_s5, %s3953_s7  ;;  %s3958_s15 = sshll.u32 %s4433_s12, 4  ;;  %s3959_s15 = int_to_ptr.vmem [resolvable:$false] %s3958_s15 }
  0xde   : > { %s3960_s8 = scalar_lea.vmem %s3959_s15, 32  ;;  %p3961_p13 = scmp.lt.s32.totalorder %s808_s5, %s3959_s15 }
  0xdf   : > { %p3956_p5 = pnand %p3954_p3, %p4739_p7  ;;  %p3962_p0 = scmp.lt.s32.totalorder %s3960_s8, %s3953_s7 }
  0xe1   : > { %p3957_p1 = pneg %p3956_p5  ;;  %p3963_p4 = por %p3962_p0, %p3961_p13 }
  0xe3   : > { %p3964_p8 = pnand %p3963_p4, %p3957_p1 }
  0xe5   : > { %3967 = shalt.err (!%p3964_p8)
}
  0xe6   : > { %p5728_p10 = scmp.ne.s32.totalorder %s5711_s26, 0  ;;  %s5729_s19 = scalar_lea.sflag [#allocation23], %s4717_s22 }
  0xe7   : > { %s5730_s13 = sld [smem:[#allocation72_spill]]  ;;  %s838_s15 = scalar_lea.vmem [#allocation25], %s4720_s3 }
  0xe8   : > { %3529 = dma.hbm_to_vmem [thread:$0]  (!%p5728_p10), %s4837_s29, 16, %s808_s5, %s5729_s19  }
  0xe9   : > { %s845_s30 = sshll.u32 %s838_s15, 4  ;;  %s846_s30 = int_to_ptr.vmem [resolvable:$true] %s845_s30 }
  0xed   : > { %s4864_s6 = scalar_lea.hbm %s5730_s13, %s4777_s23  ;;  %s3973_s5 = scalar_lea.hbm %s5730_s13, 48 }
  0xee   : > { %s3968_s12 = scalar_lea.hbm %s4864_s6, 16  ;;  %p3974_p12 = scmp.lt.u32.totalorder %s4864_s6, %s5730_s13 }
  0xef   : > { %p3969_p4 = scmp.ne.s32.totalorder %s4864_s6, %s3968_s12  ;;  %p3975_p6 = scmp.lt.u32.totalorder %s3973_s5, %s3968_s12 }
  0xf0   : > { %p3977_p3 = scmp.lt.u32.totalorder %s3968_s12, %s4864_s6 }
  0xf1   : > { %p3971_p11 = pnand %p3969_p4, %p4739_p7  ;;  %p3976_p2 = por %p3975_p6, %p3974_p12 }
  0xf3   : > { %p3972_p9 = pneg %p3971_p11  ;;  %p3978_p5 = por %p3977_p3, %p3976_p2 }
  0xf5   : > { %p3979_p1 = pnand %p3978_p5, %p3972_p9 }
  0xf7   : > { %3982 = shalt.err (!%p3979_p1)
}
  0xf8   : > { %s3983_s18 = scalar_lea.vmem %s846_s30, 16  ;;  %s4434_s15 = smov [#allocation25]  }
  0xf9   : > { %p3984_p13 = scmp.ne.s32.totalorder %s846_s30, %s3983_s18  ;;  %s3988_s7 = sshll.u32 %s4434_s15, 4  ;;  %s3989_s7 = int_to_ptr.vmem [resolvable:$false] %s3988_s7 }
  0xfa   : > { %s3990_s8 = scalar_lea.vmem %s3989_s7, 32  ;;  %p3991_p4 = scmp.lt.s32.totalorder %s846_s30, %s3989_s7 }
  0xfb   : > { %p3986_p0 = pnand %p3984_p13, %p4739_p7  ;;  %p3992_p11 = scmp.lt.s32.totalorder %s3990_s8, %s3983_s18 }
  0xfd   : > { %p3987_p8 = pneg %p3986_p0  ;;  %p3993_p10 = por %p3992_p11, %p3991_p4 }
  0xff   : > { %p3994_p6 = pnand %p3993_p10, %p3987_p8 }
 0x101   : > { %3997 = shalt.err (!%p3994_p6)
}
 0x102   : > { %p5731_p12 = scmp.ne.s32.totalorder %s5711_s26, 0  ;;  %s5732_s12 = scalar_lea.sflag [#allocation26], %s4717_s22 }
 0x103   : > { %s4435_s29 = smov [#allocation12]   ;;  %s5733_s15 = sld [smem:[#allocation62_spill]] }
 0x104   : > { %3535 = dma.hbm_to_vmem [thread:$0]  (!%p5731_p12), %s4864_s6, 16, %s846_s30, %s5732_s12  }
 0x105   : > { %s612_s5 = sshll.u32 %s4435_s29, 4  ;;  %p5734_p10 = scmp.ne.s32.totalorder %s5714_s14, 0  ;;  %s613_s5 = int_to_ptr.vmem [resolvable:$true] %s612_s5 }
 0x109   : > { %s3998_s9 = scalar_lea.hbm %s5733_s15, 256 }
 0x10a   : > { %p3999_p9 = scmp.ne.s32.totalorder %s5733_s15, %s3998_s9  ;;  %p4005_p5 = scmp.lt.u32.totalorder %s3998_s9, %s5733_s15 }
 0x10c   : > { %p4001_p2 = pnand %p3999_p9, %p5734_p10 }
 0x10e   : > { %p4002_p3 = pneg %p4001_p2 }
 0x110   : > { %p4007_p1 = pnand %p4005_p5, %p4002_p3 }
 0x112   : > { %4010 = shalt.err (!%p4007_p1)
}
 0x113   : > { %s4011_s6 = scalar_lea.vmem %s613_s5, 256  ;;  %p4019_p4 = scmp.lt.s32.totalorder %s613_s5, %s613_s5 }
 0x114   : > { %p4012_p13 = scmp.ne.s32.totalorder %s613_s5, %s4011_s6  ;;  %p4020_p11 = scmp.lt.s32.totalorder %s4011_s6, %s4011_s6 }
 0x116   : > { %p4014_p0 = pnand %p4012_p13, %p5734_p10  ;;  %p4021_p6 = por %p4020_p11, %p4019_p4 }
 0x118   : > { %p4015_p8 = pneg %p4014_p0 }
 0x11a   : > { %p4022_p12 = pnand %p4021_p6, %p4015_p8 }
 0x11c   : > { %4025 = shalt.err (!%p4022_p12)
}
 0x11d   : > { %s4436_s11 = smov 128   ;;  %s4437_s30 = smov 8  }
 0x11e   : > { %p5735_p9 = scmp.ne.s32.totalorder %s5710_s1, 0  ;;  %s4438_s29 = smov [#allocation31]  }
 0x11f   : > { %s637_s19 = sshll.u32 %s4438_s29, 4  ;;  %s5736_s17 = sld [smem:[#allocation76_spill]]  ;;  %s638_s19 = int_to_ptr.vmem [resolvable:$true] %s637_s19 }
 0x120   : > { %3498 = dma.hbm_to_vmem [thread:$0]  (!%p5735_p9), %s5733_s15, 256, %s613_s5, [#allocation11], %s4436_s11, %s4436_s11, %s4437_s30  }
 0x125   : > { %s4026_s18 = scalar_lea.hbm %s5736_s17, 16 }
 0x126   : > { %p4027_p12 = scmp.ne.s32.totalorder %s5736_s17, %s4026_s18  ;;  %p4033_p5 = scmp.lt.u32.totalorder %s4026_s18, %s5736_s17 }
 0x128   : > { %p4029_p2 = pnand %p4027_p12, %p5734_p10 }
 0x12a   : > { %p4030_p3 = pneg %p4029_p2 }
 0x12c   : > { %p4035_p1 = pnand %p4033_p5, %p4030_p3 }
 0x12e   : > { %4038 = shalt.err (!%p4035_p1)
}
 0x12f   : > { %s4039_s5 = scalar_lea.vmem %s638_s19, 16  ;;  %s4046_s11 = scalar_lea.vmem %s638_s19, 32 }
 0x130   : > { %p4040_p13 = scmp.ne.s32.totalorder %s638_s19, %s4039_s5  ;;  %p4047_p4 = scmp.lt.s32.totalorder %s638_s19, %s638_s19 }
 0x131   : > { %p4048_p11 = scmp.lt.s32.totalorder %s4046_s11, %s4039_s5 }
 0x132   : > { %p4042_p0 = pnand %p4040_p13, %p5734_p10 }
 0x133   : > { %p4049_p6 = por %p4048_p11, %p4047_p4 }
 0x134   : > { %p4043_p8 = pneg %p4042_p0 }
 0x136   : > { %p4050_p7 = pnand %p4049_p6, %p4043_p8 }
 0x138   : > { %4053 = shalt.err (!%p4050_p7)
}
 0x139   : > { %s5737_s13 = sld [smem:[#allocation51_spill]]  ;;  %s3073_s1 = sadd.s32 4294967294, %s4422_s4  }
 0x13a   : > { %s5738_s14 = sld [smem:[#allocation46_spill]]  ;;  %s65_s21 = sadd.s32 1, %s4414_s27 }
 0x13b   : > { %3504 = dma.hbm_to_vmem [thread:$0]  (!%p5735_p9), %s5736_s17, 16, %s638_s19, [#allocation32]  }
 0x13c   : > { %s68_s9 = sadd.s32 1, %s4418_s28  ;;  %p66_p7 = scmp.ge.s32.totalorder %s65_s21, 3 }
 0x13d   : > { %s75_s29 = sadd.s32 1, %s4402_s25  ;;  %p82_p10 = scmp.ne.s32.totalorder %s4402_s25, %s4398_s2 }
 0x13e   : > { %p88_p12 = scmp.ne.s32.totalorder %s4398_s2, %s4394_s24  ;;  %s5812_s21 = smov (%p66_p7, %s65_s21), 0 }
 0x13f   : > { %5739 = sst [smem:[#allocation56_spill]] %s5812_s21  ;;  %s5814_s9 = smov (!%p66_p7, %s68_s9), %s4418_s28 }
 0x140   : > { %p5740_p9 = scmp.eq.s32.totalorder %s4422_s4, 0  ;;  %p5742_p3 = scmp.eq.s32.totalorder %s5737_s13, 0 }
 0x141   : > { %p70_p1 = scmp.ge.s32.totalorder %s5814_s9, 2  ;;  %s161_s7 = ssub.s32 %s4414_s27, %s5812_s21 }
 0x142   : > { %p4939_p2 = por %p5740_p9, %p82_p10  ;;  %p4948_p5 = por %p5742_p3, %p88_p12 }
 0x143   : > { %p162_p13 = scmp.eq.s32.totalorder %s161_s7, 0  ;;  %s164_s18 = sadd.s32 1, %s5738_s14 }
 0x144   : > { %s5743_s20 = scalar_select %p4948_p5, 1, 0 }
 0x145   : > { %s5816_s9 = smov (%p70_p1, %s5814_s9), 0  ;;  %s5818_s14 = smov (!%p162_p13, %s5738_s14), %s164_s18 }
 0x146   : > { %5744 = sst [smem:[#allocation57_spill]] %s5816_s9  ;;  %s72_s8 = ssub.s32 %s4418_s28, %s5816_s9 }
 0x147   : > { %p5745_p0 = scmp.eq.s32.totalorder %s5737_s13, 5  ;;  %p73_p4 = scmp.eq.s32.totalorder %s72_s8, 0 }
 0x148   : > { %p577_p11 = scmp.eq.s32.totalorder %s3073_s1, 5  ;;  %s654_s5 = sand.u32 1, %s4402_s25  }
 0x149   : > { %p4967_p8 = por %p5745_p0, %p82_p10  ;;  %s3201_s11 = sshll.u32 %s4418_s28, 7 }
 0x14a   : > { %s4974_s30 = scalar_select %p73_p4, %s4402_s25, %s75_s29  }
 0x14b   : > { %s5746_s6 = scalar_select %p4967_p8, 1, 0 }
 0x14c   : > { %5747 = sst [smem:[#allocation58_spill]] %s4974_s30  ;;  %p4979_p6 = por %p577_p11, %p88_p12 }
 0x14d   : > { %s3080_s7 = sshll.u32 %s654_s5, 3  ;;  %s5749_s17 = sld [smem:[#allocation59_spill]] }
 0x14e   : > { %s5748_s12 = scalar_select %p4979_p6, 1, 0 }
 0x14f   : > { %p5750_p7 = scmp.lt.s32.totalorder %s4422_s4, 6  ;;  %s658_s29 = scalar_lea.vmem [#allocation7], %s3080_s7 }
 0x150   : > { %s665_s8 = sshll.u32 %s658_s29, 4  ;;  %s3446_s9 = smul.u32 3, %s4720_s3  ;;  %s4997_s8 = int_to_ptr.vmem [resolvable:$true] %s665_s8 }
 0x151   : > { %p4992_p10 = pnand %p5750_p7, %p4939_p2  ;;  %s4999_s15 = scalar_lea.sflag [#allocation8], %s654_s5 }
 0x153   : > { %s4986_s13 = scalar_lea.hbm %s5749_s17, %s3201_s11  ;;  %p4056_p9 = pneg %p4992_p10 }
 0x154   : > { %s4054_s11 = scalar_lea.hbm %s4986_s13, 128  ;;  %s4059_s21 = scalar_lea.hbm %s5749_s17, 256 }
 0x155   : > { %p4055_p12 = scmp.ne.s32.totalorder %s4986_s13, %s4054_s11  ;;  %p4060_p1 = scmp.lt.u32.totalorder %s4986_s13, %s5749_s17 }
 0x156   : > { %p4061_p13 = scmp.lt.u32.totalorder %s4059_s21, %s4054_s11  ;;  %p4063_p4 = scmp.lt.u32.totalorder %s4054_s11, %s4986_s13 }
 0x157   : > { %p4057_p3 = pnand %p4056_p9, %p4055_p12 }
 0x158   : > { %p4062_p0 = por %p4061_p13, %p4060_p1 }
 0x159   : > { %p4058_p2 = pneg %p4057_p3 }
 0x15a   : > { %p4064_p11 = por %p4063_p4, %p4062_p0 }
 0x15c   : > { %p4065_p7 = pnand %p4064_p11, %p4058_p2 }
 0x15e   : > { %4068 = shalt.err (!%p4065_p7)
}
 0x15f   : > { %s4069_s5 = scalar_lea.vmem %s4997_s8, 128  ;;  %s4439_s29 = smov [#allocation7]  }
 0x160   : > { %p4070_p12 = scmp.ne.s32.totalorder %s4997_s8, %s4069_s5  ;;  %s4074_s19 = sshll.u32 %s4439_s29, 4  ;;  %s4075_s19 = int_to_ptr.vmem [resolvable:$false] %s4074_s19 }
 0x161   : > { %s4076_s28 = scalar_lea.vmem %s4075_s19, 256  ;;  %p4077_p8 = scmp.lt.s32.totalorder %s4997_s8, %s4075_s19 }
 0x162   : > { %p4072_p3 = pnand %p4070_p12, %p4056_p9  ;;  %p4078_p1 = scmp.lt.s32.totalorder %s4076_s28, %s4069_s5 }
 0x164   : > { %p4073_p6 = pneg %p4072_p3  ;;  %p4079_p13 = por %p4078_p1, %p4077_p8 }
 0x166   : > { %p4080_p0 = pnand %p4079_p13, %p4073_p6 }
 0x168   : > { %4083 = shalt.err (!%p4080_p0)
}
 0x169   : > { %3508 = dma.hbm_to_vmem [thread:$0]  (!%p4992_p10), %s4986_s13, 128, %s4997_s8, %s4999_s15, %s5723_s0, %s5723_s0, %s5722_s10  }
 0x16a   : > { %s3447_s21 = smul.u32 48, %s4414_s27  ;;  %s700_s11 = scalar_lea.vmem [#allocation15], %s3446_s9 }
 0x16b   : > { %s708_s18 = sshll.u32 %s700_s11, 4  ;;  %s5752_s29 = sld [smem:[#allocation64_spill]]  ;;  %s709_s18 = int_to_ptr.vmem [resolvable:$true] %s708_s18 }
 0x16c   : > { %p5753_p6 = scmp.ne.s32.totalorder %s5718_s16, 0 }
 0x171   : > { %s706_s19 = scalar_lea.hbm %s5752_s29, %s3447_s21  ;;  %s4089_s30 = scalar_lea.hbm %s5752_s29, 144 }
 0x172   : > { %s4084_s1 = scalar_lea.hbm %s706_s19, 48  ;;  %p4090_p10 = scmp.lt.u32.totalorder %s706_s19, %s5752_s29 }
 0x173   : > { %p4085_p8 = scmp.ne.s32.totalorder %s706_s19, %s4084_s1  ;;  %p4091_p4 = scmp.lt.u32.totalorder %s4089_s30, %s4084_s1 }
 0x174   : > { %p4093_p7 = scmp.lt.u32.totalorder %s4084_s1, %s706_s19 }
 0x175   : > { %p4087_p9 = pnand %p4085_p8, %p5753_p6  ;;  %p4092_p11 = por %p4091_p4, %p4090_p10 }
 0x177   : > { %p4088_p2 = pneg %p4087_p9  ;;  %p4094_p12 = por %p4093_p7, %p4092_p11 }
 0x179   : > { %p4095_p3 = pnand %p4094_p12, %p4088_p2 }
 0x17b   : > { %4098 = shalt.err (!%p4095_p3)
}
 0x17c   : > { %s4099_s9 = scalar_lea.vmem %s709_s18, 48  ;;  %s4440_s8 = smov [#allocation15]  }
 0x17d   : > { %p4100_p1 = scmp.ne.s32.totalorder %s709_s18, %s4099_s9  ;;  %s4104_s15 = sshll.u32 %s4440_s8, 4  ;;  %s4105_s15 = int_to_ptr.vmem [resolvable:$false] %s4104_s15 }
 0x17e   : > { %s4106_s17 = scalar_lea.vmem %s4105_s15, 96  ;;  %p4107_p8 = scmp.lt.s32.totalorder %s709_s18, %s4105_s15 }
 0x17f   : > { %p4102_p13 = pnand %p4100_p1, %p5753_p6  ;;  %p4108_p9 = scmp.lt.s32.totalorder %s4106_s17, %s4099_s9 }
 0x181   : > { %p4103_p0 = pneg %p4102_p13  ;;  %p4109_p5 = por %p4108_p9, %p4107_p8 }
 0x183   : > { %p4110_p4 = pnand %p4109_p5, %p4103_p0 }
 0x185   : > { %4113 = shalt.err (!%p4110_p4)
}
 0x186   : > { %p5754_p10 = scmp.ne.s32.totalorder %s5711_s26, 0  ;;  %s5755_s25 = scalar_lea.sflag [#allocation14], %s4717_s22 }
 0x187   : > { %s5756_s11 = sld [smem:[#allocation67_spill]]  ;;  %s745_s5 = scalar_lea.vmem [#allocation18], %s4720_s3 }
 0x188   : > { %3514 = dma.hbm_to_vmem [thread:$0]  (!%p5754_p10), %s706_s19, 48, %s709_s18, %s5755_s25  }
 0x189   : > { %s752_s1 = sshll.u32 %s745_s5, 4  ;;  %s753_s1 = int_to_ptr.vmem [resolvable:$true] %s752_s1 }
 0x18d   : > { %s5054_s7 = scalar_lea.hbm %s5756_s11, %s4777_s23  ;;  %s4119_s18 = scalar_lea.hbm %s5756_s11, 48 }
 0x18e   : > { %s4114_s28 = scalar_lea.hbm %s5054_s7, 16  ;;  %p4120_p7 = scmp.lt.u32.totalorder %s5054_s7, %s5756_s11 }
 0x18f   : > { %p4115_p5 = scmp.ne.s32.totalorder %s5054_s7, %s4114_s28  ;;  %p4121_p12 = scmp.lt.u32.totalorder %s4119_s18, %s4114_s28 }
 0x190   : > { %p4123_p1 = scmp.lt.u32.totalorder %s4114_s28, %s5054_s7 }
 0x191   : > { %p4117_p2 = pnand %p4115_p5, %p5753_p6  ;;  %p4122_p3 = por %p4121_p12, %p4120_p7 }
 0x193   : > { %p4118_p11 = pneg %p4117_p2  ;;  %p4124_p13 = por %p4123_p1, %p4122_p3 }
 0x195   : > { %p4125_p0 = pnand %p4124_p13, %p4118_p11 }
 0x197   : > { %4128 = shalt.err (!%p4125_p0)
}
 0x198   : > { %s4129_s15 = scalar_lea.vmem %s753_s1, 16  ;;  %s4441_s17 = smov [#allocation18]  }
 0x199   : > { %p4130_p8 = scmp.ne.s32.totalorder %s753_s1, %s4129_s15  ;;  %s4134_s25 = sshll.u32 %s4441_s17, 4  ;;  %s4135_s25 = int_to_ptr.vmem [resolvable:$false] %s4134_s25 }
 0x19a   : > { %s4136_s30 = scalar_lea.vmem %s4135_s25, 32  ;;  %p4137_p5 = scmp.lt.s32.totalorder %s753_s1, %s4135_s25 }
 0x19b   : > { %p4132_p9 = pnand %p4130_p8, %p5753_p6  ;;  %p4138_p2 = scmp.lt.s32.totalorder %s4136_s30, %s4129_s15 }
 0x19d   : > { %p4133_p4 = pneg %p4132_p9  ;;  %p4139_p10 = por %p4138_p2, %p4137_p5 }
 0x19f   : > { %p4140_p7 = pnand %p4139_p10, %p4133_p4 }
 0x1a1   : > { %4143 = shalt.err (!%p4140_p7)
}
 0x1a2   : > { %p5757_p12 = scmp.ne.s32.totalorder %s5711_s26, 0  ;;  %s5758_s21 = scalar_lea.sflag [#allocation17], %s4717_s22 }
 0x1a3   : > { %s5759_s5 = sld [smem:[#allocation55_spill]]  ;;  %s5760_s28 = sld [smem:[#allocation54_spill]] }
 0x1a4   : > { %3520 = dma.hbm_to_vmem [thread:$0]  (!%p5757_p12), %s5054_s7, 16, %s753_s1, %s5758_s21  }
 0x1a5   : > { %s5761_s18 = sld [smem:[#allocation69_spill]] }
 0x1a9   : > { %s780_s8 = scalar_lea.vmem [#allocation21], %s5760_s28 }
 0x1aa   : > { %s787_s15 = sshll.u32 %s780_s8, 4  ;;  %s5083_s15 = int_to_ptr.vmem [resolvable:$true] %s787_s15 }
 0x1ab   : > { %s5080_s19 = scalar_lea.hbm %s5761_s18, %s5759_s5  ;;  %s4149_s1 = scalar_lea.hbm %s5761_s18, 3072 }
 0x1ac   : > { %s4144_s17 = scalar_lea.hbm %s5080_s19, 1024  ;;  %p4150_p1 = scmp.lt.u32.totalorder %s5080_s19, %s5761_s18 }
 0x1ad   : > { %p4145_p10 = scmp.ne.s32.totalorder %s5080_s19, %s4144_s17  ;;  %p4151_p13 = scmp.lt.u32.totalorder %s4149_s1, %s4144_s17 }
 0x1ae   : > { %p4153_p8 = scmp.lt.u32.totalorder %s4144_s17, %s5080_s19 }
 0x1af   : > { %p4147_p11 = pnand %p4145_p10, %p5753_p6  ;;  %p4152_p0 = por %p4151_p13, %p4150_p1 }
 0x1b1   : > { %p4148_p3 = pneg %p4147_p11  ;;  %p4154_p9 = por %p4153_p8, %p4152_p0 }
 0x1b3   : > { %p4155_p4 = pnand %p4154_p9, %p4148_p3 }
 0x1b5   : > { %4158 = shalt.err (!%p4155_p4)
}
 0x1b6   : > { %s4159_s13 = scalar_lea.vmem %s5083_s15, 1024  ;;  %s4442_s9 = smov [#allocation21]  }
 0x1b7   : > { %p4160_p5 = scmp.ne.s32.totalorder %s5083_s15, %s4159_s13  ;;  %s4164_s8 = sshll.u32 %s4442_s9, 4  ;;  %s4165_s8 = int_to_ptr.vmem [resolvable:$false] %s4164_s8 }
 0x1b8   : > { %s4166_s25 = scalar_lea.vmem %s4165_s8, 2048  ;;  %p4167_p10 = scmp.lt.s32.totalorder %s5083_s15, %s4165_s8 }
 0x1b9   : > { %p4162_p2 = pnand %p4160_p5, %p5753_p6  ;;  %p4168_p11 = scmp.lt.s32.totalorder %s4166_s25, %s4159_s13 }
 0x1bb   : > { %p4163_p7 = pneg %p4162_p2  ;;  %p4169_p1 = por %p4168_p11, %p4167_p10 }
 0x1bd   : > { %p4170_p13 = pnand %p4169_p1, %p4163_p7 }
 0x1bf   : > { %4173 = shalt.err (!%p4170_p13)
}
 0x1c0   : > { %s5762_s17 = scalar_lea.sflag [#allocation20], %s4717_s22  ;;  %s5763_s30 = sld [smem:[#allocation71_spill]] }
 0x1c1   : > { %3526 = dma.hbm_to_vmem [thread:$0]  (!%p5757_p12), %s5080_s19, 1024, %s5083_s15, %s5762_s17, %s5723_s0, %s5723_s0, %s5722_s10  }
 0x1c2   : > { %s818_s13 = scalar_lea.vmem [#allocation24], %s5760_s28 }
 0x1c3   : > { %s825_s9 = sshll.u32 %s818_s13, 4  ;;  %s5118_s9 = int_to_ptr.vmem [resolvable:$true] %s825_s9 }
 0x1c6   : > { %s5115_s21 = scalar_lea.hbm %s5763_s30, %s5759_s5  ;;  %s4179_s15 = scalar_lea.hbm %s5763_s30, 3072 }
 0x1c7   : > { %s4174_s8 = scalar_lea.hbm %s5115_s21, 1024  ;;  %p4180_p9 = scmp.lt.u32.totalorder %s5115_s21, %s5763_s30 }
 0x1c8   : > { %p4175_p3 = scmp.ne.s32.totalorder %s5115_s21, %s4174_s8  ;;  %p4181_p4 = scmp.lt.u32.totalorder %s4179_s15, %s4174_s8 }
 0x1c9   : > { %p4183_p2 = scmp.lt.u32.totalorder %s4174_s8, %s5115_s21 }
 0x1ca   : > { %p4177_p0 = pnand %p4175_p3, %p5753_p6  ;;  %p4182_p5 = por %p4181_p4, %p4180_p9 }
 0x1cc   : > { %p4178_p8 = pneg %p4177_p0  ;;  %p4184_p7 = por %p4183_p2, %p4182_p5 }
 0x1ce   : > { %p4185_p10 = pnand %p4184_p7, %p4178_p8 }
 0x1d0   : > { %4188 = shalt.err (!%p4185_p10)
}
 0x1d1   : > { %s4189_s28 = scalar_lea.vmem %s5118_s9, 1024  ;;  %s4443_s7 = smov [#allocation24]  }
 0x1d2   : > { %p4190_p11 = scmp.ne.s32.totalorder %s5118_s9, %s4189_s28  ;;  %s4194_s1 = sshll.u32 %s4443_s7, 4  ;;  %s4195_s1 = int_to_ptr.vmem [resolvable:$false] %s4194_s1 }
 0x1d3   : > { %s4196_s13 = scalar_lea.vmem %s4195_s1, 2048  ;;  %p4197_p3 = scmp.lt.s32.totalorder %s5118_s9, %s4195_s1 }
 0x1d4   : > { %p4192_p1 = pnand %p4190_p11, %p5753_p6  ;;  %p4198_p0 = scmp.lt.s32.totalorder %s4196_s13, %s4189_s28 }
 0x1d6   : > { %p4193_p13 = pneg %p4192_p1  ;;  %p4199_p9 = por %p4198_p0, %p4197_p3 }
 0x1d8   : > { %p4200_p4 = pnand %p4199_p9, %p4193_p13 }
 0x1da   : > { %4203 = shalt.err (!%p4200_p4)
}
 0x1db   : > { %s5764_s8 = scalar_lea.sflag [#allocation23], %s4717_s22  ;;  %s5765_s15 = sld [smem:[#allocation73_spill]] }
 0x1dc   : > { %3532 = dma.hbm_to_vmem [thread:$0]  (!%p5757_p12), %s5115_s21, 1024, %s5118_s9, %s5764_s8, %s5723_s0, %s5723_s0, %s5722_s10  }
 0x1dd   : > { %s855_s5 = scalar_lea.vmem [#allocation27], %s4720_s3 }
 0x1de   : > { %s862_s28 = sshll.u32 %s855_s5, 4  ;;  %s863_s28 = int_to_ptr.vmem [resolvable:$true] %s862_s28 }
 0x1e1   : > { %s5150_s17 = scalar_lea.hbm %s5765_s15, %s4777_s23  ;;  %s4209_s10 = scalar_lea.hbm %s5765_s15, 48 }
 0x1e2   : > { %s4204_s7 = scalar_lea.hbm %s5150_s17, 16  ;;  %p4210_p7 = scmp.lt.u32.totalorder %s5150_s17, %s5765_s15 }
 0x1e3   : > { %p4205_p8 = scmp.ne.s32.totalorder %s5150_s17, %s4204_s7  ;;  %p4211_p10 = scmp.lt.u32.totalorder %s4209_s10, %s4204_s7 }
 0x1e4   : > { %p4213_p1 = scmp.lt.u32.totalorder %s4204_s7, %s5150_s17 }
 0x1e5   : > { %p4207_p5 = pnand %p4205_p8, %p5753_p6  ;;  %p4212_p11 = por %p4211_p10, %p4210_p7 }
 0x1e7   : > { %p4208_p2 = pneg %p4207_p5  ;;  %p4214_p13 = por %p4213_p1, %p4212_p11 }
 0x1e9   : > { %p4215_p3 = pnand %p4214_p13, %p4208_p2 }
 0x1eb   : > { %4218 = shalt.err (!%p4215_p3)
}
 0x1ec   : > { %s4219_s9 = scalar_lea.vmem %s863_s28, 16  ;;  %s4444_s8 = smov [#allocation27]  }
 0x1ed   : > { %p4220_p0 = scmp.ne.s32.totalorder %s863_s28, %s4219_s9  ;;  %s4224_s25 = sshll.u32 %s4444_s8, 4  ;;  %s4225_s25 = int_to_ptr.vmem [resolvable:$false] %s4224_s25 }
 0x1ee   : > { %s4226_s19 = scalar_lea.vmem %s4225_s25, 32  ;;  %p4227_p8 = scmp.lt.s32.totalorder %s863_s28, %s4225_s25 }
 0x1ef   : > { %p4222_p9 = pnand %p4220_p0, %p5753_p6  ;;  %p4228_p5 = scmp.lt.s32.totalorder %s4226_s19, %s4219_s9 }
 0x1f1   : > { %p4223_p4 = pneg %p4222_p9  ;;  %p4229_p12 = por %p4228_p5, %p4227_p8 }
 0x1f3   : > { %p4230_p7 = pnand %p4229_p12, %p4223_p4 }
 0x1f5   : > { %4233 = shalt.err (!%p4230_p7)
}
 0x1f6   : > { %p5766_p10 = scmp.ne.s32.totalorder %s5711_s26, 0  ;;  %s5767_s5 = scalar_lea.sflag [#allocation26], %s4717_s22 }
 0x1f7   : > { %s5768_s13 = sld [smem:[#allocation74_spill]]  ;;  %s872_s0 = scalar_lea.vmem [#allocation28], %s4720_s3 }
 0x1f8   : > { %3538 = dma.hbm_to_vmem [thread:$0]  (!%p5766_p10), %s5150_s17, 16, %s863_s28, %s5767_s5  }
 0x1f9   : > { %s879_s21 = sshll.u32 %s872_s0, 4  ;;  %s870_s9 = scalar_lea.sflag [#allocation29], %s4717_s22  ;;  %s880_s21 = int_to_ptr.vmem [resolvable:$true] %s879_s21 }
 0x1fd   : > { %s5176_s10 = scalar_lea.hbm %s5768_s13, %s4777_s23  ;;  %s4239_s28 = scalar_lea.hbm %s5768_s13, 48 }
 0x1fe   : > { %s4234_s8 = scalar_lea.hbm %s5176_s10, 16  ;;  %p4240_p1 = scmp.lt.u32.totalorder %s5176_s10, %s5768_s13 }
 0x1ff   : > { %p4235_p12 = scmp.ne.s32.totalorder %s5176_s10, %s4234_s8  ;;  %p4241_p13 = scmp.lt.u32.totalorder %s4239_s28, %s4234_s8 }
 0x200   : > { %p4243_p0 = scmp.lt.u32.totalorder %s4234_s8, %s5176_s10 }
 0x201   : > { %p4237_p2 = pnand %p4235_p12, %p5753_p6  ;;  %p4242_p3 = por %p4241_p13, %p4240_p1 }
 0x203   : > { %p4238_p11 = pneg %p4237_p2  ;;  %p4244_p9 = por %p4243_p0, %p4242_p3 }
 0x205   : > { %p4245_p4 = pnand %p4244_p9, %p4238_p11 }
 0x207   : > { %4248 = shalt.err (!%p4245_p4)
}
 0x208   : > { %s4249_s22 = scalar_lea.vmem %s880_s21, 16  ;;  %s4445_s3 = smov [#allocation28]  }
 0x209   : > { %p4250_p8 = scmp.ne.s32.totalorder %s880_s21, %s4249_s22  ;;  %s4254_s5 = sshll.u32 %s4445_s3, 4  ;;  %s4255_s5 = int_to_ptr.vmem [resolvable:$false] %s4254_s5 }
 0x20a   : > { %s4256_s7 = scalar_lea.vmem %s4255_s5, 32  ;;  %p4257_p12 = scmp.lt.s32.totalorder %s880_s21, %s4255_s5 }
 0x20b   : > { %p4252_p5 = pnand %p4250_p8, %p5753_p6  ;;  %p4258_p2 = scmp.lt.s32.totalorder %s4256_s7, %s4249_s22 }
 0x20d   : > { %p4253_p7 = pneg %p4252_p5  ;;  %p4259_p10 = por %p4258_p2, %p4257_p12 }
 0x20f   : > { %p4260_p1 = pnand %p4259_p10, %p4253_p7 }
 0x211   : > { %4263 = shalt.err (!%p4260_p1)
}
 0x212   : > { %p5769_p13 = scmp.ne.s32.totalorder %s5711_s26, 0  ;;  %s5770_s1 = sld [smem:[#allocation53_spill]] }
 0x214   : > { %3541 = dma.hbm_to_vmem [thread:$0]  (!%p5769_p13), %s5176_s10, 16, %s880_s21, %s870_s9  }
 0x218   : > { %p5771_p11 = scmp.ne.s32.totalorder %s5770_s1, 0 }
 0x219   : > { %s5200_s16 = sand.u32 (!%p5771_p11), 1, %s4398_s2   ;;  %p5772_p6 = scmp.ne.s32.totalorder (!%p5771_p11), %s5743_s20, 0 }
 0x21a   : > { %888 = sbr.rel (%p5771_p11) target bundleno = 3574 (0xdf6), region = 100  ;;  %s3101_s0 = sshll.u32 (!%p5771_p11), %s5200_s16, 3 }
 0x21b   : > { %s891_s8 = scalar_lea.sflag (!%p5771_p11), [#allocation8], %s5200_s16  ;;  %s5204_s25 = scalar_lea.vmem (!%p5771_p11), [#allocation7], %s3101_s0 }
 0x221   : > { %4337 = dma.done.wait (%p5772_p6), %s891_s8, 128  }
 0x222   : > { %4339 = vsyncadd (%p5772_p6), %s891_s8, 4294967168  ;;  %s5773_s26 = sld [smem:[#allocation51_spill]] }
 0x228   : > { %p5774_p10 = scmp.eq.s32.totalorder %s5773_s26, 0 }
 0x22a   : > { %4341 = dma.done.wait (%p5774_p10), [#allocation11], 1280   ;;  %p5775_p3 = pmov %p5774_p10 }
 0x22b   : > { %s5776_s10 = sld [smem:[#allocation45_spill]]  ;;  %s5777_s21 = sld [smem:[#allocation52_spill]] }
 0x22c   : > { %4343 = vsyncadd (%p5775_p3), [#allocation11], 4294966016  ;;  %s5215_s9 = sand.u32 1, %s5773_s26  }
 0x22d   : > { %s908_s19 = scalar_lea.sflag [#allocation14], %s5215_s9 }
 0x231   : > { %s5218_s17 = sand.u32 1, %s5776_s10   ;;  %p5778_p0 = scmp.ne.s32.totalorder %s5777_s21, 0 }
 0x232   : > { %s3448_s28 = smul.u32 192, %s5218_s17 }
 0x234   : > { %s5222_s23 = scalar_lea.vmem [#allocation13], %s3448_s28 }
 0x235   : > { %4345 = dma.done.wait (%p5778_p0), %s908_s19, 3120  }
 0x236   : > { %4347 = vsyncadd (%p5778_p0), %s908_s19, 4294964176  ;;  %s3449_s20 = smul.u32 3, %s5218_s17  ;;  %s3104_s22 = sshll.u32 %s5218_s17, 6 }
 0x237   : > { %s926_s5 = scalar_lea.sflag [#allocation17], %s5215_s9  ;;  %s5233_s7 = scalar_lea.vmem [#allocation16], %s3104_s22 }
 0x238   : > { %s5230_s3 = scalar_lea.vmem [#allocation15], %s3449_s20 }
 0x239   : > { %4349 = dma.done.wait (%p5778_p0), %s926_s5, 1040  }
 0x23a   : > { %4351 = vsyncadd (%p5778_p0), %s926_s5, 4294966256  ;;  %s943_s0 = scalar_lea.sflag [#allocation20], %s5215_s9 }
 0x23b   : > { %4353 = dma.done.wait (%p5778_p0), %s943_s0, 1040  }
 0x23c   : > { %4355 = vsyncadd (%p5778_p0), %s943_s0, 4294966256  ;;  %s5246_s10 = scalar_lea.vmem [#allocation21], %s3104_s22  ;;  %s960_s28 = scalar_lea.sflag [#allocation23], %s5215_s9 }
 0x23d   : > { %4357 = dma.done.wait (%p5778_p0), %s960_s28, 1040  }
 0x23e   : > { %4359 = vsyncadd (%p5778_p0), %s960_s28, 4294966256  ;;  %s5254_s20 = scalar_lea.vmem [#allocation24], %s3104_s22  ;;  %s977_s5 = scalar_lea.sflag [#allocation26], %s5215_s9 }
 0x23f   : > { %s979_s8 = scalar_lea.vmem [#allocation25], %s5218_s17 }
 0x240   : > { %4361 = dma.done.wait (%p5778_p0), %s977_s5, 32  }
 0x241   : > { %4363 = vsyncadd (%p5778_p0), %s977_s5, 4294967264  ;;  %s993_s19 = scalar_lea.sflag [#allocation29], %s5215_s9 }
 0x242   : > { %4365 = dma.done.wait (%p5778_p0), %s993_s19, 16  }
 0x243   : > { %4367 = vsyncadd (%p5778_p0), %s993_s19, 4294967280  ;;  %p5779_p9 = pmov %p5775_p3 }
 0x244   : > { %p5780_p4 = pmov %p5775_p3 }
 0x245   : > { %4369 = dma.done.wait (%p5779_p9), [#allocation29], 16  }
 0x246   : > { %4371 = vsyncadd (%p5780_p4), [#allocation29], 4294967280  ;;  %p5781_p8 = pmov %p5775_p3 }
 0x247   : > { %p5782_p5 = pmov %p5775_p3 }
 0x248   : > { %4373 = dma.done.wait (%p5781_p8), [#allocation32], 16  }
 0x249   : > { %4375 = vsyncadd (%p5782_p5), [#allocation32], 4294967280  ;;  %s5783_s9 = sld [smem:[#allocation48_spill]]  ;;  %s3109_s22 = sshll.u32 %s5200_s16, 4 }
 0x24a   : > { %s5784_s5 = sld [smem:[#allocation66_spill]]  ;;  %s5286_s0 = scalar_lea.vmem [#allocation33], %s3109_s22 }
 0x24f   : > { %p1112_p7 = scmp.lt.s32.totalorder %s5783_s9, 2  ;;  %p3110_p12 = scmp.ne.s32.totalorder %s5783_s9, 0 }
 0x250   : > { %v3667_v0 = vld [vmem:[#allocation10] sm:$0xff] (!%p3110_p12)   ;;  %v4446_v1 = vmov (!%p3110_p12), 0.0   ;;  %v3668_v2 = vld [vmem:[#allocation10 + $0x8] sm:$0xff] (!%p3110_p12)   ;;  %vm4447_vm0 = vmmov (!%p3110_p12), 0   ;;  %v3669_v3 = vld [vmem:[#allocation10 + $0x10] sm:$0xff] (!%p3110_p12)   ;;  %s5785_s22 = sld [smem:[#allocation61_spill]] (!%p3110_p12) }
 0x251   : > { %s5280_s28 = scalar_select %p1112_p7, %s5783_s9, 2 }
 0x252   : > { %1119 = sbr.rel (%p3110_p12) target bundleno = 845 (0x34d), region = 168  ;;  %3276 = vmatprep.subr.bf16.mxu0 (!%p3110_p12), %v4446_v1  ;;  %3292 = vmatprep.mubr.msk.bf16.mxu0 (!%p3110_p12), %vm4447_vm0, %v4446_v1  ;;  %v3670_v4 = vld [vmem:[#allocation10 + $0x18] sm:$0xff] (!%p3110_p12)   ;;  %v3671_v5 = vld [vmem:[#allocation10 + $0x20] sm:$0xff] (!%p3110_p12)   ;;  %v3672_v6 = vld [vmem:[#allocation10 + $0x28] sm:$0xff] (!%p3110_p12)  }
 0x253   : > { %s1114_s1 = scalar_lea.vmem %s5784_s5, %s5280_s28  ;;  %3277 = vmatpush3.bf16.msra.mxu0 (!%p3110_p12), %v3667_v0  ;;  %v3673_v7 = vld [vmem:[#allocation10 + $0x30] sm:$0xff] (!%p3110_p12)   ;;  %v3674_v8 = vld [vmem:[#allocation10 + $0x38] sm:$0xff] (!%p3110_p12)   ;;  %v1240_v12 = vld [vmem:[#allocation12] sm:$0xff] (!%p3110_p12) }
 0x254   : > { %3278 = vmatprep.subr.bf16.mxu0 (!%p3110_p12), %v4446_v1  ;;  %v3675_v9 = vld [vmem:[%s5204_s25] sm:$0xff] (!%p3110_p12)   ;;  %v1241_v16 = vld [vmem:[#allocation12 + $0x8] sm:$0xff] (!%p3110_p12) }
 0x256   : > { %v3111_v10 = vld [vmem:[%s5785_s22] ss:$0 sm:$0xff] (!%p3110_p12) }
 0x257   : > { %3279 = vmatpush3.bf16.msra.mxu0 (!%p3110_p12), %v3668_v2 }
 0x258   : > { %3280 = vmatprep.subr.bf16.mxu0 (!%p3110_p12), %v4446_v1 }
 0x25b   : > { %3281 = vmatpush3.bf16.msra.mxu0 %v3669_v3 }
 0x25c   : > { %3282 = vmatprep.subr.bf16.mxu0 %v4446_v1 }
 0x25f   : > { %3283 = vmatpush3.bf16.msra.mxu0 %v3670_v4 }
 0x260   : > { %3284 = vmatprep.subr.bf16.mxu0 %v4446_v1 }
 0x263   : > { %3285 = vmatpush3.bf16.msra.mxu0 %v3671_v5 }
 0x264   : > { %3286 = vmatprep.subr.bf16.mxu0 %v4446_v1 }
 0x267   : > { %3287 = vmatpush3.bf16.msra.mxu0 %v3672_v6 }
 0x268   : > { %3288 = vmatprep.subr.bf16.mxu0 %v4446_v1 }
 0x26b   : > { %3289 = vmatpush3.bf16.msra.mxu0 %v3673_v7 }
 0x26c   : > { %3290 = vmatprep.subr.bf16.mxu0 %v4446_v1 }
 0x26f   : > { %3291 = vmatpush3.bf16.msra.mxu0 %v3674_v8 }
 0x272   : > { %3293 = vmatmul.mubr.bf16.vlgmr.msra.gmra.mrb[0].mxu0 %v3675_v9 }
 0x345   : > { %v1233_v11 = vpop.f32.mrb[0].mxu0 }
 0x346   : > { %v1234_v13 = vadd.f32 %v3111_v10, %v1233_v11  ;;  %v3294_v14 = vpop.f32.mrb[1].mxu0 }
 0x347   : > { %v1236_v15 = vpop.f32.mrb[2].mxu0 }
 0x348   : > { %v1242_v17 = vadd.f32 %v1240_v12, %v1234_v13  ;;  %v1237_v18 = vadd.f32 %v3111_v10, %v1236_v15  ;;  %v3295_v19 = vpop.f32.mrb[3].mxu0 }
 0x34a   : > { %1244 = vst [vmem:[#allocation2] sm:$0xff] %v1242_v17  ;;  %v1243_v20 = vadd.f32 %v1241_v16, %v1237_v18 }
 0x34c   : > { %1245 = vst [vmem:[#allocation2 + $0x8] sm:$0xff] %v1243_v20 }
 0x34d PF: > { %v3676_v21 = vld [vmem:[%s5222_s23 + $0x4] ss:$12 sps:$4 sm:$0xff]   ;;  %v3678_v22 = vld [vmem:[%s5222_s23] ss:$12 sps:$4 sm:$0xff]   ;;  %v4448_v23 = vmov 0   ;;  %v4449_v24 = vmov 0.0   ;;  %v1283_v50 = vlaneseq }
 0x34e   : > { %1458 = vmatprep.mubr.bf16.mxu0 %v4448_v23  ;;  %3296 = vmatprep.subr.bf16.mxu1 %v4449_v24  ;;  %v3679_v25 = vld [vmem:[%s5222_s23 + $0x1c] ss:$12 sps:$4 sm:$0xff]   ;;  %v3681_v26 = vld [vmem:[%s5222_s23 + $0x18] ss:$12 sps:$4 sm:$0xff]   ;;  %v3682_v27 = vld [vmem:[%s5222_s23 + $0x34] ss:$12 sps:$4 sm:$0xff]  }
 0x34f   : > { %1426 = vmatprep.subr.bf16.mxu0 %v3676_v21  ;;  %v3684_v28 = vld [vmem:[%s5222_s23 + $0x30] ss:$12 sps:$4 sm:$0xff]   ;;  %v3685_v29 = vld [vmem:[%s5222_s23 + $0x4c] ss:$12 sps:$4 sm:$0xff]   ;;  %v3687_v30 = vld [vmem:[%s5222_s23 + $0x48] ss:$12 sps:$4 sm:$0xff]  }
 0x350   : > { %1427 = vmatpush1.bf16.msra.mxu0 %v3678_v22  ;;  %v3688_v31 = vld [vmem:[%s5222_s23 + $0x64] ss:$12 sps:$4 sm:$0xff]   ;;  %v3700_v32 = vld [vmem:[%s5222_s23 + $0x8] ss:$12 sps:$4 sm:$0xff]   ;;  %v3701_v33 = vld [vmem:[%s5222_s23 + $0x20] ss:$12 sps:$4 sm:$0xff]  }
 0x351   : > { %1428 = vmatprep.subr.bf16.mxu0 %v3679_v25  ;;  %3297 = vmatpush3.bf16.msra.mxu1 %v3700_v32  ;;  %v3690_v34 = vld [vmem:[%s5222_s23 + $0x60] ss:$12 sps:$4 sm:$0xff]   ;;  %v3691_v35 = vld [vmem:[%s5222_s23 + $0x7c] ss:$12 sps:$4 sm:$0xff]   ;;  %v3702_v36 = vld [vmem:[%s5222_s23 + $0x38] ss:$12 sps:$4 sm:$0xff]  }
 0x352   : > { %3298 = vmatprep.subr.bf16.mxu1 %v4449_v24  ;;  %v3693_v37 = vld [vmem:[%s5222_s23 + $0x78] ss:$12 sps:$4 sm:$0xff]   ;;  %v3694_v38 = vld [vmem:[%s5222_s23 + $0x94] ss:$12 sps:$4 sm:$0xff]   ;;  %v3703_v39 = vld [vmem:[%s5222_s23 + $0x50] ss:$12 sps:$4 sm:$0xff]  }
 0x353   : > { %v3696_v40 = vld [vmem:[%s5222_s23 + $0x90] ss:$12 sps:$4 sm:$0xff]   ;;  %v3697_v41 = vld [vmem:[%s5222_s23 + $0xac] ss:$12 sps:$4 sm:$0xff]   ;;  %v3704_v42 = vld [vmem:[%s5222_s23 + $0x68] ss:$12 sps:$4 sm:$0xff]  }
 0x354   : > { %1429 = vmatpush1.bf16.msra.mxu0 %v3681_v26  ;;  %v3699_v43 = vld [vmem:[%s5222_s23 + $0xa8] ss:$12 sps:$4 sm:$0xff]   ;;  %v3705_v47 = vld [vmem:[%s5222_s23 + $0x80] ss:$12 sps:$4 sm:$0xff]   ;;  %v3706_v48 = vld [vmem:[%s5222_s23 + $0x98] ss:$12 sps:$4 sm:$0xff]  }
 0x355   : > { %1430 = vmatprep.subr.bf16.mxu0 %v3682_v27  ;;  %3299 = vmatpush3.bf16.msra.mxu1 %v3701_v33  ;;  %v5318_v44 = vld [vmem:[#allocation2] sm:$0xff]  ;;  %v5320_v45 = vld [vmem:[#allocation2 + $0x8] sm:$0xff]  ;;  %vm4450_vm1 = vmmov 0   ;;  %v1284_v51 = vshrl.u32 %v1283_v50, 7  ;;  %v1281_v53 = vld [vmem:[%s5230_s3] sm:$0x7] }
 0x356   : > { %3300 = vmatprep.subr.bf16.mxu1 %v4449_v24  ;;  %v1248_v46 = vpack.c.bf16 %v5320_v45, %v5318_v44  ;;  %v3707_v49 = vld [vmem:[%s5222_s23 + $0xb0] ss:$12 sps:$4 sm:$0xff]   ;;  %3312 = vmatprep.mubr.msk.bf16.mxu1 %vm4450_vm1, %v4449_v24  ;;  %vm1513_vm2 = vcmask 261120   ;;  %s4451_s25 = smov 64   ;;  %s4452_s23 = smov 96   ;;  %vm1763_vm3 = vcmask 130048  }
 0x357   : > { %v1285_v52 = vsub.s32 0, %v1284_v51  ;;  %v1289_v54 = vsub.s32 1, %v1284_v51  ;;  %s4453_s3 = smov 32   ;;  %v1293_v8 = vsub.s32 2, %v1284_v51  ;;  %vm2043_vm4 = vcmask 523520   ;;  %s5789_s28 = scalar_lea.vmem [#allocation22], %s5218_s17 }
 0x358   : > { %1431 = vmatpush1.bf16.msra.mxu0 %v3684_v28  ;;  %vm2050_vm5 = vcmask 785920   ;;  %vm2057_vm6 = vcmask 1048320   ;;  %s5792_s5 = sld [smem:[#allocation48_spill]] }
 0x359   : > { %1432 = vmatprep.subr.bf16.mxu0 %v3685_v29  ;;  %3301 = vmatpush3.bf16.msra.mxu1 %v3702_v36  ;;  %v1286_v55 = vrot.slane %v1281_v53, %v1285_v52  ;;  %v1290_v57 = vrot.slane %v1281_v53, %v1289_v54  ;;  %v1294_v9 = vrot.slane %v1281_v53, %v1293_v8 }
 0x35a   : > { %3302 = vmatprep.subr.bf16.mxu1 %v4449_v24 }
 0x35c   : > { %1433 = vmatpush1.bf16.msra.mxu0 %v3687_v30 }
 0x35d   : > { %1434 = vmatprep.subr.bf16.mxu0 %v3688_v31  ;;  %3303 = vmatpush3.bf16.msra.mxu1 %v3703_v39 }
 0x35e   : > { %3304 = vmatprep.subr.bf16.mxu1 %v4449_v24  ;;  %p3184_p2 = scmp.ne.s32.totalorder %s5792_s5, 2 }
 0x35f   : > { %vm4456_vm9 = vmmov (!%p3184_p2), 0  }
 0x360   : > { %1435 = vmatpush1.bf16.msra.mxu0 %v3690_v34 }
 0x361   : > { %1436 = vmatprep.subr.bf16.mxu0 %v3691_v35  ;;  %3305 = vmatpush3.bf16.msra.mxu1 %v3704_v42 }
 0x362   : > { %3306 = vmatprep.subr.bf16.mxu1 %v4449_v24 }
 0x364   : > { %1437 = vmatpush1.bf16.msra.mxu0 %v3693_v37 }
 0x365   : > { %1438 = vmatprep.subr.bf16.mxu0 %v3694_v38  ;;  %3307 = vmatpush3.bf16.msra.mxu1 %v3705_v47 }
 0x366   : > { %3308 = vmatprep.subr.bf16.mxu1 %v4449_v24 }
 0x368   : > { %1439 = vmatpush1.bf16.msra.mxu0 %v3696_v40 }
 0x369   : > { %1440 = vmatprep.subr.bf16.mxu0 %v3697_v41  ;;  %3309 = vmatpush3.bf16.msra.mxu1 %v3706_v48 }
 0x36a   : > { %3310 = vmatprep.subr.bf16.mxu1 %v4449_v24 }
 0x36c   : > { %1441 = vmatpush1.bf16.msra.mxu0 %v3699_v43 }
 0x36d   : > { %3340 = vmatprep.subr.bf16.mxu0 %v4449_v24  ;;  %3311 = vmatpush3.bf16.msra.mxu1 %v3707_v49 }
 0x36e   : > { %3316 = vmatprep.subr.bf16.mxu1 %v4449_v24 }
 0x36f   : > { %1459 = vmatmul.mubr.bf16.vlgmr.msra.gmra.mrb[0].mxu0 %v1248_v46 }
 0x370   : > { %3342 = vmatprep.mubr.msk.bf16.mxu0 %vm4450_vm1, %v4449_v24  ;;  %3313 = vmatmul.mubr.bf16.vlgmr.msra.gmra.mrb[0].mxu1 %v1248_v46 }
 0x371   : > { %3318 = vmatprep.mubr.msk.bf16.mxu1 %vm4450_vm1, %v4449_v24 }
 0x442   : > { %v1460_v56 = vpop.f32.mrb[0].mxu0 }
 0x443   : > { %v1461_v58 = vadd.f32 %v1460_v56, %v1286_v55  ;;  %v1462_v59 = vpop.f32.mrb[1].mxu0  ;;  %v1503_v10 = vpop.f32.mrb[0].mxu1 }
 0x444   : > { %v1464_v60 = vpop.f32.mrb[2].mxu0  ;;  %v1463_v63 = vadd.f32 %v1462_v59, %v1290_v57  ;;  %v1504_v11 = vadd.f32 %v1503_v10, %v1294_v9  ;;  %v3314_v12 = vpop.f32.mrb[1].mxu1 }
 0x445   : > { %v1465_v61 = vadd.f32 %v1464_v60, %v1286_v55  ;;  %v1466_v62 = vpop.f32.mrb[3].mxu0  ;;  %v1510_v1 = vmul.f32 0.25, %v1461_v58  ;;  %v1506_v13 = vpop.f32.mrb[2].mxu1 }
 0x446   : > { %v1467_v0 = vadd.f32 %v1466_v62, %v1290_v57  ;;  %v1507_v14 = vadd.f32 %v1506_v13, %v1294_v9  ;;  %v3315_v15 = vpop.f32.mrb[3].mxu1 }
 0x447   : > { %v1511_v2 = vmul.f32 0.25, %v1465_v61 }
 0x448   : > { %v1515_v3 = vpack.c.bf16 %v1467_v0, %v1463_v63  ;;  %v5353_v16 = vpack.c.bf16 %v1507_v14, %v1504_v11 }
 0x449   : > { %v1512_v4 = vpack.c.bf16 %v1511_v2, %v1510_v1 }
 0x44a   : > { %1516 = vst.msk [vmem:[#allocation4] sm:$0xff] %vm1513_vm2, %v1515_v3  ;;  %1542 = vrot.lane.b32.xlu1 %v1515_v3, %s4451_s25  ;;  %1526 = vrot.lane.b32.xlu0 %v1515_v3, %s4452_s23  ;;  %1518 = vst.msk [vmem:[#allocation5] sm:$0xff] %vm1513_vm2, %v5353_v16 }
 0x44b   : > { %1514 = vst.msk [vmem:[#allocation3] sm:$0xff] %vm1513_vm2, %v1512_v4 }
 0x44e   : > { %1537 = vrot.lane.b32.xlu1 %v1512_v4, %s4451_s25  ;;  %1520 = vrot.lane.b32.xlu0 %v1512_v4, %s4452_s23 }
 0x451   : > { %v1571_v5 = vld [vmem:[#allocation4] sm:$0xff] }
 0x452   : > { %1552 = vrot.lane.b32.xlu1 %v1512_v4, %s4453_s3  ;;  %1557 = vrot.lane.b32.xlu0 %v1515_v3, %s4453_s3  ;;  %v1579_v6 = vsel %vm1513_vm2, %v1571_v5, 0  ;;  %v1567_v7 = vld [vmem:[#allocation3] sm:$0xff] }
 0x453   : > { %3317 = vmatpush3.bf16.xpose.msra.mxu1 %v1579_v6  ;;  %v1856_v17 = vld [vmem:[#allocation5] sm:$0xff] }
 0x454   : > { %3322 = vmatprep.subr.bf16.mxu1 %v4449_v24  ;;  %3341 = vmatpush3.bf16.msra.mxu0 %v1856_v17 }
 0x455   : > { %3352 = vmatprep.subr.bf16.mxu0 %v4449_v24 }
 0x45a   : > { %3319 = vmatmul.mubr.msk.bf16.vlgmr.msra.gmra.mrb[4].mxu1 %vm1513_vm2, %v1567_v7 }
 0x45b   : > { %3324 = vmatprep.mubr.msk.bf16.mxu1 %vm4450_vm1, %v4449_v24 }
 0x4bc   : > { %v1543_v18 = vpop.permute.xlu1 %1542  ;;  %v1527_v19 = vpop.permute.xlu0 %1526 }
 0x4bd   : > { %1546 = vst.msk [vmem:[#allocation4 + $0x10] sm:$0xff] %vm1513_vm2, %v1543_v18  ;;  %1530 = vst.msk [vmem:[#allocation4 + $0x8] sm:$0xff] %vm1513_vm2, %v1527_v19 }
 0x4c0   : > { %v1538_v20 = vpop.permute.xlu1 %1537  ;;  %v1521_v21 = vpop.permute.xlu0 %1520 }
 0x4c1   : > { %1541 = vst.msk [vmem:[#allocation3 + $0x10] sm:$0xff] %vm1513_vm2, %v1538_v20  ;;  %1524 = vst.msk [vmem:[#allocation3 + $0x8] sm:$0xff] %vm1513_vm2, %v1521_v21 }
 0x4c4   : > { %v1553_v22 = vpop.permute.xlu1 %1552  ;;  %v1558_v23 = vpop.permute.xlu0 %1557  ;;  %v1572_v25 = vld [vmem:[#allocation4 + $0x8] sm:$0xff]  ;;  %v1573_v27 = vld [vmem:[#allocation4 + $0x10] sm:$0xff] }
 0x4c5   : > { %1556 = vst.msk [vmem:[#allocation3 + $0x18] sm:$0xff] %vm1513_vm2, %v1553_v22  ;;  %1561 = vst.msk [vmem:[#allocation4 + $0x18] sm:$0xff] %vm1513_vm2, %v1558_v23  ;;  %v1626_v26 = vsel %vm1513_vm2, %v1572_v25, 0  ;;  %v1673_v29 = vsel %vm1513_vm2, %v1573_v27, 0 }
 0x4c6   : > { %3323 = vmatpush3.bf16.xpose.msra.mxu1 %v1626_v26 }
 0x4c7   : > { %3328 = vmatprep.subr.bf16.mxu1 %v4449_v24 }
 0x4c8   : > { %v1568_v28 = vld [vmem:[#allocation3 + $0x8] sm:$0xff]  ;;  %v1569_v31 = vld [vmem:[#allocation3 + $0x10] sm:$0xff] }
 0x4cc   : > { %v1574_v30 = vld [vmem:[#allocation4 + $0x18] sm:$0xff] }
 0x4cd   : > { %3325 = vmatmul.mubr.msk.bf16.vlgmr.msra.gmra.mrb[8].mxu1 %vm1513_vm2, %v1568_v28  ;;  %v1720_v32 = vsel %vm1513_vm2, %v1574_v30, 0  ;;  %v1570_v33 = vld [vmem:[#allocation3 + $0x18] sm:$0xff] }
 0x4ce   : > { %3329 = vmatpush3.bf16.xpose.msra.mxu1 %v1673_v29  ;;  %3330 = vmatprep.mubr.msk.bf16.mxu1 %vm4450_vm1, %v4449_v24 }
 0x4cf   : > { %3334 = vmatprep.subr.bf16.mxu1 %v4449_v24 }
 0x4d5   : > { %3331 = vmatmul.mubr.msk.bf16.vlgmr.msra.gmra.mrb[12].mxu1 %vm1513_vm2, %v1569_v31 }
 0x4d6   : > { %3335 = vmatpush3.bf16.xpose.msra.mxu1 %v1720_v32  ;;  %3336 = vmatprep.mubr.msk.bf16.mxu1 %vm4450_vm1, %v4449_v24 }
 0x4d7   : > { %3346 = vmatprep.subr.bf16.mxu1 %v4449_v24 }
 0x4dd   : > { %3337 = vmatmul.mubr.msk.bf16.vlgmr.msra.gmra.mrb[16].mxu1 %vm1513_vm2, %v1570_v33 }
 0x4de   : > { %3348 = vmatprep.mubr.msk.bf16.mxu1 %vm4450_vm1, %v4449_v24 }
 0x52d   : > { %v1615_v34 = vpop.f32.mrb[4].mxu1 }
 0x52e   : > { %v3320_v35 = vpop.f32.mrb[5].mxu1  ;;  %v1764_v36 = vsel %vm1763_vm3, %v1615_v34, -inf }
 0x52f   : > { %1765 = vmax.xlane.f32.xlu0 %v1764_v36  ;;  %v1618_v37 = vpop.f32.mrb[6].mxu1 }
 0x530   : > { %v3321_v38 = vpop.f32.mrb[7].mxu1  ;;  %v1767_v39 = vsel %vm1763_vm3, %v1618_v37, -inf }
 0x531   : > { %1768 = vmax.xlane.f32.xlu1 %v1767_v39 }
 0x5a0   : > { %v1662_v40 = vpop.f32.mrb[8].mxu1 }
 0x5a1   : > { %v3326_v41 = vpop.f32.mrb[9].mxu1  ;;  %v1770_v42 = vsel %vm1763_vm3, %v1662_v40, -inf }
 0x5a2   : > { %1771 = vmax.xlane.f32.xlu0 %v1770_v42  ;;  %v1665_v43 = vpop.f32.mrb[10].mxu1 }
 0x5a3   : > { %v3327_v46 = vpop.f32.mrb[11].mxu1  ;;  %v1773_v47 = vsel %vm1763_vm3, %v1665_v43, -inf }
 0x5a6   : > { %1774 = vmax.xlane.f32.xlu0 %v1773_v47 }
 0x5a8   : > { %v1709_v48 = vpop.f32.mrb[12].mxu1 }
 0x5a9   : > { %v3332_v49 = vpop.f32.mrb[13].mxu1  ;;  %v1776_v50 = vsel %vm1763_vm3, %v1709_v48, -inf }
 0x5aa   : > { %1777 = vmax.xlane.f32.xlu1 %v1776_v50  ;;  %v1712_v51 = vpop.f32.mrb[14].mxu1 }
 0x5ab   : > { %v3333_v52 = vpop.f32.mrb[15].mxu1  ;;  %v1779_v53 = vsel %vm1763_vm3, %v1712_v51, -inf }
 0x5ac   : > { %1780 = vmax.xlane.f32.xlu0 %v1779_v53 }
 0x5b0   : > { %v1756_v54 = vpop.f32.mrb[16].mxu1 }
 0x5b1   : > { %v3338_v55 = vpop.f32.mrb[17].mxu1  ;;  %v1782_v56 = vsel %vm1763_vm3, %v1756_v54, -inf }
 0x5b2   : > { %1783 = vmax.xlane.f32.xlu1 %v1782_v56  ;;  %v1759_v57 = vpop.f32.mrb[18].mxu1 }
 0x5b3   : > { %v3339_v58 = vpop.f32.mrb[19].mxu1  ;;  %v1785_v59 = vsel %vm1763_vm3, %v1759_v57, -inf }
 0x5b4   : > { %1786 = vmax.xlane.f32.xlu0 %v1785_v59 }
 0x5bc   : > { %v1766_v0 = vpop.xlane.xlu0 %1765 }
 0x5bd   : > { %v1788_v2 = vsub.f32 %v1615_v34, %v1766_v0 }
 0x5be   : > { %v1769_v60 = vpop.xlane.xlu1 %1768 }
 0x5bf   : > { %v1789_v61 = vsub.f32 %v1618_v37, %v1769_v60  ;;  %v1796_v3 = vmul.f32 1.442695, %v1788_v2 }
 0x5c1   : > { %v1798_v62 = vmul.f32 1.442695, %v1789_v61 }
 0x5c3   : > { %3732 = vpow2.f32 %v1798_v62  ;;  %1532 = vrot.lane.b32.xlu1 %v5353_v16, %s4452_s23 }
 0x5c4   : > { %3734 = vpow2.f32 %v1796_v3 }
 0x5cd   : > { %v5389_v63 = vpop.eup %3732 }
 0x5ce   : > { %v1815_v1 = vsel %vm1763_vm3, %v5389_v63, 0.0  ;;  %v3735_v4 = vpop.eup %3734 }
 0x5cf   : > { %1816 = vadd.xlane.f32.xlu0 %v1815_v1  ;;  %v1812_v5 = vsel %vm1763_vm3, %v3735_v4, 0.0 }
 0x5e7   : > { %1813 = vadd.xlane.f32.xlu1 %v1812_v5 }
 0x62f   : > { %v1772_v6 = vpop.xlane.xlu0 %1771 }
 0x630   : > { %v1790_v7 = vsub.f32 %v1662_v40, %v1772_v6 }
 0x632   : > { %v1800_v8 = vmul.f32 1.442695, %v1790_v7 }
 0x633   : > { %v1775_v9 = vpop.xlane.xlu0 %1774 }
 0x634   : > { %3736 = vpow2.f32 %v1800_v8  ;;  %v1791_v10 = vsub.f32 %v1665_v43, %v1775_v9  ;;  %v3708_v9 = vld [vmem:[%s5233_s7] sm:$0xff]  }
 0x636   : > { %v1802_v11 = vmul.f32 1.442695, %v1791_v10  ;;  %v3709_v10 = vld [vmem:[%s5233_s7 + $0x8] sm:$0xff]  }
 0x637   : > { %v1778_v12 = vpop.xlane.xlu1 %1777 }
 0x638   : > { %3738 = vpow2.f32 %v1802_v11  ;;  %v1792_v13 = vsub.f32 %v1709_v48, %v1778_v12 }
 0x639   : > { %v1781_v14 = vpop.xlane.xlu0 %1780 }
 0x63a   : > { %v1804_v15 = vmul.f32 1.442695, %v1792_v13  ;;  %v1793_v17 = vsub.f32 %v1712_v51, %v1781_v14 }
 0x63c   : > { %3740 = vpow2.f32 %v1804_v15  ;;  %v1806_v18 = vmul.f32 1.442695, %v1793_v17  ;;  %v3710_v17 = vld [vmem:[%s5233_s7 + $0x10] sm:$0xff]  }
 0x63e   : > { %v3737_v19 = vpop.eup %3736  ;;  %3742 = vpow2.f32 %v1806_v18  ;;  %v3711_v18 = vld [vmem:[%s5233_s7 + $0x18] sm:$0xff]  }
 0x63f   : > { %v1784_v20 = vpop.xlane.xlu1 %1783  ;;  %v1818_v21 = vsel %vm1763_vm3, %v3737_v19, 0.0 }
 0x640   : > { %v1794_v22 = vsub.f32 %v1756_v54, %v1784_v20  ;;  %1819 = vadd.xlane.f32.xlu1 %v1818_v21  ;;  %v3713_v21 = vld [vmem:[%s5233_s7 + $0x28] sm:$0xff]  }
 0x641   : > { %v1787_v23 = vpop.xlane.xlu0 %1786 }
 0x642   : > { %v3739_v25 = vpop.eup %3738  ;;  %v1808_v26 = vmul.f32 1.442695, %v1794_v22  ;;  %v1795_v27 = vsub.f32 %v1759_v57, %v1787_v23 }
 0x643   : > { %v1533_v28 = vpop.permute.xlu1 %1532  ;;  %v1821_v29 = vsel %vm1763_vm3, %v3739_v25, 0.0 }
 0x644   : > { %3744 = vpow2.f32 %v1808_v26  ;;  %v1810_v30 = vmul.f32 1.442695, %v1795_v27  ;;  %1536 = vst.msk [vmem:[#allocation5 + $0x8] sm:$0xff] %vm1513_vm2, %v1533_v28  ;;  %1822 = vadd.xlane.f32.xlu0 %v1821_v29  ;;  %v3714_v27 = vld [vmem:[%s5233_s7 + $0x30] sm:$0xff]   ;;  %v3715_v28 = vld [vmem:[%s5233_s7 + $0x38] sm:$0xff]  }
 0x646   : > { %v3741_v31 = vpop.eup %3740  ;;  %3746 = vpow2.f32 %v1810_v30 }
 0x647   : > { %v1824_v32 = vsel %vm1763_vm3, %v3741_v31, 0.0 }
 0x648   : > { %v3743_v33 = vpop.eup %3742  ;;  %1825 = vadd.xlane.f32.xlu1 %v1824_v32 }
 0x649   : > { %v1827_v34 = vsel %vm1763_vm3, %v3743_v33, 0.0 }
 0x64a   : > { %1828 = vadd.xlane.f32.xlu0 %v1827_v34 }
 0x64b   : > { %v1857_v35 = vld [vmem:[#allocation5 + $0x8] sm:$0xff] }
 0x64c   : > { %3347 = vmatpush3.bf16.msra.mxu1 %v1857_v35 }
 0x64d   : > { %3358 = vmatprep.subr.bf16.mxu1 %v4449_v24 }
 0x64e   : > { %v3745_v36 = vpop.eup %3744 }
 0x64f   : > { %v1830_v37 = vsel %vm1763_vm3, %v3745_v36, 0.0 }
 0x650   : > { %v3747_v38 = vpop.eup %3746  ;;  %1831 = vadd.xlane.f32.xlu1 %v1830_v37 }
 0x651   : > { %v1833_v39 = vsel %vm1763_vm3, %v3747_v38, 0.0 }
 0x652   : > { %1834 = vadd.xlane.f32.xlu0 %v1833_v39 }
 0x65c   : > { %v1817_v40 = vpop.xlane.xlu0 %1816 }
 0x65d   : > { %3748 = vrcp.f32 %v1817_v40 }
 0x661   : > { %1562 = vrot.lane.b32.xlu1 %v5353_v16, %s4453_s3 }
 0x667   : > { %v3749_v42 = vpop.eup %3748 }
 0x668   : > { %1547 = vrot.lane.b32.xlu0 %v5353_v16, %s4451_s25  ;;  %v1845_v46 = vmul.f32 %v3749_v42, %v5389_v63 }
 0x674   : > { %v1814_v41 = vpop.xlane.xlu1 %1813 }
 0x675   : > { %3750 = vrcp.f32 %v1814_v41 }
 0x67f   : > { %v3751_v43 = vpop.eup %3750 }
 0x680   : > { %v1844_v47 = vmul.f32 %v3751_v43, %v3735_v4  ;;  %v3153_v43 = vld [vmem:[%s1114_s1] ss:$0 sm:$0xff]  ;;  %s5787_s1 = scalar_lea.vmem [#allocation18], %s5218_s17 }
 0x682   : > { %v1852_v48 = vpack.c.bf16 %v1845_v46, %v1844_v47 }
 0x684   : > { %3343 = vmatmul.mubr.msk.bf16.vlgmr.msra.gmra.mrb[4].mxu0 %vm1763_vm3, %v1852_v48 }
 0x685   : > { %3354 = vmatprep.mubr.msk.bf16.mxu0 %vm4450_vm1, %v4449_v24 }
 0x6cd   : > { %v1820_v49 = vpop.xlane.xlu1 %1819 }
 0x6ce   : > { %3752 = vrcp.f32 %v1820_v49 }
 0x6d1   : > { %v1823_v50 = vpop.xlane.xlu0 %1822 }
 0x6d2   : > { %3754 = vrcp.f32 %v1823_v50 }
 0x6d5   : > { %v1826_v16 = vpop.xlane.xlu1 %1825 }
 0x6d7   : > { %v1829_v51 = vpop.xlane.xlu0 %1828 }
 0x6d8   : > { %v3753_v52 = vpop.eup %3752  ;;  %3756 = vrcp.f32 %v1829_v51 }
 0x6d9   : > { %v1846_v54 = vmul.f32 %v3753_v52, %v3737_v19  ;;  %3758 = vrcp.f32 %v1826_v16  ;;  %v3712_v19 = vld [vmem:[%s5233_s7 + $0x20] sm:$0xff]  }
 0x6dc   : > { %v3755_v53 = vpop.eup %3754 }
 0x6dd   : > { %v1847_v55 = vmul.f32 %v3755_v53, %v3739_v25  ;;  %v1832_v56 = vpop.xlane.xlu1 %1831 }
 0x6de   : > { %3760 = vrcp.f32 %v1832_v56  ;;  %v3719_v56 = vld [vmem:[%s5246_s10 + $0x18] sm:$0xff]  }
 0x6df   : > { %v1835_v57 = vpop.xlane.xlu0 %1834  ;;  %v1853_v58 = vpack.c.bf16 %v1847_v55, %v1846_v54  ;;  %v3716_v55 = vld [vmem:[%s5246_s10] sm:$0xff]  }
 0x6e0   : > { %3762 = vrcp.f32 %v1835_v57  ;;  %v3720_v57 = vld [vmem:[%s5246_s10 + $0x20] sm:$0xff]  }
 0x6e1   : > { %v1563_v59 = vpop.permute.xlu1 %1562  ;;  %3349 = vmatmul.mubr.msk.bf16.vlgmr.msra.gmra.mrb[20].mxu1 %vm1763_vm3, %v1853_v58  ;;  %v3721_v58 = vld [vmem:[%s5246_s10 + $0x28] sm:$0xff]  }
 0x6e2   : > { %1566 = vst.msk [vmem:[#allocation5 + $0x18] sm:$0xff] %vm1513_vm2, %v1563_v59  ;;  %3360 = vmatprep.mubr.msk.bf16.mxu1 %vm4450_vm1, %v4449_v24  ;;  %v3757_v61 = vpop.eup %3756  ;;  %v3722_v59 = vld [vmem:[%s5246_s10 + $0x30] sm:$0xff]  }
 0x6e3   : > { %v1548_v60 = vpop.permute.xlu0 %1547  ;;  %v3759_v62 = vpop.eup %3758  ;;  %v1849_v0 = vmul.f32 %v3757_v61, %v3743_v33 }
 0x6e4   : > { %1551 = vst.msk [vmem:[#allocation5 + $0x10] sm:$0xff] %vm1513_vm2, %v1548_v60  ;;  %v1848_v3 = vmul.f32 %v3759_v62, %v3741_v31  ;;  %v3723_v60 = vld [vmem:[%s5246_s10 + $0x38] sm:$0xff]  }
 0x6e6   : > { %v1854_v7 = vpack.c.bf16 %v1849_v0, %v1848_v3 }
 0x6e8   : > { %v3761_v63 = vpop.eup %3760 }
 0x6e9   : > { %v1859_v1 = vld [vmem:[#allocation5 + $0x18] sm:$0xff]  ;;  %v1850_v4 = vmul.f32 %v3761_v63, %v3745_v36 }
 0x6ea   : > { %v3763_v2 = vpop.eup %3762  ;;  %3359 = vmatpush3.bf16.msra.mxu1 %v1859_v1 }
 0x6eb   : > { %v1851_v5 = vmul.f32 %v3763_v2, %v3747_v38  ;;  %v1858_v6 = vld [vmem:[#allocation5 + $0x10] sm:$0xff]  ;;  %3384 = vmatprep.subr.bf16.mxu1 %v4449_v24 }
 0x6ec   : > { %3353 = vmatpush3.bf16.msra.mxu0 %v1858_v6 }
 0x6ed   : > { %v1855_v8 = vpack.c.bf16 %v1851_v5, %v1850_v4  ;;  %3364 = vmatprep.subr.bf16.mxu0 %v4449_v24 }
 0x6ef   : > { %3355 = vmatmul.mubr.msk.bf16.vlgmr.msra.gmra.mrb[8].mxu0 %vm1763_vm3, %v1854_v7  ;;  %3361 = vmatmul.mubr.msk.bf16.vlgmr.msra.gmra.mrb[24].mxu1 %vm1763_vm3, %v1855_v8 }
 0x6f0   : > { %3380 = vmatprep.mubr.msk.bf16.mxu0 %vm4450_vm1, %v4449_v24  ;;  %3400 = vmatprep.mubr.msk.bf16.mxu1 %vm4450_vm1, %v4449_v24 }
 0x6f1   : > { %3365 = vmatpush3.bf16.msra.mxu0 %v3708_v9  ;;  %3385 = vmatpush3.bf16.msra.mxu1 %v3716_v55 }
 0x6f2   : > { %3366 = vmatprep.subr.bf16.mxu0 %v4449_v24  ;;  %3386 = vmatprep.subr.bf16.mxu1 %v4449_v24 }
 0x6f5   : > { %3367 = vmatpush3.bf16.msra.mxu0 %v3709_v10 }
 0x6f6   : > { %3368 = vmatprep.subr.bf16.mxu0 %v4449_v24 }
 0x6f9   : > { %3369 = vmatpush3.bf16.msra.mxu0 %v3710_v17 }
 0x6fa   : > { %3370 = vmatprep.subr.bf16.mxu0 %v4449_v24 }
 0x6fd   : > { %3371 = vmatpush3.bf16.msra.mxu0 %v3711_v18 }
 0x6fe   : > { %3372 = vmatprep.subr.bf16.mxu0 %v4449_v24 }
 0x701   : > { %3373 = vmatpush3.bf16.msra.mxu0 %v3712_v19 }
 0x702   : > { %3374 = vmatprep.subr.bf16.mxu0 %v4449_v24 }
 0x705   : > { %3375 = vmatpush3.bf16.msra.mxu0 %v3713_v21 }
 0x706   : > { %3376 = vmatprep.subr.bf16.mxu0 %v4449_v24 }
 0x709   : > { %3377 = vmatpush3.bf16.msra.mxu0 %v3714_v27  ;;  %v3725_v27 = vld [vmem:[%s5254_s20 + $0x8] sm:$0xff]  }
 0x70a   : > { %3378 = vmatprep.subr.bf16.mxu0 %v4449_v24 }
 0x70d   : > { %3379 = vmatpush3.bf16.msra.mxu0 %v3715_v28  ;;  %v3726_v28 = vld [vmem:[%s5254_s20 + $0x10] sm:$0xff]  }
 0x70e   : > { %3404 = vmatprep.subr.bf16.mxu0 %v4449_v24 }
 0x757   : > { %v1897_v11 = vpop.f32.mrb[4].mxu0 }
 0x758   : > { %v3344_v12 = vpop.f32.mrb[5].mxu0 }
 0x759   : > { %v1900_v13 = vpop.f32.mrb[6].mxu0 }
 0x75a   : > { %v2036_v14 = vpack.c.bf16 %v1900_v13, %v1897_v11  ;;  %v3345_v15 = vpop.f32.mrb[7].mxu0 }
 0x75c   : > { %2037 = vst.msk [vmem:[#allocation6] sm:$0xff] %vm1513_vm2, %v2036_v14  ;;  %v3162_v14 = vld [vmem:[%s5787_s1] ss:$0 sm:$0xff] }
 0x7b4   : > { %v1941_v20 = vpop.f32.mrb[20].mxu1 }
 0x7b5   : > { %v3350_v22 = vpop.f32.mrb[21].mxu1 }
 0x7b6   : > { %v1944_v23 = vpop.f32.mrb[22].mxu1 }
 0x7b7   : > { %v2038_v25 = vpack.c.bf16 %v1944_v23, %v1941_v20  ;;  %v3351_v26 = vpop.f32.mrb[23].mxu1 }
 0x7b8   : > { %v3724_v26 = vld [vmem:[%s5254_s20] sm:$0xff]  }
 0x7b9   : > { %2040 = vrot.lane.b32.xlu1 %v2038_v25, %s4453_s3 }
 0x7c2   : > { %v1985_v29 = vpop.f32.mrb[8].mxu0  ;;  %v2029_v30 = vpop.f32.mrb[24].mxu1 }
 0x7c3   : > { %v3356_v31 = vpop.f32.mrb[9].mxu0  ;;  %v3362_v32 = vpop.f32.mrb[25].mxu1 }
 0x7c4   : > { %v1988_v33 = vpop.f32.mrb[10].mxu0  ;;  %v2032_v34 = vpop.f32.mrb[26].mxu1  ;;  %v3729_v31 = vld [vmem:[%s5254_s20 + $0x28] sm:$0xff]   ;;  %v3730_v32 = vld [vmem:[%s5254_s20 + $0x30] sm:$0xff]  }
 0x7c5   : > { %v2045_v35 = vpack.c.bf16 %v1988_v33, %v1985_v29  ;;  %v2052_v36 = vpack.c.bf16 %v2032_v34, %v2029_v30  ;;  %v3357_v37 = vpop.f32.mrb[11].mxu0  ;;  %v3363_v38 = vpop.f32.mrb[27].mxu1  ;;  %v3727_v29 = vld [vmem:[%s5254_s20 + $0x18] sm:$0xff]   ;;  %v3728_v30 = vld [vmem:[%s5254_s20 + $0x20] sm:$0xff]  }
 0x7c6   : > { %v3731_v33 = vld [vmem:[%s5254_s20 + $0x38] sm:$0xff]   ;;  %s5791_s20 = scalar_lea.vmem [#allocation28], %s5218_s17 }
 0x7c7   : > { %2047 = vrot.lane.b32.xlu0 %v2045_v35, %s4451_s25  ;;  %2054 = vrot.lane.b32.xlu1 %v2052_v36, %s4452_s23  ;;  %v3164_v34 = vld [vmem:[%s5789_s28] ss:$0 sm:$0xff]  ;;  %s5794_s25 = sld [smem:[#allocation78_spill]] (!%p3184_p2) }
 0x82b   : > { %v2041_v39 = vpop.permute.xlu1 %2040 }
 0x82c   : > { %2044 = vst.msk [vmem:[#allocation6] sm:$0xff] %vm2043_vm4, %v2041_v39 }
 0x839   : > { %v2048_v40 = vpop.permute.xlu0 %2047  ;;  %v2055_v41 = vpop.permute.xlu1 %2054 }
 0x83a   : > { %2051 = vst.msk [vmem:[#allocation6] sm:$0xff] %vm2050_vm5, %v2048_v40 }
 0x83b   : > { %2058 = vst.msk [vmem:[#allocation6] sm:$0xff] %vm2057_vm6, %v2055_v41 }
 0x842   : > { %v2059_v42 = vld [vmem:[#allocation6] sm:$0xff] }
 0x843   : > { %3381 = vmatmul.mubr.bf16.vlgmr.msra.gmra.mrb[12].mxu0 %v2059_v42 }
 0x844   : > { %3420 = vmatprep.mubr.msk.bf16.mxu0 %vm4450_vm1, %v4449_v24  ;;  %3405 = vmatpush3.bf16.msra.mxu0 %v3724_v26 }
 0x845   : > { %3406 = vmatprep.subr.bf16.mxu0 %v4449_v24 }
 0x848   : > { %3407 = vmatpush3.bf16.msra.mxu0 %v3725_v27 }
 0x849   : > { %3408 = vmatprep.subr.bf16.mxu0 %v4449_v24 }
 0x84c   : > { %3409 = vmatpush3.bf16.msra.mxu0 %v3726_v28 }
 0x84d   : > { %3410 = vmatprep.subr.bf16.mxu0 %v4449_v24 }
 0x850   : > { %3411 = vmatpush3.bf16.msra.mxu0 %v3727_v29 }
 0x851   : > { %3412 = vmatprep.subr.bf16.mxu0 %v4449_v24 }
 0x854   : > { %3413 = vmatpush3.bf16.msra.mxu0 %v3728_v30 }
 0x855   : > { %3414 = vmatprep.subr.bf16.mxu0 %v4449_v24 }
 0x858   : > { %3415 = vmatpush3.bf16.msra.mxu0 %v3729_v31  ;;  %v3173_v31 = vld [vmem:[%s979_s8] ss:$0 sm:$0xff]  ;;  %s5790_s8 = scalar_lea.vmem [#allocation27], %s5218_s17 }
 0x859   : > { %3416 = vmatprep.subr.bf16.mxu0 %v4449_v24 }
 0x85c   : > { %3417 = vmatpush3.bf16.msra.mxu0 %v3730_v32 }
 0x85d   : > { %3418 = vmatprep.subr.bf16.mxu0 %v4449_v24 }
 0x860   : > { %3419 = vmatpush3.bf16.msra.mxu0 %v3731_v33 }
 0x916   : > { %v2165_v46 = vpop.f32.mrb[12].mxu0 }
 0x917   : > { %v2166_v47 = vadd.f32 %v3153_v43, %v2165_v46  ;;  %v3382_v48 = vpop.f32.mrb[13].mxu0 }
 0x918   : > { %v2168_v49 = vpop.f32.mrb[14].mxu0 }
 0x919   : > { %v2172_v50 = vadd.f32 %v2166_v47, %v5318_v44  ;;  %v2169_v16 = vadd.f32 %v3153_v43, %v2168_v49  ;;  %v3383_v51 = vpop.f32.mrb[15].mxu0  ;;  %v3717_v44 = vld [vmem:[%s5246_s10 + $0x8] sm:$0xff]  }
 0x91a   : > { %3387 = vmatpush3.bf16.msra.mxu1 %v3717_v44 }
 0x91b   : > { %v2173_v52 = vadd.f32 %v2169_v16, %v5320_v45  ;;  %2176 = vadd.xlane.f32.xlu0 %v2172_v50  ;;  %v2182_v53 = vmul.f32 %v2172_v50, %v2172_v50  ;;  %3388 = vmatprep.subr.bf16.mxu1 %v4449_v24  ;;  %v3718_v45 = vld [vmem:[%s5246_s10 + $0x10] sm:$0xff]   ;;  %s5788_s10 = scalar_lea.vmem [#allocation19], %s5218_s17  ;;  %s5793_s17 = sld [smem:[#allocation77_spill]] (!%p3184_p2) }
 0x91c   : > { %v3163_v20 = vld [vmem:[%s5788_s10] ss:$0 sm:$0xff] }
 0x91d   : > { %2178 = vadd.xlane.f32.xlu1 %v2173_v52  ;;  %v2183_v54 = vmul.f32 %v2173_v52, %v2173_v52 }
 0x91e   : > { %3389 = vmatpush3.bf16.msra.mxu1 %v3718_v45 }
 0x91f   : > { %2184 = vadd.xlane.f32.xlu0 %v2182_v53  ;;  %3390 = vmatprep.subr.bf16.mxu1 %v4449_v24 }
 0x922   : > { %3391 = vmatpush3.bf16.msra.mxu1 %v3719_v56 }
 0x923   : > { %2186 = vadd.xlane.f32.xlu0 %v2183_v54  ;;  %3392 = vmatprep.subr.bf16.mxu1 %v4449_v24 }
 0x926   : > { %3393 = vmatpush3.bf16.msra.mxu1 %v3720_v57 }
 0x927   : > { %3394 = vmatprep.subr.bf16.mxu1 %v4449_v24 }
 0x92a   : > { %3395 = vmatpush3.bf16.msra.mxu1 %v3721_v58 }
 0x92b   : > { %3396 = vmatprep.subr.bf16.mxu1 %v4449_v24 }
 0x92e   : > { %3397 = vmatpush3.bf16.msra.mxu1 %v3722_v59 }
 0x92f   : > { %3398 = vmatprep.subr.bf16.mxu1 %v4449_v24 }
 0x932   : > { %3399 = vmatpush3.bf16.msra.mxu1 %v3723_v60 }
 0x9a8   : > { %v2177_v61 = vpop.xlane.xlu0 %2176 }
 0x9a9   : > { %v2180_v62 = vmul.f32 0.015625, %v2177_v61 }
 0x9aa   : > { %v2179_v63 = vpop.xlane.xlu1 %2178 }
 0x9ab   : > { %v2190_v1 = vmul.f32 %v2180_v62, %v2180_v62  ;;  %v2181_v2 = vmul.f32 0.015625, %v2179_v63  ;;  %v2194_v11 = vsub.f32 %v2172_v50, %v2180_v62 }
 0x9ac   : > { %v2185_v0 = vpop.xlane.xlu0 %2184 }
 0x9ad   : > { %v2188_v3 = vmul.f32 0.015625, %v2185_v0  ;;  %v2191_v6 = vmul.f32 %v2181_v2, %v2181_v2  ;;  %v2195_v15 = vsub.f32 %v2173_v52, %v2181_v2 }
 0x9af   : > { %v2192_v4 = vsub.f32 %v2188_v3, %v2190_v1 }
 0x9b0   : > { %v2187_v5 = vpop.xlane.xlu0 %2186 }
 0x9b1   : > { %v2196_v7 = vadd.f32 1e-05, %v2192_v4  ;;  %v2189_v8 = vmul.f32 0.015625, %v2187_v5 }
 0x9b3   : > { %3764 = vrsqrt.f32 %v2196_v7  ;;  %v2193_v9 = vsub.f32 %v2189_v8, %v2191_v6 }
 0x9b5   : > { %v2197_v10 = vadd.f32 1e-05, %v2193_v9 }
 0x9b7   : > { %3766 = vrsqrt.f32 %v2197_v10 }
 0x9bd   : > { %v3765_v12 = vpop.eup %3764 }
 0x9be   : > { %v2200_v13 = vmul.f32 %v3765_v12, %v2194_v11 }
 0x9c0   : > { %v2208_v19 = vmul.f32 %v3162_v14, %v2200_v13  ;;  %v4454_v13 = vmov -1.0  }
 0x9c1   : > { %v3767_v17 = vpop.eup %3766 }
 0x9c2   : > { %v2201_v18 = vmul.f32 %v3767_v17, %v2195_v15  ;;  %v5471_v22 = vadd.f32 %v3163_v20, %v2208_v19 }
 0x9c4   : > { %v2209_v21 = vmul.f32 %v3162_v14, %v2201_v18 }
 0x9c6   : > { %v5473_v23 = vadd.f32 %v3163_v20, %v2209_v21 }
 0x9c8   : > { %v2218_v25 = vpack.c.bf16 %v5473_v23, %v5471_v22 }
 0x9ca   : > { %3401 = vmatmul.mubr.bf16.vlgmr.msra.gmra.mrb[28].mxu1 %v2218_v25 }
 0xa9d   : > { %v2324_v35 = vpop.f32.mrb[28].mxu1 }
 0xa9e   : > { %v2325_v36 = vadd.f32 %v3164_v34, %v2324_v35  ;;  %v3402_v37 = vpop.f32.mrb[29].mxu1 }
 0xa9f   : > { %v2327_v38 = vpop.f32.mrb[30].mxu1 }
 0xaa0   : > { %v2333_v39 = vmul.f32 0.70710677, %v2325_v36  ;;  %v2328_v40 = vadd.f32 %v3164_v34, %v2327_v38  ;;  %v3403_v41 = vpop.f32.mrb[31].mxu1  ;;  %v2331_v25 = vmul.f32 0.5, %v2325_v36 }
 0xaa2   : > { %v2339_v42 = vand.u32 2147483647, %v2333_v39  ;;  %v2334_v43 = vmul.f32 0.70710677, %v2328_v40  ;;  %vm2335_vm7 = vcmp.ge.f32.partialorder %v2333_v39, 0.0  ;;  %v2332_v26 = vmul.f32 0.5, %v2328_v40 }
 0xaa3   : > { %v2337_v14 = vsel %vm2335_vm7, 1.0, %v4454_v13 }
 0xaa4   : > { %v2341_v46 = vmul.f32 0.3275911, %v2339_v42  ;;  %v2340_v47 = vand.u32 2147483647, %v2334_v43  ;;  %v2365_v24 = vsub.f32 0.0, %v2339_v42  ;;  %vm2336_vm8 = vcmp.ge.f32.partialorder %v2334_v43, 0.0 }
 0xaa5   : > { %v2338_v19 = vsel %vm2336_vm8, 1.0, %v4454_v13 }
 0xaa6   : > { %v2343_v48 = vadd.f32 1.0, %v2341_v46  ;;  %v2342_v49 = vmul.f32 0.3275911, %v2340_v47  ;;  %v2366_v16 = vsub.f32 0.0, %v2340_v47  ;;  %v2367_v52 = vmul.f32 %v2365_v24, %v2339_v42 }
 0xaa8   : > { %3768 = vrcp.f32 %v2343_v48  ;;  %v2344_v50 = vadd.f32 1.0, %v2342_v49  ;;  %v2368_v44 = vmul.f32 %v2366_v16, %v2340_v47  ;;  %v2369_v45 = vmul.f32 1.442695, %v2367_v52 }
 0xaaa   : > { %3770 = vrcp.f32 %v2344_v50  ;;  %v2371_v60 = vmul.f32 1.442695, %v2368_v44  ;;  %v3182_v44 = vld [vmem:[%s5790_s8] ss:$0 sm:$0xff] }
 0xaab   : > { %3772 = vpow2.f32 %v2369_v45 }
 0xaac   : > { %3774 = vpow2.f32 %v2371_v60 }
 0xab2   : > { %v3769_v51 = vpop.eup %3768 }
 0xab3   : > { %v2347_v53 = vmul.f32 1.0614054, %v3769_v51 }
 0xab4   : > { %v3771_v54 = vpop.eup %3770 }
 0xab5   : > { %v2349_v55 = vadd.f32 -1.4531521, %v2347_v53  ;;  %v2348_v56 = vmul.f32 1.0614054, %v3771_v54  ;;  %v3773_v7 = vpop.eup %3772 }
 0xab6   : > { %v3775_v11 = vpop.eup %3774 }
 0xab7   : > { %v2351_v57 = vmul.f32 %v3769_v51, %v2349_v55  ;;  %v2350_v58 = vadd.f32 -1.4531521, %v2348_v56 }
 0xab9   : > { %v2353_v59 = vadd.f32 1.4214138, %v2351_v57  ;;  %v2352_v61 = vmul.f32 %v3771_v54, %v2350_v58  ;;  %v3183_v58 = vld [vmem:[%s5791_s20] ss:$0 sm:$0xff] }
 0xabb   : > { %v2355_v62 = vmul.f32 %v3769_v51, %v2353_v59  ;;  %v2354_v63 = vadd.f32 1.4214138, %v2352_v61 }
 0xabd   : > { %v2357_v0 = vadd.f32 -0.28449672, %v2355_v62  ;;  %v2356_v1 = vmul.f32 %v3771_v54, %v2354_v63 }
 0xabf   : > { %v2359_v2 = vmul.f32 %v3769_v51, %v2357_v0  ;;  %v2358_v3 = vadd.f32 -0.28449672, %v2356_v1 }
 0xac1   : > { %v2361_v4 = vadd.f32 0.2548296, %v2359_v2  ;;  %v2360_v5 = vmul.f32 %v3771_v54, %v2358_v3  ;;  %v3780_v2 = vld [vmem:[%s5793_s17] sm:$0xff] (!%p3184_p2)   ;;  %v4455_v3 = vmov (!%p3184_p2), 0.0  }
 0xac2   : > { %3424 = vmatprep.subr.bf16.mxu0 (!%p3184_p2), %v4455_v3 }
 0xac3   : > { %v2363_v6 = vmul.f32 %v3769_v51, %v2361_v4  ;;  %v2362_v8 = vadd.f32 0.2548296, %v2360_v5  ;;  %v3781_v4 = vld [vmem:[%s5793_s17 + $0x8] sm:$0xff] (!%p3184_p2)   ;;  %v3782_v5 = vld [vmem:[%s5793_s17 + $0x10] sm:$0xff] (!%p3184_p2)  }
 0xac5   : > { %v2373_v9 = vmul.f32 %v3773_v7, %v2363_v6  ;;  %v2364_v10 = vmul.f32 %v3771_v54, %v2362_v8  ;;  %v3783_v6 = vld [vmem:[%s5793_s17 + $0x18] sm:$0xff] (!%p3184_p2)   ;;  %v3784_v7 = vld [vmem:[%s5793_s17 + $0x20] sm:$0xff] (!%p3184_p2)   ;;  %v3785_v8 = vld [vmem:[%s5793_s17 + $0x28] sm:$0xff] (!%p3184_p2)  }
 0xac7   : > { %v2375_v12 = vsub.f32 1.0, %v2373_v9  ;;  %v2374_v15 = vmul.f32 %v3775_v11, %v2364_v10  ;;  %v3786_v9 = vld [vmem:[%s5793_s17 + $0x30] sm:$0xff] (!%p3184_p2)   ;;  %v3787_v10 = vld [vmem:[%s5793_s17 + $0x38] sm:$0xff] (!%p3184_p2)  }
 0xac9   : > { %v2377_v17 = vmul.f32 %v2375_v12, %v2337_v14  ;;  %v2376_v18 = vsub.f32 1.0, %v2374_v15 }
 0xacb   : > { %v2379_v20 = vadd.f32 1.0, %v2377_v17  ;;  %v2378_v21 = vmul.f32 %v2376_v18, %v2338_v19 }
 0xacd   : > { %v2380_v27 = vadd.f32 1.0, %v2378_v21  ;;  %v2381_v28 = vmul.f32 %v2379_v20, %v2331_v25 }
 0xacf   : > { %v2382_v29 = vmul.f32 %v2380_v27, %v2332_v26 }
 0xad1   : > { %v2383_v30 = vpack.c.bf16 %v2382_v29, %v2381_v28 }
 0xad3   : > { %3421 = vmatmul.mubr.bf16.vlgmr.msra.gmra.mrb[16].mxu0 %v2383_v30 }
 0xad4   : > { %3425 = vmatpush3.bf16.msra.mxu0 (!%p3184_p2), %v3780_v2  ;;  %3440 = vmatprep.mubr.msk.bf16.mxu0 (!%p3184_p2), %vm4456_vm9, %v4455_v3 }
 0xad5   : > { %3426 = vmatprep.subr.bf16.mxu0 (!%p3184_p2), %v4455_v3 }
 0xad8   : > { %3427 = vmatpush3.bf16.msra.mxu0 (!%p3184_p2), %v3781_v4 }
 0xad9   : > { %3428 = vmatprep.subr.bf16.mxu0 (!%p3184_p2), %v4455_v3 }
 0xadc   : > { %3429 = vmatpush3.bf16.msra.mxu0 (!%p3184_p2), %v3782_v5 }
 0xadd   : > { %3430 = vmatprep.subr.bf16.mxu0 (!%p3184_p2), %v4455_v3 }
 0xae0   : > { %3431 = vmatpush3.bf16.msra.mxu0 (!%p3184_p2), %v3783_v6 }
 0xae1   : > { %3432 = vmatprep.subr.bf16.mxu0 (!%p3184_p2), %v4455_v3 }
 0xae4   : > { %3433 = vmatpush3.bf16.msra.mxu0 (!%p3184_p2), %v3784_v7 }
 0xae5   : > { %3434 = vmatprep.subr.bf16.mxu0 (!%p3184_p2), %v4455_v3 }
 0xae8   : > { %3435 = vmatpush3.bf16.msra.mxu0 (!%p3184_p2), %v3785_v8 }
 0xae9   : > { %3436 = vmatprep.subr.bf16.mxu0 (!%p3184_p2), %v4455_v3 }
 0xaec   : > { %3437 = vmatpush3.bf16.msra.mxu0 (!%p3184_p2), %v3786_v9 }
 0xaed   : > { %3438 = vmatprep.subr.bf16.mxu0 (!%p3184_p2), %v4455_v3 }
 0xaf0   : > { %3439 = vmatpush3.bf16.msra.mxu0 (!%p3184_p2), %v3787_v10 }
 0xba6   : > { %v2489_v32 = vpop.f32.mrb[16].mxu0 }
 0xba7   : > { %v2490_v33 = vadd.f32 %v3173_v31, %v2489_v32  ;;  %v3422_v34 = vpop.f32.mrb[17].mxu0  ;;  %v3185_v32 = vld [vmem:[#allocation30] ss:$0 sm:$0xff] (!%p3184_p2) }
 0xba8   : > { %v2492_v35 = vpop.f32.mrb[18].mxu0 }
 0xba9   : > { %v2496_v37 = vadd.f32 %v2490_v33, %v5471_v22  ;;  %v2493_v38 = vadd.f32 %v3173_v31, %v2492_v35  ;;  %v3423_v39 = vpop.f32.mrb[19].mxu0 }
 0xbab   : > { %v2497_v41 = vadd.f32 %v2493_v38, %v5473_v23  ;;  %2500 = vadd.xlane.f32.xlu1 %v2496_v37  ;;  %v2506_v36 = vmul.f32 %v2496_v37, %v2496_v37  ;;  %v3186_v38 = vld [vmem:[#allocation31] ss:$0 sm:$0xff] (!%p3184_p2) }
 0xbad   : > { %2502 = vadd.xlane.f32.xlu0 %v2497_v41  ;;  %v2507_v40 = vmul.f32 %v2497_v41, %v2497_v41 }
 0xbaf   : > { %2508 = vadd.xlane.f32.xlu1 %v2506_v36 }
 0xbb1   : > { %2510 = vadd.xlane.f32.xlu0 %v2507_v40 }
 0xc38   : > { %v2501_v42 = vpop.xlane.xlu1 %2500 }
 0xc39   : > { %v2504_v43 = vmul.f32 0.015625, %v2501_v42  ;;  %v3187_v42 = vld [vmem:[%s5794_s25] ss:$0 sm:$0xff] (!%p3184_p2) }
 0xc3a   : > { %v2503_v46 = vpop.xlane.xlu0 %2502 }
 0xc3b   : > { %v2505_v47 = vmul.f32 0.015625, %v2503_v46  ;;  %v2514_v49 = vmul.f32 %v2504_v43, %v2504_v43  ;;  %v2518_v54 = vsub.f32 %v2496_v37, %v2504_v43 }
 0xc3c   : > { %v2509_v48 = vpop.xlane.xlu1 %2508 }
 0xc3d   : > { %v2512_v50 = vmul.f32 0.015625, %v2509_v48  ;;  %v2515_v24 = vmul.f32 %v2505_v47, %v2505_v47  ;;  %v2519_v45 = vsub.f32 %v2497_v41, %v2505_v47 }
 0xc3e   : > { %v2511_v22 = vpop.xlane.xlu0 %2510 }
 0xc3f   : > { %v2516_v16 = vsub.f32 %v2512_v50, %v2514_v49  ;;  %v2513_v51 = vmul.f32 0.015625, %v2511_v22 }
 0xc41   : > { %v2520_v23 = vadd.f32 1e-05, %v2516_v16  ;;  %v2517_v52 = vsub.f32 %v2513_v51, %v2515_v24 }
 0xc43   : > { %3776 = vrsqrt.f32 %v2520_v23  ;;  %v2521_v53 = vadd.f32 1e-05, %v2517_v52 }
 0xc45   : > { %3778 = vrsqrt.f32 %v2521_v53 }
 0xc4d   : > { %v3777_v55 = vpop.eup %3776 }
 0xc4e   : > { %v2524_v56 = vmul.f32 %v3777_v55, %v2518_v54 }
 0xc4f   : > { %v3779_v57 = vpop.eup %3778 }
 0xc50   : > { %v2532_v59 = vmul.f32 %v3182_v44, %v2524_v56  ;;  %v2525_v60 = vmul.f32 %v3779_v57, %v2519_v45  ;;  %2547 = sbr.rel (%p3184_p2) target bundleno = 3546 (0xdda), region = 172 }
 0xc52   : > { %v2540_v61 = vadd.f32 %v3183_v58, %v2532_v59  ;;  %v2533_v62 = vmul.f32 %v3182_v44, %v2525_v60 }
 0xc54   : > { %2542 = vst [vmem:[#allocation2] sm:$0xff] %v2540_v61  ;;  %v2541_v63 = vadd.f32 %v3183_v58, %v2533_v62  ;;  %2550 = vadd.xlane.f32.xlu0 (!%p3184_p2), %v2540_v61  ;;  %v2556_v0 = vmul.f32 (!%p3184_p2), %v2540_v61, %v2540_v61 }
 0xc56   : > { %2543 = vst [vmem:[#allocation2 + $0x8] sm:$0xff] %v2541_v63  ;;  %2558 = vadd.xlane.f32.xlu1 (!%p3184_p2), %v2556_v0  ;;  %v2557_v1 = vmul.f32 (!%p3184_p2), %v2541_v63, %v2541_v63 }
 0xc58   : > { %2552 = vadd.xlane.f32.xlu0 %v2541_v63 }
 0xc5a   : > { %2560 = vadd.xlane.f32.xlu1 %v2557_v1 }
 0xce1   : > { %v2551_v11 = vpop.xlane.xlu0 %2550 }
 0xce2   : > { %v2554_v12 = vmul.f32 0.015625, %v2551_v11 }
 0xce3   : > { %v2559_v13 = vpop.xlane.xlu1 %2558 }
 0xce4   : > { %v2564_v14 = vmul.f32 %v2554_v12, %v2554_v12  ;;  %v2562_v15 = vmul.f32 0.015625, %v2559_v13  ;;  %v2568_v29 = vsub.f32 %v2540_v61, %v2554_v12 }
 0xce5   : > { %v2553_v17 = vpop.xlane.xlu0 %2552 }
 0xce6   : > { %v2566_v18 = vsub.f32 %v2562_v15, %v2564_v14  ;;  %v2555_v19 = vmul.f32 0.015625, %v2553_v17 }
 0xce7   : > { %v2561_v20 = vpop.xlane.xlu1 %2560 }
 0xce8   : > { %v2570_v21 = vadd.f32 1e-05, %v2566_v18  ;;  %v2565_v25 = vmul.f32 %v2555_v19, %v2555_v19  ;;  %v2563_v26 = vmul.f32 0.015625, %v2561_v20  ;;  %v2569_v33 = vsub.f32 %v2541_v63, %v2555_v19 }
 0xcea   : > { %3788 = vrsqrt.f32 %v2570_v21  ;;  %v2567_v27 = vsub.f32 %v2563_v26, %v2565_v25 }
 0xcec   : > { %v2571_v28 = vadd.f32 1e-05, %v2567_v27 }
 0xcee   : > { %3790 = vrsqrt.f32 %v2571_v28 }
 0xcf4   : > { %v3789_v30 = vpop.eup %3788 }
 0xcf5   : > { %v2574_v31 = vmul.f32 %v3789_v30, %v2568_v29 }
 0xcf7   : > { %v2582_v37 = vmul.f32 %v3185_v32, %v2574_v31 }
 0xcf8   : > { %v3791_v34 = vpop.eup %3790 }
 0xcf9   : > { %v2575_v35 = vmul.f32 %v3791_v34, %v2569_v33  ;;  %v2590_v41 = vadd.f32 %v3186_v38, %v2582_v37 }
 0xcfb   : > { %v2583_v39 = vmul.f32 %v3185_v32, %v2575_v35 }
 0xcfd   : > { %v2591_v36 = vadd.f32 %v3186_v38, %v2583_v39 }
 0xcff   : > { %v2592_v40 = vpack.c.bf16 %v2591_v36, %v2590_v41 }
 0xd01   : > { %3441 = vmatmul.mubr.bf16.vlgmr.msra.gmra.mrb[0].mxu0 %v2592_v40 }
 0xdd4   : > { %v2698_v43 = vpop.f32.mrb[0].mxu0 }
 0xdd5   : > { %v2699_v46 = vadd.f32 %v3187_v42, %v2698_v43  ;;  %v3442_v47 = vpop.f32.mrb[1].mxu0 }
 0xdd6   : > { %v2701_v48 = vpop.f32.mrb[2].mxu0 }
 0xdd7   : > { %2705 = vst [vmem:[%s5286_s0] sm:$0xff] %v2699_v46  ;;  %v2702_v49 = vadd.f32 %v3187_v42, %v2701_v48  ;;  %v3443_v50 = vpop.f32.mrb[3].mxu0 }
 0xdd9   : > { %2706 = vst [vmem:[%s5286_s0 + $0x8] sm:$0xff] %v2702_v49 }
 0xdda PF: > { %s5795_s23 = sld [smem:[#allocation49_spill]]  ;;  %s5796_s19 = sld [smem:[#allocation79_spill]] }
 0xddb   : > { %s2721_s10 = sshll.u32 %s5286_s0, 4  ;;  %s2708_s28 = scalar_lea.sflag [#allocation9], %s5200_s16  ;;  %s5539_s10 = int_to_ptr.vmem [resolvable:$true] %s2721_s10 }
 0xddc   : > { %s4264_s8 = scalar_lea.vmem %s5539_s10, 256  ;;  %p5797_p13 = scmp.ne.s32.totalorder %s5746_s6, 0 }
 0xddd   : > { %p4265_p1 = scmp.ne.s32.totalorder %s5539_s10, %s4264_s8  ;;  %s4457_s20 = smov [#allocation33]  }
 0xdde   : > { %s4268_s5 = sshll.u32 %s4457_s20, 4  ;;  %s4269_s5 = int_to_ptr.vmem [resolvable:$false] %s4268_s5 }
 0xddf   : > { %p4266_p11 = pnand %p4265_p1, %p5797_p13  ;;  %s4270_s26 = scalar_lea.vmem %s4269_s5, 512 }
 0xde0   : > { %s3205_s3 = sshll.u32 %s5795_s23, 8  ;;  %p4271_p10 = scmp.lt.s32.totalorder %s5539_s10, %s4269_s5 }
 0xde1   : > { %s5536_s1 = scalar_lea.hbm %s5796_s19, %s3205_s3  ;;  %p4267_p6 = pneg %p4266_p11 }
 0xde2   : > { %p4272_p3 = scmp.lt.s32.totalorder %s4270_s26, %s4264_s8 }
 0xde4   : > { %p4273_p0 = por %p4272_p3, %p4271_p10 }
 0xde6   : > { %p4274_p9 = pnand %p4273_p0, %p4267_p6 }
 0xde8   : > { %4277 = shalt.err (!%p4274_p9)
}
 0xde9   : > { %s4278_s0 = scalar_lea.hbm %s5536_s1, 256  ;;  %s4282_s25 = scalar_lea.hbm %s5796_s19, 512 }
 0xdea   : > { %p4279_p4 = scmp.ne.s32.totalorder %s5536_s1, %s4278_s0  ;;  %p4283_p7 = scmp.lt.u32.totalorder %s5536_s1, %s5796_s19 }
 0xdeb   : > { %p4284_p12 = scmp.lt.u32.totalorder %s4282_s25, %s4278_s0  ;;  %p4286_p1 = scmp.lt.u32.totalorder %s4278_s0, %s5536_s1 }
 0xdec   : > { %p4280_p8 = pnand %p4279_p4, %p5797_p13 }
 0xded   : > { %p4285_p2 = por %p4284_p12, %p4283_p7 }
 0xdee   : > { %p4281_p5 = pneg %p4280_p8 }
 0xdef   : > { %p4287_p11 = por %p4286_p1, %p4285_p2 }
 0xdf1   : > { %p4288_p6 = pnand %p4287_p11, %p4281_p5 }
 0xdf3   : > { %4291 = shalt.err (!%p4288_p6)
}
 0xdf4   : > { %s4458_s7 = smov 128   ;;  %s4459_s21 = smov 8  }
 0xdf5   : > { %3490 = dma.vmem_to_hbm [thread:$0]  (%p5797_p13), %s5539_s10, 256, %s5536_s1, %s2708_s28, %s4458_s7, %s4458_s7, %s4459_s21  }
 0xdf6 PF: > { %p3555_p10 = scmp.ge.s32.totalorder %s4422_s4, 2  ;;  %s2736_s8 = sand.u32 1, %s4394_s24  }
 0xdf7   : > { %p5798_p3 = scmp.ne.s32.totalorder %s5748_s12, 0  ;;  %s2737_s20 = scalar_lea.sflag [#allocation9], %s2736_s8 }
 0xdf9   : > { %p3543_p0 = pnand %p3555_p10, %p5798_p3 }
 0xdfb   : > { %4377 = dma.done.wait (!%p3543_p0), %s2737_s20, 256  }
 0xdfc   : > { %4379 = vsyncadd (!%p3543_p0), %s2737_s20, 4294967040  ;;  %s56_s4 = sadd.s32 1, %s4422_s4   ;;  %s5799_s1 = sld [smem:[#allocation45_spill]] }
 0xdfd   : > { %p53_p9 = scmp.ge.s32.totalorder %s56_s4, 8   ;;  %s5800_s22 = sld [smem:[#allocation46_spill]] }
 0xdfe   : > { %s5801_s6 = sld [smem:[#allocation47_spill]]  ;;  %s5802_s25 = sld [smem:[#allocation58_spill]] }
 0xdff   : > { %s5803_s26 = sld [smem:[#allocation50_spill]]  ;;  %s5804_s16 = sld [smem:[#allocation56_spill]] }
 0xe00   : > { %s5805_s28 = sld [smem:[#allocation57_spill]]  ;;  %s5806_s23 = smov %s5818_s14 }
 0xe01   : > { %s5807_s24 = smov %s4398_s2  ;;  %s5809_s3 = smov %s4414_s27 }
 0xe02   :  { %55 = sbr.rel (!%p53_p9) target bundleno = 45 (0x2d), region = 314 }
 0xe04   : > { %s5808_s2 = smov %s5801_s6 }
 0xe05   : > { %s5810_s27 = smov %s5804_s16 }
 0xe09   :  { %2742 = vsyncpa [#allocation8], 1 }
 0xe0a   :  { %2744 = vsyncpa [#allocation8 + $0x1], 1 }
 0xe0b   :  { %2745 = vsyncpa [#allocation11], 1 }
 0xe0c   :  { %2746 = vsyncpa [#allocation14], 1 }
 0xe0d   :  { %2748 = vsyncpa [#allocation14 + $0x1], 1 }
 0xe0e   :  { %2749 = vsyncpa [#allocation17], 1 }
 0xe0f   :  { %2751 = vsyncpa [#allocation17 + $0x1], 1 }
 0xe10   :  { %2752 = vsyncpa [#allocation20], 1 }
 0xe11   :  { %2754 = vsyncpa [#allocation20 + $0x1], 1 }
 0xe12   :  { %2755 = vsyncpa [#allocation23], 1 }
 0xe13   :  { %2757 = vsyncpa [#allocation23 + $0x1], 1 }
 0xe14   :  { %2758 = vsyncpa [#allocation26], 1 }
 0xe15   :  { %2760 = vsyncpa [#allocation26 + $0x1], 1 }
 0xe16   :  { %2761 = vsyncpa [#allocation29], 1 }
 0xe17   :  { %2763 = vsyncpa [#allocation29 + $0x1], 1 }
 0xe18   :  { %2764 = vsyncpa [#allocation32], 1 }
 0xe19   :  { %2765 = vsyncpa [#allocation9], 1 }
 0xe1a   :  { %2767 = vsyncpa [#allocation9 + $0x1], 1 }

</bundles_post_ra>
